<compile_context>
chip_gen: v7x
topology: tpu7x:2x2x1
jax: 0.10.0
libtpu: 0.0.40
codegen_flags: <defaults>
</compile_context>

<pallas_src>
import functools

import jax
import jax.numpy as jnp
from jax import lax
from jax.experimental import pallas as pl
from jax.experimental.pallas import tpu as pltpu


def _basic_block_kernel(x_ref, w1_ref, w2_ref, sh1_ref, sh2_ref, out_ref,
                        pad_ref, acc_ref, *, H, W, Cp):
    """Fused conv3x3 -> BN -> ReLU -> conv3x3 -> BN -> +residual -> ReLU.

    Flat "stride W+2" activation layout: row r = i*(W+2)+j of a (H*(W+2), Cp)
    slab holds spatial position (i, j); columns j in [W, W+2) are garbage the
    wrapper discards (and which this kernel keeps zeroed so they become the
    left/right halo when written back into pad_ref).

    x_ref  : (1, H*(W+2), Cp) f32   input, width zero-padded by 2 columns
    w*_ref : (9*Cp, Cp)       bf16  conv taps (BN scale folded), tap = dh*3+dw
    sh*_ref: (1, Cp)          f32   folded BatchNorm shift
    out_ref: (1, H*(W+2), Cp) f32   output (garbage columns dropped outside)
    pad_ref: ((H+2)*(W+2)+2, Cp) bf16  flat 1-px-padded activations (+2 zero
                                       tail rows covered by the dh=dw=2 slice)
    acc_ref: (H*(W+2), Cp)    f32   conv accumulator
    """
    Wp = W + 2
    M = H * Wp

    # ---- zero the halo with dense lane-full row stores only ----------------
    # top padded row + pad[1, 0]
    pad_ref[pl.ds(0, Wp + 1), :] = jnp.zeros((Wp + 1, Cp), jnp.bfloat16)
    # bottom padded row + the 2-row tail over-read by the (dh=2, dw=2) slice
    pad_ref[pl.ds((H + 1) * Wp, Wp + 2), :] = jnp.zeros((Wp + 2, Cp),
                                                        jnp.bfloat16)
    # (left/right halo columns are produced by the interior writes below: the
    #  zeroed garbage columns of the stride-Wp slab land exactly on them.)

    # Column-in-row index (period Wp), built mod-free by tiling a (Wp, Cp) iota.
    base = lax.broadcasted_iota(jnp.int32, (Wp, Cp), 0)
    colidx = jnp.concatenate([base] * H, axis=0)            # (M, Cp)
    valid = colidx < W

    def conv3x3(w_ref):
        # 9 accumulating K=Cp matmuls; tap (dh, dw) is a plain offset slice of
        # the flat padded buffer (the stride-Wp layout makes im2col redundant).
        for tap in range(9):
            dh, dw = divmod(tap, 3)
            lhs = pad_ref[pl.ds(dh * Wp + dw, M), :]          # (M, Cp) bf16
            contrib = jnp.dot(lhs, w_ref[pl.ds(tap * Cp, Cp), :],
                              preferred_element_type=jnp.float32)
            if tap == 0:
                acc_ref[...] = contrib
            else:
                acc_ref[...] += contrib

    # conv1 (BN1 scale folded into w1) + shift + ReLU
    pad_ref[pl.ds(Wp + 1, M), :] = x_ref[0].astype(jnp.bfloat16)
    conv3x3(w1_ref)
    h = jnp.maximum(acc_ref[...] + sh1_ref[...], 0.0)
    h = jnp.where(valid, h, 0.0)                             # zero garbage cols

    # conv2 (BN2 scale folded into w2) + shift
    pad_ref[pl.ds(Wp + 1, M), :] = h.astype(jnp.bfloat16)
    conv3x3(w2_ref)

    # identity residual + final ReLU (garbage columns dropped in the wrapper)
    out_ref[0] = jnp.maximum(acc_ref[...] + sh2_ref[...] + x_ref[0],
                             0.0).astype(out_ref.dtype)


@jax.jit
def basic_block_forward(x_nchw, w1_hwio, w2_hwio, s1, b1, s2, b2):
    """BasicBlock forward (groups=1, no downsample, eval-mode BN).

    x_nchw: (B, C, H, W) float32.  Returns (B, C, H, W) float32.
    """
    B, C, H, W = x_nchw.shape
    # Lane-dense channel count.  C in (128, 256] stays one Cp=256 matmul so the
    # MXU N dimension is fully occupied on v6e/v7x.
    Cp = ((C + 127) // 128) * 128
    Wp = W + 2
    M = H * Wp
    n_pad = (H + 2) * Wp + 2

    # NCHW -> NHWC, zero-pad channels to Cp and width by 2 zero columns, then
    # flatten (H, Wp) -> M so the kernel sees the stride-Wp slab directly.
    x = jnp.transpose(x_nchw, (0, 2, 3, 1)).astype(jnp.float32)
    x = jnp.pad(x, ((0, 0), (0, 0), (0, 2), (0, Cp - C)))
    x = x.reshape(B, M, Cp)

    def prep_weight(w_hwio, scale):
        # Fold BN scale into output channels, pad channels, tap-major, bf16.
        w = (w_hwio.astype(jnp.float32) *
             scale.astype(jnp.float32)[None, None, None, :])
        w = jnp.pad(w, ((0, 0), (0, 0), (0, Cp - C), (0, Cp - C)))
        return w.reshape(9 * Cp, Cp).astype(jnp.bfloat16)

    w1 = prep_weight(w1_hwio, s1)
    w2 = prep_weight(w2_hwio, s2)
    sh1 = jnp.pad(b1.astype(jnp.float32), (0, Cp - C)).reshape(1, Cp)
    sh2 = jnp.pad(b2.astype(jnp.float32), (0, Cp - C)).reshape(1, Cp)

    # VMEM budget from the actual buffer sizes (double-buffered in/out blocks,
    # double-buffered grid-invariant weights/shifts, scratch) + headroom.
    vmem_need = (2 * 2 * M * Cp * 4            # x + out blocks, 2 buffers each
                 + 2 * 2 * 9 * Cp * Cp * 2     # w1 + w2 (bf16), 2 buffers each
                 + 2 * 2 * Cp * 4              # sh1 + sh2
                 + n_pad * Cp * 2              # flat padded-activation scratch
                 + M * Cp * 4)                 # f32 conv accumulator scratch
    vmem_limit = min(int(vmem_need * 3 // 2) + (2 << 20), 128 << 20)

    cost = pl.CostEstimate(
        flops=2 * 2 * B * M * 9 * Cp * Cp,                   # two 3x3 convs
        transcendentals=0,
        bytes_accessed=2 * B * M * Cp * 4 + 2 * 9 * Cp * Cp * 2)

    kernel = functools.partial(_basic_block_kernel, H=H, W=W, Cp=Cp)

    out = pl.pallas_call(
        kernel,
        out_shape=jax.ShapeDtypeStruct((B, M, Cp), jnp.float32),
        grid_spec=pltpu.PrefetchScalarGridSpec(
            num_scalar_prefetch=0,
            grid=(B,),
            in_specs=[
                pl.BlockSpec((1, M, Cp), lambda b: (b, 0, 0)),
                pl.BlockSpec((9 * Cp, Cp), lambda b: (0, 0)),
                pl.BlockSpec((9 * Cp, Cp), lambda b: (0, 0)),
                pl.BlockSpec((1, Cp), lambda b: (0, 0)),
                pl.BlockSpec((1, Cp), lambda b: (0, 0)),
            ],
            out_specs=pl.BlockSpec((1, M, Cp), lambda b: (b, 0, 0)),
            scratch_shapes=[
                pltpu.VMEM((n_pad, Cp), jnp.bfloat16),   # flat padded acts
                pltpu.VMEM((M, Cp), jnp.float32),        # conv accumulator
            ],
        ),
        compiler_params=pltpu.CompilerParams(
            dimension_semantics=("parallel",),
            vmem_limit_bytes=vmem_limit),
        cost_estimate=cost,
    )(x, w1, w2, sh1, sh2)

    # Drop the 2 garbage width columns and the channel padding; back to NCHW.
    out = out.reshape(B, H, Wp, Cp)[:, :, :W, :C]
    return jnp.transpose(out, (0, 3, 1, 2))


def _reference_forward(x_nchw, w1_hwio, w2_hwio, s1, b1, s2, b2):
    """Plain-JAX f32 reference matching the PyTorch module (eval mode)."""
    x = jnp.transpose(x_nchw, (0, 2, 3, 1)).astype(jnp.float32)
    dn = lax.conv_dimension_numbers(x.shape, w1_hwio.shape,
                                    ("NHWC", "HWIO", "NHWC"))
    out = lax.conv_general_dilated(x, w1_hwio, (1, 1), "SAME",
                                   dimension_numbers=dn,
                                   precision=lax.Precision.HIGHEST)
    out = jnp.maximum(out * s1 + b1, 0.0)
    out = lax.conv_general_dilated(out, w2_hwio, (1, 1), "SAME",
                                   dimension_numbers=dn,
                                   precision=lax.Precision.HIGHEST)
    out = out * s2 + b2
    out = jnp.maximum(out + x, 0.0)
    return jnp.transpose(out, (0, 3, 1, 2))


def _reference_forward_bf16mimic(x_nchw, w1_hwio, w2_hwio, s1, b1, s2, b2):
    """Reference that mimics the kernel's bf16 quantization points."""
    q = lambda a: a.astype(jnp.bfloat16).astype(jnp.float32)
    x = jnp.transpose(x_nchw, (0, 2, 3, 1)).astype(jnp.float32)
    dn = lax.conv_dimension_numbers(x.shape, w1_hwio.shape,
                                    ("NHWC", "HWIO", "NHWC"))
    w1 = q(w1_hwio * s1[None, None, None, :])
    w2 = q(w2_hwio * s2[None, None, None, :])
    h = lax.conv_general_dilated(q(x), w1, (1, 1), "SAME",
                                 dimension_numbers=dn,
                                 precision=lax.Precision.HIGHEST)
    h = jnp.maximum(h + b1, 0.0)
    h = lax.conv_general_dilated(q(h), w2, (1, 1), "SAME",
                                 dimension_numbers=dn,
                                 precision=lax.Precision.HIGHEST)
    out = jnp.maximum(h + b2 + x, 0.0)
    return jnp.transpose(out, (0, 3, 1, 2))


def _make_params(key, dim):
    """Deterministic synthetic parameters for BasicBlock(dim)."""
    ks = jax.random.split(key, 10)
    eps = 0.001
    # PyTorch conv weight layout: (C_out, C_in, 3, 3) -> convert to HWIO.
    w1_oihw = 0.1 * jax.random.normal(ks[0], (dim, dim, 3, 3), jnp.float32)
    w2_oihw = 0.1 * jax.random.normal(ks[1], (dim, dim, 3, 3), jnp.float32)
    w1_hwio = jnp.transpose(w1_oihw, (2, 3, 1, 0))
    w2_hwio = jnp.transpose(w2_oihw, (2, 3, 1, 0))

    def bn_fold(kg, kb, km, kv):
        gamma = 1.0 + 0.1 * jax.random.normal(kg, (dim,), jnp.float32)
        beta = 0.1 * jax.random.normal(kb, (dim,), jnp.float32)
        mean = 0.1 * jax.random.normal(km, (dim,), jnp.float32)
        var = 1.0 + 0.1 * jnp.abs(jax.random.normal(kv, (dim,), jnp.float32))
        scale = gamma / jnp.sqrt(var + eps)
        shift = beta - mean * scale
        return scale, shift

    s1, b1 = bn_fold(ks[2], ks[3], ks[4], ks[5])
    s2, b2 = bn_fold(ks[6], ks[7], ks[8], ks[9])
    return w1_hwio, w2_hwio, s1, b1, s2, b2


if __name__ == "__main__":
    key = jax.random.PRNGKey(0)
    kx, kp = jax.random.split(key)

    B, C, H, W = 2, 4, 16, 16
    x = jax.random.normal(kx, (B, C, H, W), jnp.float32)
    params = _make_params(kp, C)

    out = jax.block_until_ready(basic_block_forward(x, *params))
    assert out.shape == (B, C, H, W)

    # Tight check vs a reference that quantizes at the same bf16 points.
    ref_q = _reference_forward_bf16mimic(x, *params)
    assert jnp.allclose(out, ref_q, atol=1e-2, rtol=1e-2), \
        "mismatch vs bf16-mimic reference"

    # Looser check vs the pure-f32 module semantics (bf16 MXU tolerance).
    ref = _reference_forward(x, *params)
    assert jnp.allclose(out, ref, atol=6e-2, rtol=6e-2), \
        "mismatch vs f32 module reference"

    print("KERNEL_OK")
</pallas_src>

<mosaic_0001>
module attributes {stable_mosaic.version = 11 : i64} {
  func.func @_basic_block_kernel(%arg0: i32, %arg1: memref<1x288x128xf32, #tpu.memory_space<vmem>>, %arg2: memref<1152x128xbf16, #tpu.memory_space<vmem>>, %arg3: memref<1152x128xbf16, #tpu.memory_space<vmem>>, %arg4: memref<1x128xf32, #tpu.memory_space<vmem>>, %arg5: memref<1x128xf32, #tpu.memory_space<vmem>>, %arg6: memref<1x288x128xf32, #tpu.memory_space<vmem>>, %arg7: memref<326x128xbf16, #tpu.memory_space<vmem>>, %arg8: memref<288x128xf32, #tpu.memory_space<vmem>>) attributes {dimension_semantics = [#tpu.dimension_semantics<parallel>], iteration_bounds = array<i64: 2>, scalar_prefetch = 0 : i64, scratch_operands = 2 : i64, tpu.core_type = #tpu.core_type<tc>, window_params = [{transform_indices = @transform_0, window_bounds = array<i64: 1, 288, 128>}, {pipeline_mode = #tpu.pipeline_mode<synchronous>, transform_indices = @transform_1, window_bounds = array<i64: 1152, 128>}, {pipeline_mode = #tpu.pipeline_mode<synchronous>, transform_indices = @transform_2, window_bounds = array<i64: 1152, 128>}, {pipeline_mode = #tpu.pipeline_mode<synchronous>, transform_indices = @transform_3, window_bounds = array<i64: 1, 128>}, {pipeline_mode = #tpu.pipeline_mode<synchronous>, transform_indices = @transform_4, window_bounds = array<i64: 1, 128>}, {transform_indices = @transform_5, window_bounds = array<i64: 1, 288, 128>}]} {
    %cst = arith.constant 0.000000e+00 : bf16
    %0 = vector.broadcast %cst : bf16 to vector<19x128xbf16>
    %c0 = arith.constant 0 : index
    %c0_0 = arith.constant 0 : index
    %1 = vector.load %arg7[%c0, %c0_0] : memref<326x128xbf16, #tpu.memory_space<vmem>>, vector<19x128xbf16>
    tpu.vector_store %arg7[%c0, %c0_0], %0 {strides = array<i32>} : memref<326x128xbf16, #tpu.memory_space<vmem>>, vector<19x128xbf16>,
    %cst_1 = arith.constant 0.000000e+00 : bf16
    %2 = vector.broadcast %cst_1 : bf16 to vector<20x128xbf16>
    %c306 = arith.constant 306 : index
    %c0_2 = arith.constant 0 : index
    %3 = vector.load %arg7[%c306, %c0_2] : memref<326x128xbf16, #tpu.memory_space<vmem>>, vector<20x128xbf16>
    tpu.vector_store %arg7[%c306, %c0_2], %2 {strides = array<i32>} : memref<326x128xbf16, #tpu.memory_space<vmem>>, vector<20x128xbf16>,
    %4 = tpu.iota {dimensions = array<i32: 0>} : vector<18x128xi32>
    %5 = tpu.concatenate %4, %4, %4, %4, %4, %4, %4, %4, %4, %4, %4, %4, %4, %4, %4, %4 in 0 : vector<18x128xi32>, vector<18x128xi32>, vector<18x128xi32>, vector<18x128xi32>, vector<18x128xi32>, vector<18x128xi32>, vector<18x128xi32>, vector<18x128xi32>, vector<18x128xi32>, vector<18x128xi32>, vector<18x128xi32>, vector<18x128xi32>, vector<18x128xi32>, vector<18x128xi32>, vector<18x128xi32>, vector<18x128xi32> -> vector<288x128xi32>
    %c16_i32 = arith.constant 16 : i32
    %6 = vector.broadcast %c16_i32 : i32 to vector<288x128xi32>
    %7 = arith.cmpi slt, %5, %6 : vector<288x128xi32>
    %c0_3 = arith.constant 0 : index
    %c0_4 = arith.constant 0 : index
    %c0_5 = arith.constant 0 : index
    %8 = vector.load %arg1[%c0_3, %c0_4, %c0_5] : memref<1x288x128xf32, #tpu.memory_space<vmem>>, vector<1x288x128xf32>
    %9 = vector.shape_cast %8 : vector<1x288x128xf32> to vector<288x128xf32>
    %10 = arith.truncf %9 : vector<288x128xf32> to vector<288x128xbf16>
    %c19 = arith.constant 19 : index
    %c0_6 = arith.constant 0 : index
    %11 = vector.load %arg7[%c19, %c0_6] : memref<326x128xbf16, #tpu.memory_space<vmem>>, vector<288x128xbf16>
    tpu.vector_store %arg7[%c19, %c0_6], %10 {strides = array<i32>} : memref<326x128xbf16, #tpu.memory_space<vmem>>, vector<288x128xbf16>,
    %c0_7 = arith.constant 0 : index
    %c0_8 = arith.constant 0 : index
    %12 = vector.load %arg7[%c0_7, %c0_8] : memref<326x128xbf16, #tpu.memory_space<vmem>>, vector<288x128xbf16>
    %c0_9 = arith.constant 0 : index
    %c0_10 = arith.constant 0 : index
    %13 = vector.load %arg2[%c0_9, %c0_10] : memref<1152x128xbf16, #tpu.memory_space<vmem>>, vector<128x128xbf16>
    %cst_11 = arith.constant dense<0.000000e+00> : vector<288x128xf32>
    %14 = tpu.matmul %12, %13, %cst_11 {dimension_numbers = #tpu.dot_dimension_numbers<[1], [0], [0], [1], [0, 0, 1, 1], [], []>} : vector<288x128xbf16>, vector<128x128xbf16>, vector<288x128xf32> -> vector<288x128xf32>
    %c0_12 = arith.constant 0 : index
    %c0_13 = arith.constant 0 : index
    %15 = vector.load %arg8[%c0_12, %c0_13] : memref<288x128xf32, #tpu.memory_space<vmem>>, vector<288x128xf32>
    tpu.vector_store %arg8[%c0_12, %c0_13], %14 {strides = array<i32>} : memref<288x128xf32, #tpu.memory_space<vmem>>, vector<288x128xf32>,
    %c1 = arith.constant 1 : index
    %c0_14 = arith.constant 0 : index
    %16 = vector.load %arg7[%c1, %c0_14] : memref<326x128xbf16, #tpu.memory_space<vmem>>, vector<288x128xbf16>
    %c128 = arith.constant 128 : index
    %c0_15 = arith.constant 0 : index
    %17 = vector.load %arg2[%c128, %c0_15] : memref<1152x128xbf16, #tpu.memory_space<vmem>>, vector<128x128xbf16>
    %cst_16 = arith.constant dense<0.000000e+00> : vector<288x128xf32>
    %18 = tpu.matmul %16, %17, %cst_16 {dimension_numbers = #tpu.dot_dimension_numbers<[1], [0], [0], [1], [0, 0, 1, 1], [], []>} : vector<288x128xbf16>, vector<128x128xbf16>, vector<288x128xf32> -> vector<288x128xf32>
    %c0_17 = arith.constant 0 : index
    %c0_18 = arith.constant 0 : index
    %19 = vector.load %arg8[%c0_17, %c0_18] : memref<288x128xf32, #tpu.memory_space<vmem>>, vector<288x128xf32>
    %20 = arith.addf %19, %18 : vector<288x128xf32>
    %c0_19 = arith.constant 0 : index
    %c0_20 = arith.constant 0 : index
    %21 = vector.load %arg8[%c0_19, %c0_20] : memref<288x128xf32, #tpu.memory_space<vmem>>, vector<288x128xf32>
    tpu.vector_store %arg8[%c0_19, %c0_20], %20 {strides = array<i32>} : memref<288x128xf32, #tpu.memory_space<vmem>>, vector<288x128xf32>,
    %c2 = arith.constant 2 : index
    %c0_21 = arith.constant 0 : index
    %22 = vector.load %arg7[%c2, %c0_21] : memref<326x128xbf16, #tpu.memory_space<vmem>>, vector<288x128xbf16>
    %c256 = arith.constant 256 : index
    %c0_22 = arith.constant 0 : index
    %23 = vector.load %arg2[%c256, %c0_22] : memref<1152x128xbf16, #tpu.memory_space<vmem>>, vector<128x128xbf16>
    %cst_23 = arith.constant dense<0.000000e+00> : vector<288x128xf32>
    %24 = tpu.matmul %22, %23, %cst_23 {dimension_numbers = #tpu.dot_dimension_numbers<[1], [0], [0], [1], [0, 0, 1, 1], [], []>} : vector<288x128xbf16>, vector<128x128xbf16>, vector<288x128xf32> -> vector<288x128xf32>
    %c0_24 = arith.constant 0 : index
    %c0_25 = arith.constant 0 : index
    %25 = vector.load %arg8[%c0_24, %c0_25] : memref<288x128xf32, #tpu.memory_space<vmem>>, vector<288x128xf32>
    %26 = arith.addf %25, %24 : vector<288x128xf32>
    %c0_26 = arith.constant 0 : index
    %c0_27 = arith.constant 0 : index
    %27 = vector.load %arg8[%c0_26, %c0_27] : memref<288x128xf32, #tpu.memory_space<vmem>>, vector<288x128xf32>
    tpu.vector_store %arg8[%c0_26, %c0_27], %26 {strides = array<i32>} : memref<288x128xf32, #tpu.memory_space<vmem>>, vector<288x128xf32>,
    %c18 = arith.constant 18 : index
    %c0_28 = arith.constant 0 : index
    %28 = vector.load %arg7[%c18, %c0_28] : memref<326x128xbf16, #tpu.memory_space<vmem>>, vector<288x128xbf16>
    %c384 = arith.constant 384 : index
    %c0_29 = arith.constant 0 : index
    %29 = vector.load %arg2[%c384, %c0_29] : memref<1152x128xbf16, #tpu.memory_space<vmem>>, vector<128x128xbf16>
    %cst_30 = arith.constant dense<0.000000e+00> : vector<288x128xf32>
    %30 = tpu.matmul %28, %29, %cst_30 {dimension_numbers = #tpu.dot_dimension_numbers<[1], [0], [0], [1], [0, 0, 1, 1], [], []>} : vector<288x128xbf16>, vector<128x128xbf16>, vector<288x128xf32> -> vector<288x128xf32>
    %c0_31 = arith.constant 0 : index
    %c0_32 = arith.constant 0 : index
    %31 = vector.load %arg8[%c0_31, %c0_32] : memref<288x128xf32, #tpu.memory_space<vmem>>, vector<288x128xf32>
    %32 = arith.addf %31, %30 : vector<288x128xf32>
    %c0_33 = arith.constant 0 : index
    %c0_34 = arith.constant 0 : index
    %33 = vector.load %arg8[%c0_33, %c0_34] : memref<288x128xf32, #tpu.memory_space<vmem>>, vector<288x128xf32>
    tpu.vector_store %arg8[%c0_33, %c0_34], %32 {strides = array<i32>} : memref<288x128xf32, #tpu.memory_space<vmem>>, vector<288x128xf32>,
    %c19_35 = arith.constant 19 : index
    %c0_36 = arith.constant 0 : index
    %34 = vector.load %arg7[%c19_35, %c0_36] : memref<326x128xbf16, #tpu.memory_space<vmem>>, vector<288x128xbf16>
    %c512 = arith.constant 512 : index
    %c0_37 = arith.constant 0 : index
    %35 = vector.load %arg2[%c512, %c0_37] : memref<1152x128xbf16, #tpu.memory_space<vmem>>, vector<128x128xbf16>
    %cst_38 = arith.constant dense<0.000000e+00> : vector<288x128xf32>
    %36 = tpu.matmul %34, %35, %cst_38 {dimension_numbers = #tpu.dot_dimension_numbers<[1], [0], [0], [1], [0, 0, 1, 1], [], []>} : vector<288x128xbf16>, vector<128x128xbf16>, vector<288x128xf32> -> vector<288x128xf32>
    %c0_39 = arith.constant 0 : index
    %c0_40 = arith.constant 0 : index
    %37 = vector.load %arg8[%c0_39, %c0_40] : memref<288x128xf32, #tpu.memory_space<vmem>>, vector<288x128xf32>
    %38 = arith.addf %37, %36 : vector<288x128xf32>
    %c0_41 = arith.constant 0 : index
    %c0_42 = arith.constant 0 : index
    %39 = vector.load %arg8[%c0_41, %c0_42] : memref<288x128xf32, #tpu.memory_space<vmem>>, vector<288x128xf32>
    tpu.vector_store %arg8[%c0_41, %c0_42], %38 {strides = array<i32>} : memref<288x128xf32, #tpu.memory_space<vmem>>, vector<288x128xf32>,
    %c20 = arith.constant 20 : index
    %c0_43 = arith.constant 0 : index
    %40 = vector.load %arg7[%c20, %c0_43] : memref<326x128xbf16, #tpu.memory_space<vmem>>, vector<288x128xbf16>
    %c640 = arith.constant 640 : index
    %c0_44 = arith.constant 0 : index
    %41 = vector.load %arg2[%c640, %c0_44] : memref<1152x128xbf16, #tpu.memory_space<vmem>>, vector<128x128xbf16>
    %cst_45 = arith.constant dense<0.000000e+00> : vector<288x128xf32>
    %42 = tpu.matmul %40, %41, %cst_45 {dimension_numbers = #tpu.dot_dimension_numbers<[1], [0], [0], [1], [0, 0, 1, 1], [], []>} : vector<288x128xbf16>, vector<128x128xbf16>, vector<288x128xf32> -> vector<288x128xf32>
    %c0_46 = arith.constant 0 : index
    %c0_47 = arith.constant 0 : index
    %43 = vector.load %arg8[%c0_46, %c0_47] : memref<288x128xf32, #tpu.memory_space<vmem>>, vector<288x128xf32>
    %44 = arith.addf %43, %42 : vector<288x128xf32>
    %c0_48 = arith.constant 0 : index
    %c0_49 = arith.constant 0 : index
    %45 = vector.load %arg8[%c0_48, %c0_49] : memref<288x128xf32, #tpu.memory_space<vmem>>, vector<288x128xf32>
    tpu.vector_store %arg8[%c0_48, %c0_49], %44 {strides = array<i32>} : memref<288x128xf32, #tpu.memory_space<vmem>>, vector<288x128xf32>,
    %c36 = arith.constant 36 : index
    %c0_50 = arith.constant 0 : index
    %46 = vector.load %arg7[%c36, %c0_50] : memref<326x128xbf16, #tpu.memory_space<vmem>>, vector<288x128xbf16>
    %c768 = arith.constant 768 : index
    %c0_51 = arith.constant 0 : index
    %47 = vector.load %arg2[%c768, %c0_51] : memref<1152x128xbf16, #tpu.memory_space<vmem>>, vector<128x128xbf16>
    %cst_52 = arith.constant dense<0.000000e+00> : vector<288x128xf32>
    %48 = tpu.matmul %46, %47, %cst_52 {dimension_numbers = #tpu.dot_dimension_numbers<[1], [0], [0], [1], [0, 0, 1, 1], [], []>} : vector<288x128xbf16>, vector<128x128xbf16>, vector<288x128xf32> -> vector<288x128xf32>
    %c0_53 = arith.constant 0 : index
    %c0_54 = arith.constant 0 : index
    %49 = vector.load %arg8[%c0_53, %c0_54] : memref<288x128xf32, #tpu.memory_space<vmem>>, vector<288x128xf32>
    %50 = arith.addf %49, %48 : vector<288x128xf32>
    %c0_55 = arith.constant 0 : index
    %c0_56 = arith.constant 0 : index
    %51 = vector.load %arg8[%c0_55, %c0_56] : memref<288x128xf32, #tpu.memory_space<vmem>>, vector<288x128xf32>
    tpu.vector_store %arg8[%c0_55, %c0_56], %50 {strides = array<i32>} : memref<288x128xf32, #tpu.memory_space<vmem>>, vector<288x128xf32>,
    %c37 = arith.constant 37 : index
    %c0_57 = arith.constant 0 : index
    %52 = vector.load %arg7[%c37, %c0_57] : memref<326x128xbf16, #tpu.memory_space<vmem>>, vector<288x128xbf16>
    %c896 = arith.constant 896 : index
    %c0_58 = arith.constant 0 : index
    %53 = vector.load %arg2[%c896, %c0_58] : memref<1152x128xbf16, #tpu.memory_space<vmem>>, vector<128x128xbf16>
    %cst_59 = arith.constant dense<0.000000e+00> : vector<288x128xf32>
    %54 = tpu.matmul %52, %53, %cst_59 {dimension_numbers = #tpu.dot_dimension_numbers<[1], [0], [0], [1], [0, 0, 1, 1], [], []>} : vector<288x128xbf16>, vector<128x128xbf16>, vector<288x128xf32> -> vector<288x128xf32>
    %c0_60 = arith.constant 0 : index
    %c0_61 = arith.constant 0 : index
    %55 = vector.load %arg8[%c0_60, %c0_61] : memref<288x128xf32, #tpu.memory_space<vmem>>, vector<288x128xf32>
    %56 = arith.addf %55, %54 : vector<288x128xf32>
    %c0_62 = arith.constant 0 : index
    %c0_63 = arith.constant 0 : index
    %57 = vector.load %arg8[%c0_62, %c0_63] : memref<288x128xf32, #tpu.memory_space<vmem>>, vector<288x128xf32>
    tpu.vector_store %arg8[%c0_62, %c0_63], %56 {strides = array<i32>} : memref<288x128xf32, #tpu.memory_space<vmem>>, vector<288x128xf32>,
    %c38 = arith.constant 38 : index
    %c0_64 = arith.constant 0 : index
    %58 = vector.load %arg7[%c38, %c0_64] : memref<326x128xbf16, #tpu.memory_space<vmem>>, vector<288x128xbf16>
    %c1024 = arith.constant 1024 : index
    %c0_65 = arith.constant 0 : index
    %59 = vector.load %arg2[%c1024, %c0_65] : memref<1152x128xbf16, #tpu.memory_space<vmem>>, vector<128x128xbf16>
    %cst_66 = arith.constant dense<0.000000e+00> : vector<288x128xf32>
    %60 = tpu.matmul %58, %59, %cst_66 {dimension_numbers = #tpu.dot_dimension_numbers<[1], [0], [0], [1], [0, 0, 1, 1], [], []>} : vector<288x128xbf16>, vector<128x128xbf16>, vector<288x128xf32> -> vector<288x128xf32>
    %c0_67 = arith.constant 0 : index
    %c0_68 = arith.constant 0 : index
    %61 = vector.load %arg8[%c0_67, %c0_68] : memref<288x128xf32, #tpu.memory_space<vmem>>, vector<288x128xf32>
    %62 = arith.addf %61, %60 : vector<288x128xf32>
    %c0_69 = arith.constant 0 : index
    %c0_70 = arith.constant 0 : index
    %63 = vector.load %arg8[%c0_69, %c0_70] : memref<288x128xf32, #tpu.memory_space<vmem>>, vector<288x128xf32>
    tpu.vector_store %arg8[%c0_69, %c0_70], %62 {strides = array<i32>} : memref<288x128xf32, #tpu.memory_space<vmem>>, vector<288x128xf32>,
    %c0_71 = arith.constant 0 : index
    %c0_72 = arith.constant 0 : index
    %64 = vector.load %arg8[%c0_71, %c0_72] : memref<288x128xf32, #tpu.memory_space<vmem>>, vector<288x128xf32>
    %c0_73 = arith.constant 0 : index
    %c0_74 = arith.constant 0 : index
    %65 = vector.load %arg4[%c0_73, %c0_74] : memref<1x128xf32, #tpu.memory_space<vmem>>, vector<1x128xf32>
    %66 = vector.broadcast %65 : vector<1x128xf32> to vector<288x128xf32>
    %67 = arith.addf %64, %66 : vector<288x128xf32>
    %cst_75 = arith.constant 0.000000e+00 : f32
    %68 = vector.broadcast %cst_75 : f32 to vector<288x128xf32>
    %69 = arith.maximumf %67, %68 : vector<288x128xf32>
    %cst_76 = arith.constant 0.000000e+00 : f32
    %70 = vector.broadcast %cst_76 : f32 to vector<288x128xf32>
    %71 = arith.select %7, %69, %70 : vector<288x128xi1>, vector<288x128xf32>
    %72 = arith.truncf %71 : vector<288x128xf32> to vector<288x128xbf16>
    %c19_77 = arith.constant 19 : index
    %c0_78 = arith.constant 0 : index
    %73 = vector.load %arg7[%c19_77, %c0_78] : memref<326x128xbf16, #tpu.memory_space<vmem>>, vector<288x128xbf16>
    tpu.vector_store %arg7[%c19_77, %c0_78], %72 {strides = array<i32>} : memref<326x128xbf16, #tpu.memory_space<vmem>>, vector<288x128xbf16>,
    %c0_79 = arith.constant 0 : index
    %c0_80 = arith.constant 0 : index
    %74 = vector.load %arg7[%c0_79, %c0_80] : memref<326x128xbf16, #tpu.memory_space<vmem>>, vector<288x128xbf16>
    %c0_81 = arith.constant 0 : index
    %c0_82 = arith.constant 0 : index
    %75 = vector.load %arg3[%c0_81, %c0_82] : memref<1152x128xbf16, #tpu.memory_space<vmem>>, vector<128x128xbf16>
    %cst_83 = arith.constant dense<0.000000e+00> : vector<288x128xf32>
    %76 = tpu.matmul %74, %75, %cst_83 {dimension_numbers = #tpu.dot_dimension_numbers<[1], [0], [0], [1], [0, 0, 1, 1], [], []>} : vector<288x128xbf16>, vector<128x128xbf16>, vector<288x128xf32> -> vector<288x128xf32>
    %c0_84 = arith.constant 0 : index
    %c0_85 = arith.constant 0 : index
    %77 = vector.load %arg8[%c0_84, %c0_85] : memref<288x128xf32, #tpu.memory_space<vmem>>, vector<288x128xf32>
    tpu.vector_store %arg8[%c0_84, %c0_85], %76 {strides = array<i32>} : memref<288x128xf32, #tpu.memory_space<vmem>>, vector<288x128xf32>,
    %c1_86 = arith.constant 1 : index
    %c0_87 = arith.constant 0 : index
    %78 = vector.load %arg7[%c1_86, %c0_87] : memref<326x128xbf16, #tpu.memory_space<vmem>>, vector<288x128xbf16>
    %c128_88 = arith.constant 128 : index
    %c0_89 = arith.constant 0 : index
    %79 = vector.load %arg3[%c128_88, %c0_89] : memref<1152x128xbf16, #tpu.memory_space<vmem>>, vector<128x128xbf16>
    %cst_90 = arith.constant dense<0.000000e+00> : vector<288x128xf32>
    %80 = tpu.matmul %78, %79, %cst_90 {dimension_numbers = #tpu.dot_dimension_numbers<[1], [0], [0], [1], [0, 0, 1, 1], [], []>} : vector<288x128xbf16>, vector<128x128xbf16>, vector<288x128xf32> -> vector<288x128xf32>
    %c0_91 = arith.constant 0 : index
    %c0_92 = arith.constant 0 : index
    %81 = vector.load %arg8[%c0_91, %c0_92] : memref<288x128xf32, #tpu.memory_space<vmem>>, vector<288x128xf32>
    %82 = arith.addf %81, %80 : vector<288x128xf32>
    %c0_93 = arith.constant 0 : index
    %c0_94 = arith.constant 0 : index
    %83 = vector.load %arg8[%c0_93, %c0_94] : memref<288x128xf32, #tpu.memory_space<vmem>>, vector<288x128xf32>
    tpu.vector_store %arg8[%c0_93, %c0_94], %82 {strides = array<i32>} : memref<288x128xf32, #tpu.memory_space<vmem>>, vector<288x128xf32>,
    %c2_95 = arith.constant 2 : index
    %c0_96 = arith.constant 0 : index
    %84 = vector.load %arg7[%c2_95, %c0_96] : memref<326x128xbf16, #tpu.memory_space<vmem>>, vector<288x128xbf16>
    %c256_97 = arith.constant 256 : index
    %c0_98 = arith.constant 0 : index
    %85 = vector.load %arg3[%c256_97, %c0_98] : memref<1152x128xbf16, #tpu.memory_space<vmem>>, vector<128x128xbf16>
    %cst_99 = arith.constant dense<0.000000e+00> : vector<288x128xf32>
    %86 = tpu.matmul %84, %85, %cst_99 {dimension_numbers = #tpu.dot_dimension_numbers<[1], [0], [0], [1], [0, 0, 1, 1], [], []>} : vector<288x128xbf16>, vector<128x128xbf16>, vector<288x128xf32> -> vector<288x128xf32>
    %c0_100 = arith.constant 0 : index
    %c0_101 = arith.constant 0 : index
    %87 = vector.load %arg8[%c0_100, %c0_101] : memref<288x128xf32, #tpu.memory_space<vmem>>, vector<288x128xf32>
    %88 = arith.addf %87, %86 : vector<288x128xf32>
    %c0_102 = arith.constant 0 : index
    %c0_103 = arith.constant 0 : index
    %89 = vector.load %arg8[%c0_102, %c0_103] : memref<288x128xf32, #tpu.memory_space<vmem>>, vector<288x128xf32>
    tpu.vector_store %arg8[%c0_102, %c0_103], %88 {strides = array<i32>} : memref<288x128xf32, #tpu.memory_space<vmem>>, vector<288x128xf32>,
    %c18_104 = arith.constant 18 : index
    %c0_105 = arith.constant 0 : index
    %90 = vector.load %arg7[%c18_104, %c0_105] : memref<326x128xbf16, #tpu.memory_space<vmem>>, vector<288x128xbf16>
    %c384_106 = arith.constant 384 : index
    %c0_107 = arith.constant 0 : index
    %91 = vector.load %arg3[%c384_106, %c0_107] : memref<1152x128xbf16, #tpu.memory_space<vmem>>, vector<128x128xbf16>
    %cst_108 = arith.constant dense<0.000000e+00> : vector<288x128xf32>
    %92 = tpu.matmul %90, %91, %cst_108 {dimension_numbers = #tpu.dot_dimension_numbers<[1], [0], [0], [1], [0, 0, 1, 1], [], []>} : vector<288x128xbf16>, vector<128x128xbf16>, vector<288x128xf32> -> vector<288x128xf32>
    %c0_109 = arith.constant 0 : index
    %c0_110 = arith.constant 0 : index
    %93 = vector.load %arg8[%c0_109, %c0_110] : memref<288x128xf32, #tpu.memory_space<vmem>>, vector<288x128xf32>
    %94 = arith.addf %93, %92 : vector<288x128xf32>
    %c0_111 = arith.constant 0 : index
    %c0_112 = arith.constant 0 : index
    %95 = vector.load %arg8[%c0_111, %c0_112] : memref<288x128xf32, #tpu.memory_space<vmem>>, vector<288x128xf32>
    tpu.vector_store %arg8[%c0_111, %c0_112], %94 {strides = array<i32>} : memref<288x128xf32, #tpu.memory_space<vmem>>, vector<288x128xf32>,
    %c19_113 = arith.constant 19 : index
    %c0_114 = arith.constant 0 : index
    %96 = vector.load %arg7[%c19_113, %c0_114] : memref<326x128xbf16, #tpu.memory_space<vmem>>, vector<288x128xbf16>
    %c512_115 = arith.constant 512 : index
    %c0_116 = arith.constant 0 : index
    %97 = vector.load %arg3[%c512_115, %c0_116] : memref<1152x128xbf16, #tpu.memory_space<vmem>>, vector<128x128xbf16>
    %cst_117 = arith.constant dense<0.000000e+00> : vector<288x128xf32>
    %98 = tpu.matmul %96, %97, %cst_117 {dimension_numbers = #tpu.dot_dimension_numbers<[1], [0], [0], [1], [0, 0, 1, 1], [], []>} : vector<288x128xbf16>, vector<128x128xbf16>, vector<288x128xf32> -> vector<288x128xf32>
    %c0_118 = arith.constant 0 : index
    %c0_119 = arith.constant 0 : index
    %99 = vector.load %arg8[%c0_118, %c0_119] : memref<288x128xf32, #tpu.memory_space<vmem>>, vector<288x128xf32>
    %100 = arith.addf %99, %98 : vector<288x128xf32>
    %c0_120 = arith.constant 0 : index
    %c0_121 = arith.constant 0 : index
    %101 = vector.load %arg8[%c0_120, %c0_121] : memref<288x128xf32, #tpu.memory_space<vmem>>, vector<288x128xf32>
    tpu.vector_store %arg8[%c0_120, %c0_121], %100 {strides = array<i32>} : memref<288x128xf32, #tpu.memory_space<vmem>>, vector<288x128xf32>,
    %c20_122 = arith.constant 20 : index
    %c0_123 = arith.constant 0 : index
    %102 = vector.load %arg7[%c20_122, %c0_123] : memref<326x128xbf16, #tpu.memory_space<vmem>>, vector<288x128xbf16>
    %c640_124 = arith.constant 640 : index
    %c0_125 = arith.constant 0 : index
    %103 = vector.load %arg3[%c640_124, %c0_125] : memref<1152x128xbf16, #tpu.memory_space<vmem>>, vector<128x128xbf16>
    %cst_126 = arith.constant dense<0.000000e+00> : vector<288x128xf32>
    %104 = tpu.matmul %102, %103, %cst_126 {dimension_numbers = #tpu.dot_dimension_numbers<[1], [0], [0], [1], [0, 0, 1, 1], [], []>} : vector<288x128xbf16>, vector<128x128xbf16>, vector<288x128xf32> -> vector<288x128xf32>
    %c0_127 = arith.constant 0 : index
    %c0_128 = arith.constant 0 : index
    %105 = vector.load %arg8[%c0_127, %c0_128] : memref<288x128xf32, #tpu.memory_space<vmem>>, vector<288x128xf32>
    %106 = arith.addf %105, %104 : vector<288x128xf32>
    %c0_129 = arith.constant 0 : index
    %c0_130 = arith.constant 0 : index
    %107 = vector.load %arg8[%c0_129, %c0_130] : memref<288x128xf32, #tpu.memory_space<vmem>>, vector<288x128xf32>
    tpu.vector_store %arg8[%c0_129, %c0_130], %106 {strides = array<i32>} : memref<288x128xf32, #tpu.memory_space<vmem>>, vector<288x128xf32>,
    %c36_131 = arith.constant 36 : index
    %c0_132 = arith.constant 0 : index
    %108 = vector.load %arg7[%c36_131, %c0_132] : memref<326x128xbf16, #tpu.memory_space<vmem>>, vector<288x128xbf16>
    %c768_133 = arith.constant 768 : index
    %c0_134 = arith.constant 0 : index
    %109 = vector.load %arg3[%c768_133, %c0_134] : memref<1152x128xbf16, #tpu.memory_space<vmem>>, vector<128x128xbf16>
    %cst_135 = arith.constant dense<0.000000e+00> : vector<288x128xf32>
    %110 = tpu.matmul %108, %109, %cst_135 {dimension_numbers = #tpu.dot_dimension_numbers<[1], [0], [0], [1], [0, 0, 1, 1], [], []>} : vector<288x128xbf16>, vector<128x128xbf16>, vector<288x128xf32> -> vector<288x128xf32>
    %c0_136 = arith.constant 0 : index
    %c0_137 = arith.constant 0 : index
    %111 = vector.load %arg8[%c0_136, %c0_137] : memref<288x128xf32, #tpu.memory_space<vmem>>, vector<288x128xf32>
    %112 = arith.addf %111, %110 : vector<288x128xf32>
    %c0_138 = arith.constant 0 : index
    %c0_139 = arith.constant 0 : index
    %113 = vector.load %arg8[%c0_138, %c0_139] : memref<288x128xf32, #tpu.memory_space<vmem>>, vector<288x128xf32>
    tpu.vector_store %arg8[%c0_138, %c0_139], %112 {strides = array<i32>} : memref<288x128xf32, #tpu.memory_space<vmem>>, vector<288x128xf32>,
    %c37_140 = arith.constant 37 : index
    %c0_141 = arith.constant 0 : index
    %114 = vector.load %arg7[%c37_140, %c0_141] : memref<326x128xbf16, #tpu.memory_space<vmem>>, vector<288x128xbf16>
    %c896_142 = arith.constant 896 : index
    %c0_143 = arith.constant 0 : index
    %115 = vector.load %arg3[%c896_142, %c0_143] : memref<1152x128xbf16, #tpu.memory_space<vmem>>, vector<128x128xbf16>
    %cst_144 = arith.constant dense<0.000000e+00> : vector<288x128xf32>
    %116 = tpu.matmul %114, %115, %cst_144 {dimension_numbers = #tpu.dot_dimension_numbers<[1], [0], [0], [1], [0, 0, 1, 1], [], []>} : vector<288x128xbf16>, vector<128x128xbf16>, vector<288x128xf32> -> vector<288x128xf32>
    %c0_145 = arith.constant 0 : index
    %c0_146 = arith.constant 0 : index
    %117 = vector.load %arg8[%c0_145, %c0_146] : memref<288x128xf32, #tpu.memory_space<vmem>>, vector<288x128xf32>
    %118 = arith.addf %117, %116 : vector<288x128xf32>
    %c0_147 = arith.constant 0 : index
    %c0_148 = arith.constant 0 : index
    %119 = vector.load %arg8[%c0_147, %c0_148] : memref<288x128xf32, #tpu.memory_space<vmem>>, vector<288x128xf32>
    tpu.vector_store %arg8[%c0_147, %c0_148], %118 {strides = array<i32>} : memref<288x128xf32, #tpu.memory_space<vmem>>, vector<288x128xf32>,
    %c38_149 = arith.constant 38 : index
    %c0_150 = arith.constant 0 : index
    %120 = vector.load %arg7[%c38_149, %c0_150] : memref<326x128xbf16, #tpu.memory_space<vmem>>, vector<288x128xbf16>
    %c1024_151 = arith.constant 1024 : index
    %c0_152 = arith.constant 0 : index
    %121 = vector.load %arg3[%c1024_151, %c0_152] : memref<1152x128xbf16, #tpu.memory_space<vmem>>, vector<128x128xbf16>
    %cst_153 = arith.constant dense<0.000000e+00> : vector<288x128xf32>
    %122 = tpu.matmul %120, %121, %cst_153 {dimension_numbers = #tpu.dot_dimension_numbers<[1], [0], [0], [1], [0, 0, 1, 1], [], []>} : vector<288x128xbf16>, vector<128x128xbf16>, vector<288x128xf32> -> vector<288x128xf32>
    %c0_154 = arith.constant 0 : index
    %c0_155 = arith.constant 0 : index
    %123 = vector.load %arg8[%c0_154, %c0_155] : memref<288x128xf32, #tpu.memory_space<vmem>>, vector<288x128xf32>
    %124 = arith.addf %123, %122 : vector<288x128xf32>
    %c0_156 = arith.constant 0 : index
    %c0_157 = arith.constant 0 : index
    %125 = vector.load %arg8[%c0_156, %c0_157] : memref<288x128xf32, #tpu.memory_space<vmem>>, vector<288x128xf32>
    tpu.vector_store %arg8[%c0_156, %c0_157], %124 {strides = array<i32>} : memref<288x128xf32, #tpu.memory_space<vmem>>, vector<288x128xf32>,
    %c0_158 = arith.constant 0 : index
    %c0_159 = arith.constant 0 : index
    %126 = vector.load %arg8[%c0_158, %c0_159] : memref<288x128xf32, #tpu.memory_space<vmem>>, vector<288x128xf32>
    %c0_160 = arith.constant 0 : index
    %c0_161 = arith.constant 0 : index
    %127 = vector.load %arg5[%c0_160, %c0_161] : memref<1x128xf32, #tpu.memory_space<vmem>>, vector<1x128xf32>
    %128 = vector.broadcast %127 : vector<1x128xf32> to vector<288x128xf32>
    %129 = arith.addf %126, %128 : vector<288x128xf32>
    %c0_162 = arith.constant 0 : index
    %c0_163 = arith.constant 0 : index
    %c0_164 = arith.constant 0 : index
    %130 = vector.load %arg1[%c0_162, %c0_163, %c0_164] : memref<1x288x128xf32, #tpu.memory_space<vmem>>, vector<1x288x128xf32>
    %131 = vector.shape_cast %130 : vector<1x288x128xf32> to vector<288x128xf32>
    %132 = arith.addf %129, %131 : vector<288x128xf32>
    %cst_165 = arith.constant 0.000000e+00 : f32
    %133 = vector.broadcast %cst_165 : f32 to vector<288x128xf32>
    %134 = arith.maximumf %132, %133 : vector<288x128xf32>
    %c0_166 = arith.constant 0 : index
    %c0_167 = arith.constant 0 : index
    %c0_168 = arith.constant 0 : index
    %135 = vector.load %arg6[%c0_166, %c0_167, %c0_168] : memref<1x288x128xf32, #tpu.memory_space<vmem>>, vector<1x288x128xf32>
    %136 = vector.shape_cast %135 : vector<1x288x128xf32> to vector<288x128xf32>
    %137 = vector.shape_cast %134 : vector<288x128xf32> to vector<1x288x128xf32>
    tpu.vector_store %arg6[%c0_166, %c0_167, %c0_168], %137 {strides = array<i32>} : memref<1x288x128xf32, #tpu.memory_space<vmem>>, vector<1x288x128xf32>,
    return
  }
  func.func @transform_0(%arg0: i32) -> (i32, i32, i32) {
    %c0_i32 = arith.constant 0 : i32
    %c0_i32_0 = arith.constant 0 : i32
    %c0_i32_1 = arith.constant 0 : i32
    return %arg0, %c0_i32, %c0_i32_0 : i32, i32, i32
  }
  func.func @transform_1(%arg0: i32) -> (i32, i32) {
    %c0_i32 = arith.constant 0 : i32
    %c0_i32_0 = arith.constant 0 : i32
    %c0_i32_1 = arith.constant 0 : i32
    return %c0_i32, %c0_i32_0 : i32, i32
  }
  func.func @transform_2(%arg0: i32) -> (i32, i32) {
    %c0_i32 = arith.constant 0 : i32
    %c0_i32_0 = arith.constant 0 : i32
    %c0_i32_1 = arith.constant 0 : i32
    return %c0_i32, %c0_i32_0 : i32, i32
  }
  func.func @transform_3(%arg0: i32) -> (i32, i32) {
    %c0_i32 = arith.constant 0 : i32
    %c0_i32_0 = arith.constant 0 : i32
    %c0_i32_1 = arith.constant 0 : i32
    return %c0_i32, %c0_i32_0 : i32, i32
  }
  func.func @transform_4(%arg0: i32) -> (i32, i32) {
    %c0_i32 = arith.constant 0 : i32
    %c0_i32_0 = arith.constant 0 : i32
    %c0_i32_1 = arith.constant 0 : i32
    return %c0_i32, %c0_i32_0 : i32, i32
  }
  func.func @transform_5(%arg0: i32) -> (i32, i32, i32) {
    %c0_i32 = arith.constant 0 : i32
    %c0_i32_0 = arith.constant 0 : i32
    %c0_i32_1 = arith.constant 0 : i32
    return %arg0, %c0_i32, %c0_i32_0 : i32, i32, i32
  }
}

</mosaic_0001>

<bundles_post_ra>
// kernel: basic_block_forward.1
= control target key start
LH: loop header
LB: loop body
LE: loop exit
PB: predicated region body
PF: predicated region fallthrough
CT: control target
= control target key end

     0   :  { %s15130_s18 = smov 0   ;;  %s16446_s0 = inlined_call_operand.vmem [shape: f32[2,288,128], index: 0, kind: input, shape index: {}]   ;;  %s16447_s1 = inlined_call_operand.vmem [shape: bf16[1152,128], index: 1, kind: input, shape index: {}]   ;;  %s16448_s2 = inlined_call_operand.vmem [shape: bf16[1152,128], index: 2, kind: input, shape index: {}]   ;;  %s16449_s3 = inlined_call_operand.vmem [shape: f32[1,128], index: 3, kind: input, shape index: {}]   ;;  %s16450_s4 = inlined_call_operand.vmem [shape: f32[1,128], index: 4, kind: input, shape index: {}]   ;;  %s16451_s5 = inlined_call_operand.vmem [shape: f32[2,288,128], index: 5, kind: output, shape index: {}]  }
   0x1 LB: > { %s11977_s19 = sadd.s32 4294967295, %s15097_s18   ;;  %p11981_p0 = scmp.ge.s32.totalorder %s15097_s18, 1  ;;  %s15097_s18 = sphi %s15130_s18, %s15_s18  }
   0x2   : > { %p187_p1 = scmp.lt.s32.totalorder %s15097_s18, 3 }
   0x4   : > { %p188_p2 = pnand %p11981_p0, %p187_p1 }
   0x5   : > { %v14606_v0 = vld [vmem:[%s16447_s1] sm:$0xff] (!%p188_p2)   ;;  %v14607_v1 = vld [vmem:[%s16447_s1 + $0x8] sm:$0xff] (!%p188_p2)   ;;  %v15099_v2 = vmov (!%p188_p2), 0   ;;  %p215_p3 = scmp.lt.s32.totalorder (!%p188_p2), %s11977_s19, 1  ;;  %v14608_v3 = vld [vmem:[%s16447_s1 + $0x10] sm:$0xff] (!%p188_p2)   ;;  %vm228_vm0 = vcmask (!%p188_p2), 1041408  }
   0x6   : > { %191 = sbr.rel (%p188_p2) target bundleno = 1741 (0x6cd), region = 40  ;;  %226 = vst [vmem:[#allocation2] sm:$0xf] (!%p188_p2), %v15099_v2  ;;  %227 = vst [vmem:[#allocation2 + $0x4] sm:$0xf] (!%p188_p2), %v15099_v2  ;;  %13084 = vmatprep.subr.bf16.mxu0 (!%p188_p2), %v14606_v0  ;;  %v14609_v4 = vld [vmem:[%s16447_s1 + $0x18] sm:$0xff] (!%p188_p2)  }
   0x7   : > { %234 = vst [vmem:[#allocation2 + $0x98] sm:$0xe] (!%p188_p2), %v15099_v2  ;;  %235 = vst [vmem:[#allocation2 + $0x9c] sm:$0xf] (!%p188_p2), %v15099_v2  ;;  %13085 = vmatpush3.bf16.msra.mxu0 (!%p188_p2), %v14606_v0  ;;  %vm229_vm1 = vsmask.f32 (!%p188_p2), 1280 }
   0x8   : > { %236 = vst [vmem:[#allocation2 + $0xa0] sm:$0x7] (!%p188_p2), %v15099_v2  ;;  %13086 = vmatprep.subr.bf16.mxu0 (!%p188_p2), %v14607_v1  ;;  %v231_v6 = vld [vmem:[#allocation2 + $0x8] sm:$0x3] (!%p188_p2)  ;;  %v14610_v9 = vld [vmem:[%s16447_s1 + $0x20] sm:$0xff] (!%p188_p2)   ;;  %vm15167_vm2 = vmand (!%p188_p2), %vm228_vm0, %vm229_vm1  ;;  %vm813_vm4 = vcmask (!%p188_p2), 1043457  }
   0x9   : > { %v232_v13 = vsel (!%p188_p2), %vm15167_vm2, 0, %v231_v6  ;;  %vm415_vm3 = vsmask.f32 (!%p188_p2), 5392  ;;  %vm814_vm5 = vsmask.f32 (!%p188_p2), 7942  ;;  %v14611_v32 = vld [vmem:[%s16447_s1 + $0x28] sm:$0xff] (!%p188_p2)  }
   0xa   : > { %233 = vst [vmem:[#allocation2 + $0x8] sm:$0x3] (!%p188_p2), %v232_v13  ;;  %vm15182_vm6 = vmor (!%p188_p2), %vm229_vm1, %vm415_vm3  ;;  %v14612_v43 = vld [vmem:[%s16447_s1 + $0x30] sm:$0xff] (!%p188_p2)   ;;  %vm1424_vm8 = vsmask.f32 (!%p188_p2), 7424  ;;  %vm2070_vm9 = vcmask (!%p188_p2), 1046528  }
   0xb   : > { %13087 = vmatpush3.bf16.msra.mxu0 (!%p188_p2), %v14607_v1  ;;  %vm15188_vm7 = vmand (!%p188_p2), %vm813_vm4, %vm814_vm5  ;;  %vm3139_vm10 = vsmask.f32 (!%p188_p2), 6400  ;;  %vm253_vm11 = vcmask (!%p188_p2), 1045504   ;;  %vm4876_vm12 = vsmask.f32 (!%p188_p2), 5376  ;;  %vm5544_vm13 = vcmask (!%p188_p2), 1044480  }
   0xc   : > { %13088 = vmatprep.subr.bf16.mxu0 (!%p188_p2), %v14608_v3  ;;  %vm247_vm14 = vcmask (!%p188_p2), 1043456  }
   0xd   : > { %s16459_s19 = smov (!%p215_p3, %s11977_s19), 1  ;;  %v14614_v5 = vld [vmem:[#allocation2] sm:$0xff]  }
   0xe   : > { %s14596_s26 = smul.u32 288, %s16459_s19  ;;  %13100 = vmatprep.mubr.bf16.mxu0 %v14614_v5 }
   0xf   : > { %13089 = vmatpush3.bf16.msra.mxu0 %v14608_v3 }
  0x10   : > { %s15158_s6 = scalar_lea.vmem %s16446_s0, %s14596_s26  ;;  %13090 = vmatprep.subr.bf16.mxu0 %v14609_v4  ;;  %s16340_s24 = scalar_lea.vmem %s16451_s5, %s14596_s26 }
  0x11   : > { %v271_v7 = vld [vmem:[%s15158_s6] sm:$0xff]  ;;  %v272_v8 = vld [vmem:[%s15158_s6 + $0x8] sm:$0xff]  ;;  %v273_v18 = vld [vmem:[%s15158_s6 + $0x10] sm:$0xff] }
  0x12   : > { %v12544_v11 = vpack.c.bf16 %v271_v7, %v271_v7  ;;  %v12545_v12 = vpack.c.bf16 %v272_v8, %v272_v8  ;;  %v274_v19 = vld [vmem:[%s15158_s6 + $0x18] sm:$0xff]  ;;  %v12546_v20 = vpack.c.bf16 %v273_v18, %v273_v18  ;;  %v275_v22 = vld [vmem:[%s15158_s6 + $0x20] sm:$0xff]  ;;  %v276_v23 = vld [vmem:[%s15158_s6 + $0x28] sm:$0xff] }
  0x13   : > { %v12547_v21 = vpack.c.bf16 %v274_v19, %v274_v19  ;;  %13091 = vmatpush3.bf16.msra.mxu0 %v14609_v4  ;;  %v12548_v36 = vpack.c.bf16 %v275_v22, %v275_v22  ;;  %v12549_v37 = vpack.c.bf16 %v276_v23, %v276_v23  ;;  %v816_v48 = vld [vmem:[#allocation2 + $0x8] sm:$0xe]  ;;  %v277_v53 = vld [vmem:[%s15158_s6 + $0x30] sm:$0xff]  ;;  %v278_v54 = vld [vmem:[%s15158_s6 + $0x38] sm:$0xff] }
  0x14   : > { %v418_v14 = vshrl.u32 %v12544_v11, 16  ;;  %v421_v15 = vshll.u32 %v12544_v11, 16  ;;  %v427_v16 = vshrl.u32 %v12545_v12, 16  ;;  %v430_v17 = vshll.u32 %v12545_v12, 16  ;;  %13092 = vmatprep.subr.bf16.mxu0 %v14610_v9  ;;  %v279_v59 = vld [vmem:[%s15158_s6 + $0x40] sm:$0xff]  ;;  %v280_v60 = vld [vmem:[%s15158_s6 + $0x48] sm:$0xff] }
  0x15   : > { %v437_v28 = vshrl.u32 %v12546_v20, 16  ;;  %v440_v29 = vshll.u32 %v12546_v20, 16  ;;  %v447_v30 = vshrl.u32 %v12547_v21, 16  ;;  %v450_v31 = vshll.u32 %v12547_v21, 16  ;;  %v281_v61 = vld [vmem:[%s15158_s6 + $0x50] sm:$0xff]  ;;  %v14613_v11 = vld [vmem:[%s16447_s1 + $0x38] sm:$0xff]  }
  0x16   : > { %v420_v24 = vrot.slane %v418_v14, 6  ;;  %v423_v25 = vrot.slane %v421_v15, 7  ;;  %v429_v26 = vrot.slane %v427_v16, 6  ;;  %v432_v27 = vrot.slane %v430_v17, 7  ;;  %v282_v16 = vld [vmem:[%s15158_s6 + $0x58] sm:$0xff]  ;;  %v283_v21 = vld [vmem:[%s15158_s6 + $0x60] sm:$0xff] }
  0x17   : > { %v439_v39 = vrot.slane %v437_v28, 6  ;;  %v442_v40 = vrot.slane %v440_v29, 7  ;;  %v449_v41 = vrot.slane %v447_v30, 6  ;;  %v452_v42 = vrot.slane %v450_v31, 7  ;;  %13093 = vmatpush3.bf16.msra.mxu0 %v14610_v9  ;;  %v284_v22 = vld [vmem:[%s15158_s6 + $0x68] sm:$0xff]  ;;  %v14616_v31 = vld [vmem:[%s16447_s1 + $0x40] sm:$0xff]  }
  0x18   : > { %v424_v34 = vor.u32 %v423_v25, %v420_v24  ;;  %v433_v35 = vor.u32 %v432_v27, %v429_v26  ;;  %v457_v46 = vshrl.u32 %v12548_v36, 16  ;;  %v460_v47 = vshll.u32 %v12548_v36, 16  ;;  %13094 = vmatprep.subr.bf16.mxu0 %v14611_v32 }
  0x19   : > { %v443_v49 = vor.u32 %v442_v40, %v439_v39  ;;  %v453_v50 = vor.u32 %v452_v42, %v449_v41  ;;  %v467_v51 = vshrl.u32 %v12549_v37, 16  ;;  %v470_v52 = vshll.u32 %v12549_v37, 16 }
  0x1a   : > { %v425_v44 = vrot.slane %v424_v34, 4  ;;  %v435_v45 = vrot.slane %v433_v35, 4  ;;  %v817_v56 = vsel %vm15188_vm7, %v424_v34, %v816_v48  ;;  %v459_v57 = vrot.slane %v457_v46, 6  ;;  %v285_v48 = vld [vmem:[%s15158_s6 + $0x70] sm:$0xff] }
  0x1b   : > { %v462_v58 = vrot.slane %v460_v47, 7  ;;  %818 = vst [vmem:[#allocation2 + $0x8] sm:$0xe] %v817_v56  ;;  %v445_v63 = vrot.slane %v443_v49, 4  ;;  %v455_v0 = vrot.slane %v453_v50, 4  ;;  %v469_v1 = vrot.slane %v467_v51, 6  ;;  %13095 = vmatpush3.bf16.msra.mxu0 %v14611_v32 }
  0x1c   : > { %v434_v55 = vsel %vm15182_vm6, %v425_v44, %v433_v35  ;;  %v444_v62 = vsel %vm15182_vm6, %v435_v45, %v443_v49  ;;  %v472_v3 = vrot.slane %v470_v52, 7  ;;  %v12550_v4 = vpack.c.bf16 %v277_v53, %v277_v53  ;;  %13096 = vmatprep.subr.bf16.mxu0 %v14612_v43 }
  0x1d   : > { %819 = vst [vmem:[#allocation2 + $0xc] sm:$0xf] %v434_v55  ;;  %820 = vst [vmem:[#allocation2 + $0x10] sm:$0xf] %v444_v62  ;;  %v463_v2 = vor.u32 %v462_v58, %v459_v57  ;;  %v12551_v5 = vpack.c.bf16 %v278_v54, %v278_v54  ;;  %v454_v6 = vsel %vm15182_vm6, %v445_v63, %v453_v50 }
  0x1e   : > { %v12552_v7 = vpack.c.bf16 %v279_v59, %v279_v59  ;;  %v12553_v8 = vpack.c.bf16 %v280_v60, %v280_v60  ;;  %v12554_v9 = vpack.c.bf16 %v281_v61, %v281_v61  ;;  %821 = vst [vmem:[#allocation2 + $0x14] sm:$0xf] %v454_v6  ;;  %v473_v14 = vor.u32 %v472_v3, %v469_v1 }
  0x1f   : > { %v464_v12 = vsel %vm15182_vm6, %v455_v0, %v463_v2  ;;  %v465_v13 = vrot.slane %v463_v2, 4  ;;  %v477_v15 = vshrl.u32 %v12550_v4, 16  ;;  %v480_v17 = vshll.u32 %v12550_v4, 16  ;;  %13097 = vmatpush3.bf16.msra.mxu0 %v14612_v43  ;;  %v14619_v43 = vld [vmem:[%s16447_s1 + $0x48] sm:$0xff]  }
  0x20   : > { %822 = vst [vmem:[#allocation2 + $0x18] sm:$0xf] %v464_v12  ;;  %v487_v18 = vshrl.u32 %v12551_v5, 16  ;;  %v490_v19 = vshll.u32 %v12551_v5, 16  ;;  %v497_v20 = vshrl.u32 %v12552_v7, 16  ;;  %v475_v24 = vrot.slane %v473_v14, 4  ;;  %13098 = vmatprep.subr.bf16.mxu0 %v14613_v11 }
  0x21   : > { %v474_v23 = vsel %vm15182_vm6, %v465_v13, %v473_v14  ;;  %v479_v25 = vrot.slane %v477_v15, 6  ;;  %v500_v26 = vshll.u32 %v12552_v7, 16  ;;  %v482_v27 = vrot.slane %v480_v17, 7  ;;  %v286_v5 = vld [vmem:[%s15158_s6 + $0x78] sm:$0xff]  ;;  %v287_v17 = vld [vmem:[%s15158_s6 + $0x80] sm:$0xff] }
  0x22   : > { %823 = vst [vmem:[#allocation2 + $0x1c] sm:$0xf] %v474_v23  ;;  %v489_v28 = vrot.slane %v487_v18, 6  ;;  %v492_v29 = vrot.slane %v490_v19, 7  ;;  %v499_v30 = vrot.slane %v497_v20, 6  ;;  %v12555_v34 = vpack.c.bf16 %v282_v16, %v282_v16  ;;  %v288_v23 = vld [vmem:[%s15158_s6 + $0x88] sm:$0xff] }
  0x23   : > { %v502_v32 = vrot.slane %v500_v26, 7  ;;  %v12556_v35 = vpack.c.bf16 %v283_v21, %v283_v21  ;;  %v12557_v36 = vpack.c.bf16 %v284_v22, %v284_v22  ;;  %v483_v37 = vor.u32 %v482_v27, %v479_v25  ;;  %13099 = vmatpush3.bf16.msra.mxu0 %v14613_v11 }
  0x24   : > { %v493_v39 = vor.u32 %v492_v29, %v489_v28  ;;  %v507_v40 = vshrl.u32 %v12553_v8, 16  ;;  %v510_v41 = vshll.u32 %v12553_v8, 16  ;;  %v14615_v42 = vld [vmem:[#allocation2 + $0x8] sm:$0xff]   ;;  %v517_v45 = vshrl.u32 %v12554_v9, 16  ;;  %13136 = vmatprep.subr.bf16.mxu0 %v14616_v31  ;;  %v14622_v8 = vld [vmem:[%s16447_s1 + $0x50] sm:$0xff]   ;;  %v14625_v28 = vld [vmem:[%s16447_s1 + $0x58] sm:$0xff]  }
  0x25   : > { %v503_v44 = vor.u32 %v502_v32, %v499_v30  ;;  %v520_v46 = vshll.u32 %v12554_v9, 16  ;;  %v527_v47 = vshrl.u32 %v12555_v34, 16  ;;  %v14617_v49 = vld [vmem:[#allocation2 + $0x10] sm:$0xff]   ;;  %v484_v50 = vsel %vm15182_vm6, %v475_v24, %v483_v37 }
  0x26   : > { %v485_v51 = vrot.slane %v483_v37, 4  ;;  %v495_v52 = vrot.slane %v493_v39, 4  ;;  %v509_v53 = vrot.slane %v507_v40, 6  ;;  %824 = vst [vmem:[#allocation2 + $0x20] sm:$0xf] %v484_v50  ;;  %v512_v55 = vrot.slane %v510_v41, 7  ;;  %13101 = vmatmul.mubr.bf16.vlgmr.msra.gmra.mrb[0].mxu0 %v14615_v42 }
  0x27   : > { %v505_v54 = vrot.slane %v503_v44, 4  ;;  %v519_v56 = vrot.slane %v517_v45, 6  ;;  %v522_v57 = vrot.slane %v520_v46, 7  ;;  %v529_v60 = vrot.slane %v527_v47, 6  ;;  %13137 = vmatpush3.bf16.msra.mxu0 %v14616_v31  ;;  %13104 = vmatprep.mubr.bf16.mxu0 %v14617_v49  ;;  %v289_v45 = vld [vmem:[%s15158_s6 + $0x90] sm:$0xff]  ;;  %v290_v50 = vld [vmem:[%s15158_s6 + $0x98] sm:$0xff] }
  0x28   : > { %v494_v58 = vsel %vm15182_vm6, %v485_v51, %v493_v39  ;;  %v504_v59 = vsel %vm15182_vm6, %v495_v52, %v503_v44  ;;  %v530_v61 = vshll.u32 %v12555_v34, 16  ;;  %v513_v62 = vor.u32 %v512_v55, %v509_v53  ;;  %13138 = vmatprep.subr.bf16.mxu0 %v14619_v43  ;;  %v14628_v44 = vld [vmem:[%s16447_s1 + $0x60] sm:$0xff]  }
  0x29   : > { %825 = vst [vmem:[#allocation2 + $0x24] sm:$0xf] %v494_v58  ;;  %826 = vst [vmem:[#allocation2 + $0x28] sm:$0xf] %v504_v59  ;;  %v523_v63 = vor.u32 %v522_v57, %v519_v56  ;;  %v537_v0 = vshrl.u32 %v12556_v35, 16  ;;  %v540_v1 = vshll.u32 %v12556_v35, 16  ;;  %v12558_v6 = vpack.c.bf16 %v285_v48, %v285_v48 }
  0x2a   : > { %v532_v2 = vrot.slane %v530_v61, 7  ;;  %v547_v3 = vshrl.u32 %v12557_v36, 16  ;;  %v550_v4 = vshll.u32 %v12557_v36, 16  ;;  %v514_v7 = vsel %vm15182_vm6, %v505_v54, %v513_v62  ;;  %v14618_v18 = vld [vmem:[#allocation2 + $0x18] sm:$0xff]   ;;  %v291_v55 = vld [vmem:[%s15158_s6 + $0xa0] sm:$0xff]  ;;  %v292_v56 = vld [vmem:[%s15158_s6 + $0xa8] sm:$0xff] }
  0x2b   : > { %v515_v9 = vrot.slane %v513_v62, 4  ;;  %v525_v11 = vrot.slane %v523_v63, 4  ;;  %v539_v12 = vrot.slane %v537_v0, 6  ;;  %827 = vst [vmem:[#allocation2 + $0x2c] sm:$0xf] %v514_v7  ;;  %v542_v14 = vrot.slane %v540_v1, 7  ;;  %13139 = vmatpush3.bf16.msra.mxu0 %v14619_v43 }
  0x2c   : > { %v533_v13 = vor.u32 %v532_v2, %v529_v60  ;;  %v549_v15 = vrot.slane %v547_v3, 6  ;;  %v552_v16 = vrot.slane %v550_v4, 7  ;;  %v12559_v20 = vpack.c.bf16 %v286_v5, %v286_v5  ;;  %13140 = vmatprep.subr.bf16.mxu0 %v14622_v8  ;;  %v14631_v2 = vld [vmem:[%s16447_s1 + $0x68] sm:$0xff]  }
  0x2d   : > { %v524_v19 = vsel %vm15182_vm6, %v515_v9, %v523_v63  ;;  %v557_v21 = vshrl.u32 %v12558_v6, 16  ;;  %v560_v22 = vshll.u32 %v12558_v6, 16  ;;  %v543_v26 = vor.u32 %v542_v14, %v539_v12 }
  0x2e   : > { %v534_v24 = vsel %vm15182_vm6, %v525_v11, %v533_v13  ;;  %828 = vst [vmem:[#allocation2 + $0x30] sm:$0xf] %v524_v19  ;;  %v535_v25 = vrot.slane %v533_v13, 4  ;;  %v553_v27 = vor.u32 %v552_v16, %v549_v15  ;;  %v567_v31 = vshrl.u32 %v12559_v20, 16  ;;  %13105 = vmatmul.mubr.bf16.gmra.mrb[4].mxu0 %v14618_v18  ;;  %v294_v18 = vld [vmem:[%s15158_s6 + $0xb8] sm:$0xff] }
  0x2f   : > { %829 = vst [vmem:[#allocation2 + $0x34] sm:$0xf] %v534_v24  ;;  %v559_v29 = vrot.slane %v557_v21, 6  ;;  %v562_v30 = vrot.slane %v560_v22, 7  ;;  %v570_v32 = vshll.u32 %v12559_v20, 16  ;;  %v545_v36 = vrot.slane %v543_v26, 4  ;;  %13141 = vmatpush3.bf16.msra.mxu0 %v14622_v8 }
  0x30   : > { %v14620_v34 = vld [vmem:[#allocation2 + $0x20] sm:$0xff]   ;;  %v544_v35 = vsel %vm15182_vm6, %v535_v25, %v543_v26  ;;  %v12560_v37 = vpack.c.bf16 %v287_v17, %v287_v17  ;;  %v12561_v39 = vpack.c.bf16 %v288_v23, %v288_v23  ;;  %v555_v40 = vrot.slane %v553_v27, 4  ;;  %13142 = vmatprep.subr.bf16.mxu0 %v14625_v28  ;;  %v293_v8 = vld [vmem:[%s15158_s6 + $0xb0] sm:$0xff] }
  0x31   : > { %830 = vst [vmem:[#allocation2 + $0x38] sm:$0xf] %v544_v35  ;;  %v563_v41 = vor.u32 %v562_v30, %v559_v29  ;;  %v569_v42 = vrot.slane %v567_v31, 6  ;;  %v572_v43 = vrot.slane %v570_v32, 7  ;;  %13108 = vmatprep.mubr.bf16.mxu0 %v14620_v34  ;;  %v554_v46 = vsel %vm15182_vm6, %v545_v36, %v553_v27  ;;  %v295_v27 = vld [vmem:[%s15158_s6 + $0xc0] sm:$0xff] }
  0x32   : > { %v577_v47 = vshrl.u32 %v12560_v37, 16  ;;  %v580_v48 = vshll.u32 %v12560_v37, 16  ;;  %v587_v49 = vshrl.u32 %v12561_v39, 16  ;;  %831 = vst [vmem:[#allocation2 + $0x3c] sm:$0xf] %v554_v46  ;;  %v590_v54 = vshll.u32 %v12561_v39, 16 }
  0x33   : > { %v564_v51 = vsel %vm15182_vm6, %v555_v40, %v563_v41  ;;  %v565_v52 = vrot.slane %v563_v41, 4  ;;  %v573_v53 = vor.u32 %v572_v43, %v569_v42  ;;  %v14621_v57 = vld [vmem:[#allocation2 + $0x28] sm:$0xff]   ;;  %v12562_v61 = vpack.c.bf16 %v289_v45, %v289_v45  ;;  %13143 = vmatpush3.bf16.msra.mxu0 %v14625_v28  ;;  %v14634_v28 = vld [vmem:[%s16447_s1 + $0x70] sm:$0xff]  }
  0x34   : > { %832 = vst [vmem:[#allocation2 + $0x40] sm:$0xf] %v564_v51  ;;  %v579_v58 = vrot.slane %v577_v47, 6  ;;  %v582_v59 = vrot.slane %v580_v48, 7  ;;  %v589_v60 = vrot.slane %v587_v49, 6  ;;  %v592_v0 = vrot.slane %v590_v54, 7  ;;  %13144 = vmatprep.subr.bf16.mxu0 %v14628_v44 }
  0x35   : > { %v574_v62 = vsel %vm15182_vm6, %v565_v52, %v573_v53  ;;  %v575_v63 = vrot.slane %v573_v53, 4  ;;  %v12563_v1 = vpack.c.bf16 %v290_v50, %v290_v50  ;;  %v597_v5 = vshrl.u32 %v12562_v61, 16  ;;  %v296_v39 = vld [vmem:[%s15158_s6 + $0xc8] sm:$0xff]  ;;  %v297_v50 = vld [vmem:[%s15158_s6 + $0xd0] sm:$0xff] }
  0x36   : > { %v14623_v3 = vld [vmem:[#allocation2 + $0x30] sm:$0xff]   ;;  %833 = vst [vmem:[#allocation2 + $0x44] sm:$0xf] %v574_v62  ;;  %v583_v4 = vor.u32 %v582_v59, %v579_v58  ;;  %v600_v6 = vshll.u32 %v12562_v61, 16  ;;  %v12564_v7 = vpack.c.bf16 %v291_v55, %v291_v55  ;;  %v593_v9 = vor.u32 %v592_v0, %v589_v60  ;;  %13109 = vmatmul.mubr.bf16.gmra.mrb[8].mxu0 %v14621_v57  ;;  %v14638_v55 = vld [vmem:[%s16447_s1 + $0x78] sm:$0xff]  }
  0x37   : > { %v607_v11 = vshrl.u32 %v12563_v1, 16  ;;  %v610_v12 = vshll.u32 %v12563_v1, 16  ;;  %v12565_v13 = vpack.c.bf16 %v292_v56, %v292_v56  ;;  %v599_v16 = vrot.slane %v597_v5, 6  ;;  %13112 = vmatprep.mubr.bf16.mxu0 %v14623_v3  ;;  %13145 = vmatpush3.bf16.msra.mxu0 %v14628_v44  ;;  %v298_v60 = vld [vmem:[%s15158_s6 + $0xd8] sm:$0xff]  ;;  %v299_v5 = vld [vmem:[%s15158_s6 + $0xe0] sm:$0xff] }
  0x38   : > { %v584_v14 = vsel %vm15182_vm6, %v575_v63, %v583_v4  ;;  %v585_v15 = vrot.slane %v583_v4, 4  ;;  %v602_v17 = vrot.slane %v600_v6, 7  ;;  %v595_v19 = vrot.slane %v593_v9, 4  ;;  %13146 = vmatprep.subr.bf16.mxu0 %v14631_v2  ;;  %v15292_v6 = vld [vmem:[%s16447_s1 + $0x80] sm:$0xff]  }
  0x39   : > { %834 = vst [vmem:[#allocation2 + $0x48] sm:$0xf] %v584_v14  ;;  %v609_v20 = vrot.slane %v607_v11, 6  ;;  %v612_v21 = vrot.slane %v610_v12, 7  ;;  %v617_v22 = vshrl.u32 %v12564_v7, 16  ;;  %v620_v25 = vshll.u32 %v12564_v7, 16 }
  0x3a   : > { %v594_v23 = vsel %vm15182_vm6, %v585_v15, %v593_v9  ;;  %v603_v24 = vor.u32 %v602_v17, %v599_v16  ;;  %v627_v26 = vshrl.u32 %v12565_v13, 16  ;;  %v630_v31 = vshll.u32 %v12565_v13, 16  ;;  %v14624_v40 = vld [vmem:[#allocation2 + $0x38] sm:$0xff]   ;;  %v300_v16 = vld [vmem:[%s15158_s6 + $0xe8] sm:$0xff] }
  0x3b   : > { %835 = vst [vmem:[#allocation2 + $0x4c] sm:$0xf] %v594_v23  ;;  %v613_v29 = vor.u32 %v612_v21, %v609_v20  ;;  %v619_v30 = vrot.slane %v617_v22, 6  ;;  %v12566_v32 = vpack.c.bf16 %v293_v8, %v293_v8  ;;  %v622_v36 = vrot.slane %v620_v25, 7  ;;  %13147 = vmatpush3.bf16.msra.mxu0 %v14631_v2 }
  0x3c   : > { %v604_v34 = vsel %vm15182_vm6, %v595_v19, %v603_v24  ;;  %v605_v35 = vrot.slane %v603_v24, 4  ;;  %v629_v37 = vrot.slane %v627_v26, 6  ;;  %v632_v42 = vrot.slane %v630_v31, 7  ;;  %13148 = vmatprep.subr.bf16.mxu0 %v14634_v28  ;;  %v301_v31 = vld [vmem:[%s15158_s6 + $0xf0] sm:$0xff] }
  0x3d   : > { %836 = vst [vmem:[#allocation2 + $0x50] sm:$0xf] %v604_v34  ;;  %v615_v41 = vrot.slane %v613_v29, 4  ;;  %v12567_v43 = vpack.c.bf16 %v294_v18, %v294_v18  ;;  %v637_v44 = vshrl.u32 %v12566_v32, 16  ;;  %v14626_v45 = vld [vmem:[#allocation2 + $0x40] sm:$0xff]   ;;  %v623_v47 = vor.u32 %v622_v36, %v619_v30 }
  0x3e   : > { %v614_v46 = vsel %vm15182_vm6, %v605_v35, %v613_v29  ;;  %v640_v48 = vshll.u32 %v12566_v32, 16  ;;  %v12568_v49 = vpack.c.bf16 %v295_v27, %v295_v27  ;;  %v633_v51 = vor.u32 %v632_v42, %v629_v37  ;;  %13113 = vmatmul.mubr.bf16.gmra.mrb[12].mxu0 %v14624_v40 }
  0x3f   : > { %837 = vst [vmem:[#allocation2 + $0x54] sm:$0xf] %v614_v46  ;;  %v639_v52 = vrot.slane %v637_v44, 6  ;;  %v647_v53 = vshrl.u32 %v12567_v43, 16  ;;  %v650_v54 = vshll.u32 %v12567_v43, 16  ;;  %v624_v56 = vsel %vm15182_vm6, %v615_v41, %v623_v47  ;;  %13116 = vmatprep.mubr.bf16.mxu0 %v14626_v45  ;;  %13149 = vmatpush3.bf16.msra.mxu0 %v14634_v28  ;;  %v302_v46 = vld [vmem:[%s15158_s6 + $0xf8] sm:$0xff] }
  0x40   : > { %v625_v57 = vrot.slane %v623_v47, 4  ;;  %v642_v58 = vrot.slane %v640_v48, 7  ;;  %v12569_v59 = vpack.c.bf16 %v296_v39, %v296_v39  ;;  %838 = vst [vmem:[#allocation2 + $0x58] sm:$0xf] %v624_v56  ;;  %v635_v61 = vrot.slane %v633_v51, 4  ;;  %13150 = vmatprep.subr.bf16.mxu0 %v14638_v55  ;;  %v303_v47 = vld [vmem:[%s15158_s6 + $0x100] sm:$0xff] }
  0x41   : > { %v649_v62 = vrot.slane %v647_v53, 6  ;;  %v652_v63 = vrot.slane %v650_v54, 7  ;;  %v657_v0 = vshrl.u32 %v12568_v49, 16  ;;  %v660_v3 = vshll.u32 %v12568_v49, 16  ;;  %v304_v56 = vld [vmem:[%s15158_s6 + $0x108] sm:$0xff] }
  0x42   : > { %v634_v1 = vsel %vm15182_vm6, %v625_v57, %v633_v51  ;;  %v643_v2 = vor.u32 %v642_v58, %v639_v52  ;;  %v667_v4 = vshrl.u32 %v12569_v59, 16  ;;  %v670_v9 = vshll.u32 %v12569_v59, 16  ;;  %v14627_v17 = vld [vmem:[#allocation2 + $0x48] sm:$0xff]  }
  0x43   : > { %839 = vst [vmem:[#allocation2 + $0x5c] sm:$0xf] %v634_v1  ;;  %v653_v7 = vor.u32 %v652_v63, %v649_v62  ;;  %v659_v8 = vrot.slane %v657_v0, 6  ;;  %v12570_v11 = vpack.c.bf16 %v297_v50, %v297_v50  ;;  %v662_v14 = vrot.slane %v660_v3, 7  ;;  %13151 = vmatpush3.bf16.msra.mxu0 %v14638_v55 }
  0x44   : > { %v644_v12 = vsel %vm15182_vm6, %v635_v61, %v643_v2  ;;  %v645_v13 = vrot.slane %v643_v2, 4  ;;  %v669_v15 = vrot.slane %v667_v4, 6  ;;  %v672_v19 = vrot.slane %v670_v9, 7  ;;  %13188 = vmatprep.subr.bf16.mxu0 %v15292_v6 }
  0x45   : > { %840 = vst [vmem:[#allocation2 + $0x60] sm:$0xf] %v644_v12  ;;  %v655_v18 = vrot.slane %v653_v7, 4  ;;  %v12571_v20 = vpack.c.bf16 %v298_v60, %v298_v60  ;;  %v677_v21 = vshrl.u32 %v12570_v11, 16  ;;  %v663_v24 = vor.u32 %v662_v14, %v659_v8 }
  0x46   : > { %v14629_v22 = vld [vmem:[#allocation2 + $0x50] sm:$0xff]   ;;  %v654_v23 = vsel %vm15182_vm6, %v645_v13, %v653_v7  ;;  %v680_v25 = vshll.u32 %v12570_v11, 16  ;;  %v12572_v26 = vpack.c.bf16 %v299_v5, %v299_v5  ;;  %v673_v27 = vor.u32 %v672_v19, %v669_v15  ;;  %13117 = vmatmul.mubr.bf16.gmra.mrb[16].mxu0 %v14627_v17 }
  0x47   : > { %841 = vst [vmem:[#allocation2 + $0x64] sm:$0xf] %v654_v23  ;;  %v679_v28 = vrot.slane %v677_v21, 6  ;;  %v687_v29 = vshrl.u32 %v12571_v20, 16  ;;  %v690_v30 = vshll.u32 %v12571_v20, 16  ;;  %v664_v32 = vsel %vm15182_vm6, %v655_v18, %v663_v24  ;;  %13120 = vmatprep.mubr.bf16.mxu0 %v14629_v22 }
  0x48   : > { %v665_v34 = vrot.slane %v663_v24, 4  ;;  %v682_v35 = vrot.slane %v680_v25, 7  ;;  %v12573_v36 = vpack.c.bf16 %v300_v16, %v300_v16  ;;  %842 = vst [vmem:[#allocation2 + $0x68] sm:$0xf] %v664_v32  ;;  %v675_v37 = vrot.slane %v673_v27, 4 }
  0x49   : > { %v689_v39 = vrot.slane %v687_v29, 6  ;;  %v692_v40 = vrot.slane %v690_v30, 7  ;;  %v697_v41 = vshrl.u32 %v12572_v26, 16  ;;  %v700_v44 = vshll.u32 %v12572_v26, 16 }
  0x4a   : > { %v674_v42 = vsel %vm15182_vm6, %v665_v34, %v673_v27  ;;  %v683_v43 = vor.u32 %v682_v35, %v679_v28  ;;  %v707_v45 = vshrl.u32 %v12573_v36, 16  ;;  %v710_v50 = vshll.u32 %v12573_v36, 16  ;;  %v14630_v57 = vld [vmem:[#allocation2 + $0x58] sm:$0xff]   ;;  %v14640_v36 = vld [vmem:[#allocation2] sm:$0xff]  }
  0x4b   : > { %843 = vst [vmem:[#allocation2 + $0x6c] sm:$0xf] %v674_v42  ;;  %v693_v48 = vor.u32 %v692_v40, %v689_v39  ;;  %v699_v49 = vrot.slane %v697_v41, 6  ;;  %v12574_v51 = vpack.c.bf16 %v301_v31, %v301_v31  ;;  %v702_v54 = vrot.slane %v700_v44, 7  ;;  %v14641_v41 = vld [vmem:[#allocation2 + $0x8] sm:$0xff]  }
  0x4c   : > { %v684_v52 = vsel %vm15182_vm6, %v675_v37, %v683_v43  ;;  %v685_v53 = vrot.slane %v683_v43, 4  ;;  %v709_v55 = vrot.slane %v707_v45, 6  ;;  %v712_v59 = vrot.slane %v710_v50, 7 }
  0x4d   : > { %844 = vst [vmem:[#allocation2 + $0x70] sm:$0xf] %v684_v52  ;;  %v695_v58 = vrot.slane %v693_v48, 4  ;;  %v12575_v60 = vpack.c.bf16 %v302_v46, %v302_v46  ;;  %v717_v61 = vshrl.u32 %v12574_v51, 16  ;;  %v703_v0 = vor.u32 %v702_v54, %v699_v49 }
  0x4e   : > { %v14632_v62 = vld [vmem:[#allocation2 + $0x60] sm:$0xff]   ;;  %v694_v63 = vsel %vm15182_vm6, %v685_v53, %v693_v48  ;;  %v720_v1 = vshll.u32 %v12574_v51, 16  ;;  %v12576_v2 = vpack.c.bf16 %v303_v47, %v303_v47  ;;  %v713_v3 = vor.u32 %v712_v59, %v709_v55  ;;  %13121 = vmatmul.mubr.bf16.gmra.mrb[20].mxu0 %v14630_v57  ;;  %v14642_v48 = vld [vmem:[#allocation2 + $0x10] sm:$0xff]   ;;  %v14644_v51 = vld [vmem:[#allocation2 + $0x18] sm:$0xff]  }
  0x4f   : > { %845 = vst [vmem:[#allocation2 + $0x74] sm:$0xf] %v694_v63  ;;  %v719_v4 = vrot.slane %v717_v61, 6  ;;  %v727_v5 = vshrl.u32 %v12575_v60, 16  ;;  %v730_v7 = vshll.u32 %v12575_v60, 16  ;;  %v704_v8 = vsel %vm15182_vm6, %v695_v58, %v703_v0  ;;  %13124 = vmatprep.mubr.bf16.mxu0 %v14632_v62  ;;  %v305_v58 = vld [vmem:[%s15158_s6 + $0x110] sm:$0xff] }
  0x50   : > { %v705_v9 = vrot.slane %v703_v0, 4  ;;  %v722_v11 = vrot.slane %v720_v1, 7  ;;  %v12577_v12 = vpack.c.bf16 %v304_v56, %v304_v56  ;;  %846 = vst [vmem:[#allocation2 + $0x78] sm:$0xf] %v704_v8  ;;  %v715_v13 = vrot.slane %v713_v3, 4  ;;  %v14645_v59 = vld [vmem:[#allocation2 + $0x20] sm:$0xff]  }
  0x51   : > { %v729_v14 = vrot.slane %v727_v5, 6  ;;  %v732_v15 = vrot.slane %v730_v7, 7  ;;  %v737_v16 = vshrl.u32 %v12576_v2, 16  ;;  %v740_v19 = vshll.u32 %v12576_v2, 16  ;;  %v14647_v1 = vld [vmem:[#allocation2 + $0x28] sm:$0xff]  }
  0x52   : > { %v714_v17 = vsel %vm15182_vm6, %v705_v9, %v713_v3  ;;  %v723_v18 = vor.u32 %v722_v11, %v719_v4  ;;  %v747_v20 = vshrl.u32 %v12577_v12, 16  ;;  %v750_v23 = vshll.u32 %v12577_v12, 16  ;;  %v14633_v28 = vld [vmem:[#allocation2 + $0x68] sm:$0xff]  }
  0x53   : > { %847 = vst [vmem:[#allocation2 + $0x7c] sm:$0xf] %v714_v17  ;;  %v733_v21 = vor.u32 %v732_v15, %v729_v14  ;;  %v739_v22 = vrot.slane %v737_v16, 6  ;;  %v742_v26 = vrot.slane %v740_v19, 7  ;;  %v1428_v42 = vshll.u32 %v14640_v36, 16  ;;  %v14646_v9 = vld [vmem:[%s16447_s1 + $0x88] sm:$0xff]  }
  0x54   : > { %v724_v24 = vsel %vm15182_vm6, %v715_v13, %v723_v18  ;;  %v725_v25 = vrot.slane %v723_v18, 4  ;;  %v749_v27 = vrot.slane %v747_v20, 6  ;;  %v752_v30 = vrot.slane %v750_v23, 7  ;;  %v14648_v17 = vld [vmem:[#allocation2 + $0x30] sm:$0xff]  }
  0x55   : > { %848 = vst [vmem:[#allocation2 + $0x80] sm:$0xf] %v724_v24  ;;  %v735_v29 = vrot.slane %v733_v21, 4  ;;  %v743_v34 = vor.u32 %v742_v26, %v739_v22  ;;  %v1426_v45 = vshrl.u32 %v14640_v36, 16  ;;  %v1430_v46 = vrot.slane %v1428_v42, 1  ;;  %v14649_v19 = vld [vmem:[%s16447_s1 + $0x90] sm:$0xff]  }
  0x56   : > { %v14635_v31 = vld [vmem:[#allocation2 + $0x70] sm:$0xff]   ;;  %v734_v32 = vsel %vm15182_vm6, %v725_v25, %v733_v21  ;;  %v753_v35 = vor.u32 %v752_v30, %v749_v27  ;;  %13125 = vmatmul.mubr.bf16.gmra.mrb[24].mxu0 %v14633_v28  ;;  %v1433_v47 = vshll.u32 %v14641_v41, 16  ;;  %v1441_v53 = vshll.u32 %v14642_v48, 16  ;;  %v14650_v24 = vld [vmem:[#allocation2 + $0x38] sm:$0xff]  }
  0x57   : > { %849 = vst [vmem:[#allocation2 + $0x84] sm:$0xf] %v734_v32  ;;  %v744_v37 = vsel %vm15182_vm6, %v735_v29, %v743_v34  ;;  %v745_v39 = vrot.slane %v743_v34, 4  ;;  %13128 = vmatprep.mubr.bf16.mxu0 %v14635_v31  ;;  %v1431_v49 = vor.u32 %v1430_v46, %v1426_v45  ;;  %v1437_v54 = vshrl.u32 %v14641_v41, 16  ;;  %v14651_v31 = vld [vmem:[#allocation2 + $0x40] sm:$0xff]   ;;  %v14658_v45 = vld [vmem:[%s16447_s1 + $0xa8] sm:$0xff]  }
  0x58   : > { %850 = vst [vmem:[#allocation2 + $0x88] sm:$0xf] %v744_v37  ;;  %v1435_v50 = vrot.slane %v1433_v47, 1  ;;  %v1445_v56 = vshrl.u32 %v14642_v48, 16  ;;  %v1449_v57 = vshll.u32 %v14644_v51, 16  ;;  %v1443_v60 = vrot.slane %v1441_v53, 1 }
  0x59   : > { %v754_v40 = vsel %vm15182_vm6, %v745_v39, %v753_v35  ;;  %v12578_v62 = vpack.c.bf16 %v305_v58, %v305_v58  ;;  %v1457_v2 = vshll.u32 %v14645_v59, 16  ;;  %v755_v5 = vrot.slane %v753_v35, 4  ;;  %v14653_v35 = vld [vmem:[#allocation2 + $0x48] sm:$0xff]   ;;  %v14655_v39 = vld [vmem:[%s16447_s1 + $0xa0] sm:$0xff]   ;;  %v14654_v48 = vld [vmem:[#allocation2 + $0x50] sm:$0xff]  }
  0x5a   : > { %851 = vst [vmem:[#allocation2 + $0x8c] sm:$0xf] %v754_v40  ;;  %v14636_v43 = vld [vmem:[#allocation2 + $0x78] sm:$0xff]   ;;  %v1436_v55 = vsel %vm1424_vm8, %v1431_v49, %v1435_v50  ;;  %v1439_v61 = vor.u32 %v1437_v54, %v1435_v50  ;;  %v1447_v63 = vor.u32 %v1445_v56, %v1443_v60  ;;  %v1451_v0 = vrot.slane %v1449_v57, 1  ;;  %v14661_v53 = vld [vmem:[%s16447_s1 + $0xb0] sm:$0xff]  }
  0x5b   : > { %v757_v3 = vshrl.u32 %v12578_v62, 16  ;;  %v760_v4 = vshll.u32 %v12578_v62, 16  ;;  %v1453_v8 = vshrl.u32 %v14644_v51, 16  ;;  %v1461_v14 = vshrl.u32 %v14645_v59, 16  ;;  %v14656_v50 = vld [vmem:[#allocation2 + $0x58] sm:$0xff]  }
  0x5c   : > { %v1444_v7 = vsel %vm1424_vm8, %v1439_v61, %v1443_v60  ;;  %v1452_v13 = vsel %vm1424_vm8, %v1447_v63, %v1451_v0  ;;  %v1465_v15 = vshll.u32 %v14647_v1, 16  ;;  %v1459_v16 = vrot.slane %v1457_v2, 1  ;;  %v14665_v60 = vld [vmem:[%s16447_s1 + $0xb8] sm:$0xff]   ;;  %v14657_v61 = vld [vmem:[#allocation2 + $0x60] sm:$0xff]  }
  0x5d   : > { %v759_v11 = vrot.slane %v757_v3, 6  ;;  %v762_v12 = vrot.slane %v760_v4, 7  ;;  %v1455_v20 = vor.u32 %v1453_v8, %v1451_v0  ;;  %v1473_v25 = vshll.u32 %v14648_v17, 16  ;;  %v14659_v0 = vld [vmem:[#allocation2 + $0x68] sm:$0xff]   ;;  %v15364_v3 = vld [vmem:[%s16447_s1 + $0xc0] sm:$0xff]  }
  0x5e   : > { %v14637_v44 = vld [vmem:[#allocation2 + $0x80] sm:$0xff]   ;;  %13129 = vmatmul.mubr.bf16.gmra.mrb[28].mxu0 %v14636_v43  ;;  %v1463_v22 = vor.u32 %v1461_v14, %v1459_v16  ;;  %v1467_v23 = vrot.slane %v1465_v15, 1  ;;  %v1469_v27 = vshrl.u32 %v14647_v1, 16  ;;  %v1477_v29 = vshrl.u32 %v14648_v17, 16 }
  0x5f   : > { %13132 = vmatprep.mubr.bf16.mxu0 %v14637_v44  ;;  %v15331_v18 = vor.u32 %v762_v12, %v759_v11  ;;  %v1460_v26 = vsel %vm1424_vm8, %v1455_v20, %v1459_v16  ;;  %v1481_v30 = vshll.u32 %v14650_v24, 16  ;;  %v1475_v32 = vrot.slane %v1473_v25, 1 }
  0x60   : > { %v1468_v28 = vsel %vm1424_vm8, %v1463_v22, %v1467_v23  ;;  %v1471_v34 = vor.u32 %v1469_v27, %v1467_v23  ;;  %v1489_v40 = vshll.u32 %v14651_v31, 16  ;;  %v1485_v42 = vshrl.u32 %v14650_v24, 16  ;;  %v14663_v23 = vld [vmem:[#allocation2 + $0x80] sm:$0xff]  }
  0x61   : > { %v14639_v52 = vld [vmem:[#allocation2 + $0x88] sm:$0xff]   ;;  %v764_v21 = vsel %vm15182_vm6, %v755_v5, %v15331_v18  ;;  %v1479_v36 = vor.u32 %v1477_v29, %v1475_v32  ;;  %v1483_v37 = vrot.slane %v1481_v30, 1  ;;  %v1493_v43 = vshrl.u32 %v14651_v31, 16 }
  0x62   : > { %852 = vst [vmem:[#allocation2 + $0x90] sm:$0xf] %v764_v21  ;;  %v1476_v41 = vsel %vm1424_vm8, %v1471_v34, %v1475_v32  ;;  %v1497_v44 = vshll.u32 %v14653_v35, 16  ;;  %v1491_v47 = vrot.slane %v1489_v40, 1  ;;  %v1501_v54 = vshrl.u32 %v14653_v35, 16  ;;  %v14664_v25 = vld [vmem:[#allocation2 + $0x88] sm:$0xff]  }
  0x63   : > { %v1484_v46 = vsel %vm1424_vm8, %v1479_v36, %v1483_v37  ;;  %v1487_v49 = vor.u32 %v1485_v42, %v1483_v37  ;;  %v1509_v58 = vshrl.u32 %v14654_v48, 16  ;;  %v1513_v59 = vshll.u32 %v14656_v50, 16 }
  0x64   : > { %v1495_v51 = vor.u32 %v1493_v43, %v1491_v47  ;;  %v1517_v4 = vshrl.u32 %v14656_v50, 16  ;;  %v1521_v5 = vshll.u32 %v14657_v61, 16  ;;  %v1529_v11 = vshll.u32 %v14659_v0, 16 }
  0x65   : > { %v1492_v56 = vsel %vm1424_vm8, %v1487_v49, %v1491_v47  ;;  %v1515_v2 = vrot.slane %v1513_v59, 1  ;;  %v1533_v16 = vshrl.u32 %v14659_v0, 16  ;;  %v1553_v31 = vshll.u32 %v14663_v23, 16  ;;  %v306_v49 = vld [vmem:[%s15158_s6 + $0x118] sm:$0xff] }
  0x66   : > { %13133 = vmatmul.mubr.bf16.gmra.mrb[32].mxu0 %v14639_v52  ;;  %v1499_v52 = vrot.slane %v1497_v44, 1  ;;  %v1523_v14 = vrot.slane %v1521_v5, 1  ;;  %v1557_v32 = vshrl.u32 %v14663_v23, 16  ;;  %v1561_v34 = vshll.u32 %v14664_v25, 16 }
  0x67   : > { %13152 = vmatprep.mubr.bf16.mxu0 %v1436_v55  ;;  %v1505_v55 = vshll.u32 %v14654_v48, 16  ;;  %v1519_v15 = vor.u32 %v1517_v4, %v1515_v2  ;;  %v1565_v43 = vshrl.u32 %v14664_v25, 16  ;;  %v765_v0 = vrot.slane %v15331_v18, 4  ;;  %v14678_v25 = vld [vmem:[#allocation2 + $0x40] sm:$0xff]  }
  0x68   : > { %v1500_v57 = vsel %vm1424_vm8, %v1495_v51, %v1499_v52  ;;  %v1503_v63 = vor.u32 %v1501_v54, %v1499_v52  ;;  %v1563_v42 = vrot.slane %v1561_v34, 1  ;;  %v12579_v52 = vpack.c.bf16 %v306_v49, %v306_v49  ;;  %v14683_v34 = vld [vmem:[#allocation2 + $0x58] sm:$0xff]  }
  0x69   : > { %v1507_v62 = vrot.slane %v1505_v55, 1  ;;  %v1524_v24 = vsel %vm1424_vm8, %v1519_v15, %v1523_v14  ;;  %v14666_v36 = vld [vmem:[#allocation2 + $0x90] ss:$0 sps:$4 sm:$0x11]  }
  0x6a   : > { %v1569_v44 = vshll.u32 %v14666_v36, 16  ;;  %v1567_v50 = vor.u32 %v1565_v43, %v1563_v42  ;;  %v14669_v55 = vld [vmem:[#allocation2 + $0x10] sm:$0xff]  }
  0x6b   : > { %v1511_v1 = vor.u32 %v1509_v58, %v1507_v62  ;;  %v1508_v8 = vsel %vm1424_vm8, %v1503_v63, %v1507_v62  ;;  %v14671_v58 = vld [vmem:[#allocation2 + $0x18] sm:$0xff]  }
  0x6c   : > { %v1571_v51 = vrot.slane %v1569_v44, 1  ;;  %v2076_v4 = vrot.slane %v14671_v58, 1 }
  0x6d   : > { %v1516_v12 = vsel %vm1424_vm8, %v1511_v1, %v1515_v2  ;;  %v2074_v1 = vrot.slane %v14669_v55, 1 }
  0x6e   : > { %13153 = vmatmul.mubr.bf16.vlgmr.msra.gmra.mrb[0].mxu0 %v1444_v7  ;;  %v14660_v7 = vld [vmem:[#allocation2 + $0x70] sm:$0xff]   ;;  %v1572_v59 = vsel %vm1424_vm8, %v1567_v50, %v1571_v51  ;;  %v14689_v51 = vld [vmem:[#allocation2 + $0x78] sm:$0xff]  }
  0x6f   : > { %13189 = vmatpush3.bf16.msra.mxu0 %v15292_v6  ;;  %13156 = vmatprep.mubr.bf16.mxu0 %v1452_v13  ;;  %v14652_v6 = vld [vmem:[%s16447_s1 + $0x98] sm:$0xff]   ;;  %v1537_v20 = vshll.u32 %v14660_v7, 16  ;;  %v1541_v21 = vshrl.u32 %v14660_v7, 16 }
  0x70   : > { %13190 = vmatprep.subr.bf16.mxu0 %v14646_v9  ;;  %v14662_v13 = vld [vmem:[#allocation2 + $0x78] sm:$0xff]  }
  0x71   : > { %v1545_v22 = vshll.u32 %v14662_v13, 16  ;;  %v1539_v27 = vrot.slane %v1537_v20, 1  ;;  %v854_v7 = vld [vmem:[#allocation2 + $0x98] sm:$0x3] }
  0x73   : > { %13191 = vmatpush3.bf16.msra.mxu0 %v14646_v9  ;;  %v1525_v9 = vshrl.u32 %v14657_v61, 16  ;;  %v1543_v29 = vor.u32 %v1541_v21, %v1539_v27  ;;  %v1547_v30 = vrot.slane %v1545_v22, 1  ;;  %v14677_v21 = vld [vmem:[#allocation2 + $0x38] sm:$0xff]  }
  0x74   : > { %13192 = vmatprep.subr.bf16.mxu0 %v14649_v19  ;;  %v2084_v23 = vrot.slane %v14677_v21, 1  ;;  %v14702_v21 = vld [vmem:[#allocation2 + $0x38] sm:$0xff]  }
  0x75   : > { %v1527_v17 = vor.u32 %v1525_v9, %v1523_v14  ;;  %v1548_v37 = vsel %vm1424_vm8, %v1543_v29, %v1547_v30  ;;  %v2086_v29 = vrot.slane %v14678_v25, 1  ;;  %v2616_v25 = vrot.slane %v14702_v21, 1 }
  0x76   : > { %13157 = vmatmul.mubr.bf16.gmra.mrb[4].mxu0 %v1460_v26 }
  0x77   : > { %13160 = vmatprep.mubr.bf16.mxu0 %v1468_v28  ;;  %13193 = vmatpush3.bf16.msra.mxu0 %v14649_v19  ;;  %v1531_v19 = vrot.slane %v1529_v11, 1  ;;  %v1549_v28 = vshrl.u32 %v14662_v13, 16  ;;  %v14673_v11 = vld [vmem:[%s16447_s1 + $0xc8] sm:$0xff]   ;;  %v2077_v13 = vsel %vm2070_vm9, %v2074_v1, %v2076_v4 }
  0x78   : > { %13194 = vmatprep.subr.bf16.mxu0 %v14652_v6 }
  0x79   : > { %v1532_v26 = vsel %vm1424_vm8, %v1527_v17, %v1531_v19  ;;  %v1551_v40 = vor.u32 %v1549_v28, %v1547_v30  ;;  %v14685_v28 = vld [vmem:[%s16447_s1 + $0xe8] sm:$0xff]  }
  0x7b   : > { %13195 = vmatpush3.bf16.msra.mxu0 %v14652_v6  ;;  %v1535_v6 = vor.u32 %v1533_v16, %v1531_v19  ;;  %v14676_v16 = vld [vmem:[%s16447_s1 + $0xd0] sm:$0xff]  }
  0x7c   : > { %13196 = vmatprep.subr.bf16.mxu0 %v14655_v39  ;;  %v14675_v19 = vld [vmem:[#allocation2 + $0x30] sm:$0xff]  }
  0x7d   : > { %v1540_v35 = vsel %vm1424_vm8, %v1535_v6, %v1539_v27  ;;  %v2082_v22 = vrot.slane %v14675_v19, 1 }
  0x7e   : > { %13161 = vmatmul.mubr.bf16.gmra.mrb[8].mxu0 %v1476_v41 }
  0x7f   : > { %13164 = vmatprep.mubr.bf16.mxu0 %v1484_v46  ;;  %13197 = vmatpush3.bf16.msra.mxu0 %v14655_v39  ;;  %v1555_v39 = vrot.slane %v1553_v31, 1  ;;  %v14668_v46 = vld [vmem:[#allocation2 + $0x8] sm:$0xff]   ;;  %v2085_v6 = vsel %vm2070_vm9, %v2082_v22, %v2084_v23  ;;  %v14688_v31 = vld [vmem:[%s16447_s1 + $0xf0] sm:$0xff]  }
  0x80   : > { %13198 = vmatprep.subr.bf16.mxu0 %v14658_v45  ;;  %v2072_v54 = vrot.slane %v14668_v46, 1 }
  0x81   : > { %v1559_v41 = vor.u32 %v1557_v32, %v1555_v39  ;;  %v1556_v47 = vsel %vm1424_vm8, %v1551_v40, %v1555_v39  ;;  %v14681_v32 = vld [vmem:[#allocation2 + $0x50] sm:$0xff]   ;;  %v2092_v40 = vrot.slane %v14683_v34, 1 }
  0x82   : > { %v2075_v18 = vsel %vm2070_vm9, %v2072_v54, %v2074_v1  ;;  %v2090_v39 = vrot.slane %v14681_v32, 1 }
  0x83   : > { %13199 = vmatpush3.bf16.msra.mxu0 %v14658_v45  ;;  %v14667_v45 = vld [vmem:[#allocation2] sm:$0xfe]   ;;  %v1564_v48 = vsel %vm1424_vm8, %v1559_v41, %v1563_v42 }
  0x84   : > { %13200 = vmatprep.subr.bf16.mxu0 %v14661_v53  ;;  %v14697_v41 = vld [vmem:[%s16447_s1 + $0x100] sm:$0xff]   ;;  %v2093_v44 = vsel %vm2070_vm9, %v2090_v39, %v2092_v40 }
  0x85   : > { %v14684_v42 = vld [vmem:[#allocation2 + $0x60] sm:$0xff]  }
  0x86   : > { %13165 = vmatmul.mubr.bf16.gmra.mrb[12].mxu0 %v1492_v56  ;;  %v767_v56 = vshrl.u32 %v12579_v52, 16  ;;  %v2094_v46 = vrot.slane %v14684_v42, 1 }
  0x87   : > { %13168 = vmatprep.mubr.bf16.mxu0 %v1500_v57  ;;  %13201 = vmatpush3.bf16.msra.mxu0 %v14661_v53  ;;  %v2071_v53 = vrot.slane %v14667_v45, 1  ;;  %v770_v57 = vshll.u32 %v12579_v52, 16  ;;  %v14686_v45 = vld [vmem:[#allocation2 + $0x68] sm:$0xff]  }
  0x88   : > { %13202 = vmatprep.subr.bf16.mxu0 %v14665_v60  ;;  %v2095_v49 = vsel %vm2070_vm9, %v2092_v40, %v2094_v46 }
  0x89   : > { %v772_v61 = vrot.slane %v770_v57, 7  ;;  %v2073_v62 = vsel %vm2070_vm9, %v2071_v53, %v2072_v54  ;;  %v2100_v53 = vrot.slane %v14689_v51, 1  ;;  %v14690_v54 = vld [vmem:[#allocation2 + $0x80] sm:$0xff]   ;;  %v14691_v57 = vld [vmem:[#allocation2 + $0x88] sm:$0xff]   ;;  %v14714_v51 = vld [vmem:[#allocation2 + $0x78] sm:$0xff]  }
  0x8a   : > { %v2102_v58 = vrot.slane %v14690_v54, 1  ;;  %v14721_v54 = vld [vmem:[#allocation2 + $0x8] sm:$0xfe]  }
  0x8b   : > { %13203 = vmatpush3.bf16.msra.mxu0 %v14665_v60  ;;  %v769_v60 = vrot.slane %v767_v56, 6 }
  0x8c   : > { %13240 = vmatprep.subr.bf16.mxu0 %v15364_v3 }
  0x8d   : > { %v773_v63 = vor.u32 %v772_v61, %v769_v60  ;;  %v14693_v60 = vld [vmem:[#allocation2 + $0x90] ss:$0 sps:$4 sm:$0x11]   ;;  %v14694_v61 = vld [vmem:[#allocation2 + $0x8] sm:$0xfe]  }
  0x8e   : > { %13169 = vmatmul.mubr.bf16.gmra.mrb[16].mxu0 %v1508_v8  ;;  %v14672_v8 = vld [vmem:[#allocation2 + $0x20] sm:$0xff]   ;;  %v2106_v1 = vrot.slane %v14693_v60, 1 }
  0x8f   : > { %13172 = vmatprep.mubr.bf16.mxu0 %v1516_v12  ;;  %v775_v2 = vrot.slane %v773_v63, 4  ;;  %v774_v5 = vsel %vm15182_vm6, %v765_v0, %v773_v63  ;;  %v14674_v12 = vld [vmem:[#allocation2 + $0x28] sm:$0xff]   ;;  %v2078_v14 = vrot.slane %v14672_v8, 1  ;;  %v14695_v0 = vld [vmem:[#allocation2 + $0x10] sm:$0xff]  }
  0x90   : > { %853 = vst [vmem:[#allocation2 + $0x94] sm:$0xf] %v774_v5  ;;  %v2080_v15 = vrot.slane %v14674_v12, 1  ;;  %v14696_v5 = vld [vmem:[#allocation2 + $0x18] sm:$0xff]  }
  0x91   : > { %v855_v9 = vsel %vm15167_vm2, %v775_v2, %v854_v7  ;;  %v2079_v17 = vsel %vm2070_vm9, %v2076_v4, %v2078_v14  ;;  %v2605_v2 = vrot.slane %v14694_v61, 1  ;;  %v2606_v4 = vrot.slane %v14695_v0, 1 }
  0x92   : > { %856 = vst [vmem:[#allocation2 + $0x98] sm:$0x3] %v855_v9  ;;  %v2081_v20 = vsel %vm2070_vm9, %v2078_v14, %v2080_v15  ;;  %v2083_v27 = vsel %vm2070_vm9, %v2080_v15, %v2082_v22  ;;  %v14698_v9 = vld [vmem:[#allocation2 + $0x20] sm:$0xff]   ;;  %v14706_v22 = vld [vmem:[%s16447_s1 + $0x118] sm:$0xff]   ;;  %v3144_v0 = vshll.u32 %v14721_v54, 16 }
  0x93   : > { %v2607_v8 = vsel %vm2070_vm9, %v2605_v2, %v2606_v4  ;;  %v2610_v12 = vrot.slane %v14698_v9, 1 }
  0x96   : > { %13173 = vmatmul.mubr.bf16.gmra.mrb[20].mxu0 %v1524_v24  ;;  %v14682_v24 = vld [vmem:[%s16447_s1 + $0xe0] sm:$0xff]  }
  0x97   : > { %13176 = vmatprep.mubr.bf16.mxu0 %v1532_v26  ;;  %v14680_v26 = vld [vmem:[#allocation2 + $0x48] sm:$0xff]   ;;  %v14718_v61 = vld [vmem:[#allocation2 + $0x90] sm:$0xff]  }
  0x98   : > { %v2088_v30 = vrot.slane %v14680_v26, 1  ;;  %v2638_v9 = vrot.slane %v14718_v61, 1  ;;  %v14733_v61 = vld [vmem:[%s16447_s1 + $0x158] sm:$0xff]  }
  0x9a   : > { %v2089_v36 = vsel %vm2070_vm9, %v2086_v29, %v2088_v30  ;;  %v2091_v43 = vsel %vm2070_vm9, %v2088_v30, %v2090_v39  ;;  %v14719_v39 = vld [vmem:[%s16447_s1 + $0x138] sm:$0xff]  }
  0x9e   : > { %13177 = vmatmul.mubr.bf16.gmra.mrb[24].mxu0 %v1540_v35  ;;  %v2087_v35 = vsel %vm2070_vm9, %v2084_v23, %v2086_v29  ;;  %v14712_v29 = vld [vmem:[%s16447_s1 + $0x128] sm:$0xff]  }
  0x9f   : > { %13180 = vmatprep.mubr.bf16.mxu0 %v1548_v37  ;;  %v14692_v37 = vld [vmem:[%s16447_s1 + $0xf8] sm:$0xff]  }
  0xa6   : > { %13181 = vmatmul.mubr.bf16.gmra.mrb[28].mxu0 %v1556_v47  ;;  %v2096_v47 = vrot.slane %v14686_v45, 1  ;;  %v14711_v45 = vld [vmem:[#allocation2 + $0x68] sm:$0xff]  }
  0xa7   : > { %13184 = vmatprep.mubr.bf16.mxu0 %v1564_v48  ;;  %v14687_v48 = vld [vmem:[#allocation2 + $0x70] sm:$0xff]  }
  0xa8   : > { %v2097_v50 = vsel %vm2070_vm9, %v2094_v46, %v2096_v47  ;;  %v2098_v52 = vrot.slane %v14687_v48, 1  ;;  %v14713_v46 = vld [vmem:[#allocation2 + $0x70] sm:$0xff]  }
  0xaa   : > { %v2099_v55 = vsel %vm2070_vm9, %v2096_v47, %v2098_v52  ;;  %v2101_v56 = vsel %vm2070_vm9, %v2098_v52, %v2100_v53  ;;  %v14716_v52 = vld [vmem:[#allocation2 + $0x80] sm:$0xff]  }
  0xae   : > { %13185 = vmatmul.mubr.bf16.gmra.mrb[32].mxu0 %v1572_v59  ;;  %v2104_v59 = vrot.slane %v14691_v57, 1 }
  0xaf   : > { %13204 = vmatprep.mubr.bf16.mxu0 %v2073_v62  ;;  %v2103_v62 = vsel %vm2070_vm9, %v2100_v53, %v2102_v58  ;;  %v14717_v53 = vld [vmem:[#allocation2 + $0x88] sm:$0xff]  }
  0xb0   : > { %v2105_v63 = vsel %vm2070_vm9, %v2102_v58, %v2104_v59  ;;  %v2107_v7 = vsel %vm2070_vm9, %v2104_v59, %v2106_v1  ;;  %v2632_v58 = vrot.slane %v14714_v51, 1  ;;  %v2634_v59 = vrot.slane %v14716_v52, 1  ;;  %v14723_v1 = vld [vmem:[#allocation2 + $0x18] sm:$0xff]  }
  0xb1   : > { %v2636_v60 = vrot.slane %v14717_v53, 1 }
  0xb3   : > { %v2637_v21 = vsel %vm2070_vm9, %v2634_v59, %v2636_v60 }
  0xb6   : > { %13205 = vmatmul.mubr.bf16.vlgmr.msra.gmra.mrb[0].mxu0 %v2075_v18  ;;  %v14699_v18 = vld [vmem:[#allocation2 + $0x28] sm:$0xff]  }
  0xb7   : > { %13241 = vmatpush3.bf16.msra.mxu0 %v15364_v3  ;;  %13208 = vmatprep.mubr.bf16.mxu0 %v2077_v13  ;;  %v14679_v3 = vld [vmem:[%s16447_s1 + $0xd8] sm:$0xff]   ;;  %v14700_v13 = vld [vmem:[%s16447_s1 + $0x108] sm:$0xff]  }
  0xb8   : > { %13242 = vmatprep.subr.bf16.mxu0 %v14673_v11 }
  0xbb   : > { %13243 = vmatpush3.bf16.msra.mxu0 %v14673_v11  ;;  %v2608_v11 = vrot.slane %v14696_v5, 1 }
  0xbc   : > { %13244 = vmatprep.subr.bf16.mxu0 %v14676_v16 }
  0xbd   : > { %v2609_v14 = vsel %vm2070_vm9, %v2606_v4, %v2608_v11  ;;  %v2611_v15 = vsel %vm2070_vm9, %v2608_v11, %v2610_v12 }
  0xbe   : > { %13209 = vmatmul.mubr.bf16.gmra.mrb[4].mxu0 %v2079_v17  ;;  %v2612_v17 = vrot.slane %v14699_v18, 1  ;;  %v3161_v18 = vshll.u32 %v14723_v1, 16 }
  0xbf   : > { %13212 = vmatprep.mubr.bf16.mxu0 %v2081_v20  ;;  %13245 = vmatpush3.bf16.msra.mxu0 %v14676_v16  ;;  %v14701_v16 = vld [vmem:[#allocation2 + $0x30] sm:$0xff]  }
  0xc0   : > { %13246 = vmatprep.subr.bf16.mxu0 %v14679_v3  ;;  %v2614_v19 = vrot.slane %v14701_v16, 1  ;;  %v14703_v20 = vld [vmem:[%s16447_s1 + $0x110] sm:$0xff]   ;;  %v2613_v23 = vsel %vm2070_vm9, %v2610_v12, %v2612_v17  ;;  %v3158_v12 = vshrl.u32 %v14723_v1, 16 }
  0xc2   : > { %v2617_v30 = vsel %vm2070_vm9, %v2614_v19, %v2616_v25 }
  0xc3   : > { %13247 = vmatpush3.bf16.msra.mxu0 %v14679_v3  ;;  %v14704_v3 = vld [vmem:[#allocation2 + $0x40] sm:$0xff]  }
  0xc4   : > { %13248 = vmatprep.subr.bf16.mxu0 %v14682_v24  ;;  %v2618_v26 = vrot.slane %v14704_v3, 1  ;;  %v14728_v3 = vld [vmem:[#allocation2 + $0x30] sm:$0xff]  }
  0xc6   : > { %13213 = vmatmul.mubr.bf16.gmra.mrb[8].mxu0 %v2083_v27  ;;  %v14709_v27 = vld [vmem:[%s16447_s1 + $0x120] sm:$0xff]  }
  0xc7   : > { %13216 = vmatprep.mubr.bf16.mxu0 %v2085_v6  ;;  %13249 = vmatpush3.bf16.msra.mxu0 %v14682_v24  ;;  %v2615_v24 = vsel %vm2070_vm9, %v2612_v17, %v2614_v19  ;;  %v14705_v6 = vld [vmem:[#allocation2 + $0x48] sm:$0xff]  }
  0xc8   : > { %13250 = vmatprep.subr.bf16.mxu0 %v14685_v28  ;;  %v2620_v32 = vrot.slane %v14705_v6, 1 }
  0xca   : > { %v2621_v40 = vsel %vm2070_vm9, %v2618_v26, %v2620_v32 }
  0xcb   : > { %13251 = vmatpush3.bf16.msra.mxu0 %v14685_v28  ;;  %v14707_v28 = vld [vmem:[#allocation2 + $0x50] sm:$0xff]  }
  0xcc   : > { %13252 = vmatprep.subr.bf16.mxu0 %v14688_v31  ;;  %v2622_v34 = vrot.slane %v14707_v28, 1 }
  0xce   : > { %13217 = vmatmul.mubr.bf16.gmra.mrb[12].mxu0 %v2087_v35  ;;  %v14715_v35 = vld [vmem:[%s16447_s1 + $0x130] sm:$0xff]  }
  0xcf   : > { %13220 = vmatprep.mubr.bf16.mxu0 %v2089_v36  ;;  %13253 = vmatpush3.bf16.msra.mxu0 %v14688_v31  ;;  %v2619_v31 = vsel %vm2070_vm9, %v2616_v25, %v2618_v26  ;;  %v14708_v36 = vld [vmem:[#allocation2 + $0x58] sm:$0xff]  }
  0xd0   : > { %13254 = vmatprep.subr.bf16.mxu0 %v14692_v37  ;;  %v2624_v42 = vrot.slane %v14708_v36, 1 }
  0xd2   : > { %v2625_v47 = vsel %vm2070_vm9, %v2622_v34, %v2624_v42 }
  0xd3   : > { %13255 = vmatpush3.bf16.msra.mxu0 %v14692_v37  ;;  %v14710_v37 = vld [vmem:[#allocation2 + $0x60] sm:$0xff]  }
  0xd4   : > { %13292 = vmatprep.subr.bf16.mxu0 %v14697_v41 }
  0xd6   : > { %13221 = vmatmul.mubr.bf16.gmra.mrb[16].mxu0 %v2091_v43  ;;  %v2626_v43 = vrot.slane %v14710_v37, 1 }
  0xd7   : > { %13224 = vmatprep.mubr.bf16.mxu0 %v2093_v44  ;;  %v15458_v44 = vld [vmem:[%s16447_s1 + $0x140] sm:$0xff]  }
  0xd8   : > { %v2627_v48 = vsel %vm2070_vm9, %v2624_v42, %v2626_v43 }
  0xde   : > { %13225 = vmatmul.mubr.bf16.gmra.mrb[20].mxu0 %v2095_v49  ;;  %v2628_v49 = vrot.slane %v14711_v45, 1 }
  0xdf   : > { %13228 = vmatprep.mubr.bf16.mxu0 %v2097_v50  ;;  %v2630_v50 = vrot.slane %v14713_v46, 1 }
  0xe1   : > { %v2631_v57 = vsel %vm2070_vm9, %v2628_v49, %v2630_v50  ;;  %v2633_v5 = vsel %vm2070_vm9, %v2630_v50, %v2632_v58 }
  0xe6   : > { %13229 = vmatmul.mubr.bf16.gmra.mrb[24].mxu0 %v2099_v55  ;;  %v2629_v55 = vsel %vm2070_vm9, %v2626_v43, %v2628_v49  ;;  %v14727_v49 = vld [vmem:[%s16447_s1 + $0x148] sm:$0xff]  }
  0xe7   : > { %13232 = vmatprep.mubr.bf16.mxu0 %v2101_v56  ;;  %v14722_v56 = vld [vmem:[#allocation2 + $0x10] sm:$0xff]  }
  0xe8   : > { %v3149_v2 = vshrl.u32 %v14722_v56, 16  ;;  %v3152_v4 = vshll.u32 %v14722_v56, 16  ;;  %v14730_v56 = vld [vmem:[%s16447_s1 + $0x150] sm:$0xff]  }
  0xea   : > { %v3154_v16 = vrot.slane %v3152_v4, 2 }
  0xee   : > { %13233 = vmatmul.mubr.bf16.gmra.mrb[28].mxu0 %v2103_v62  ;;  %v14720_v62 = vld [vmem:[#allocation2 + $0x98] ss:$0 sps:$4 sm:$0x11]  }
  0xef   : > { %13236 = vmatprep.mubr.bf16.mxu0 %v2105_v63  ;;  %v3141_v63 = vshrl.u32 %v14721_v54, 16  ;;  %v2640_v11 = vrot.slane %v14720_v62, 1 }
  0xf6   : > { %13237 = vmatmul.mubr.bf16.gmra.mrb[32].mxu0 %v2107_v7  ;;  %v14725_v7 = vld [vmem:[#allocation2 + $0x20] sm:$0xff]  }
  0xf7   : > { %13256 = vmatprep.mubr.bf16.mxu0 %v2607_v8  ;;  %v2635_v8 = vsel %vm2070_vm9, %v2632_v58, %v2634_v59  ;;  %v3167_v17 = vshrl.u32 %v14725_v7, 16  ;;  %v3170_v19 = vshll.u32 %v14725_v7, 16  ;;  %v14732_v58 = vld [vmem:[#allocation2 + $0x48] sm:$0xff]   ;;  %v14736_v7 = vld [vmem:[%s16447_s1 + $0x160] sm:$0xff]  }
  0xf8   : > { %v3215_v1 = vshll.u32 %v14732_v58, 16 }
  0xf9   : > { %v3169_v28 = vrot.slane %v3167_v17, 1 }
  0xfe   : > { %13257 = vmatmul.mubr.bf16.vlgmr.msra.gmra.mrb[0].mxu0 %v2609_v14  ;;  %v3146_v14 = vrot.slane %v3144_v0, 2 }
  0xff   : > { %13293 = vmatpush3.bf16.msra.mxu0 %v14697_v41  ;;  %13260 = vmatprep.mubr.bf16.mxu0 %v2611_v15  ;;  %v2623_v41 = vsel %vm2070_vm9, %v2620_v32, %v2622_v34  ;;  %v3151_v15 = vrot.slane %v3149_v2, 1  ;;  %v14729_v32 = vld [vmem:[#allocation2 + $0x38] sm:$0xff]   ;;  %v2641_v34 = vsel %vm2070_vm9, %v2638_v9, %v2640_v11  ;;  %v3217_v11 = vrot.slane %v3215_v1, 2 }
 0x100   : > { %13294 = vmatprep.subr.bf16.mxu0 %v14700_v13  ;;  %v3197_v42 = vshll.u32 %v14729_v32, 16 }
 0x101   : > { %v3155_v6 = vor.u32 %v3154_v16, %v3151_v15  ;;  %v14737_v15 = vld [vmem:[#allocation2 + $0x60] sm:$0xff]   ;;  %v14739_v16 = vld [vmem:[%s16447_s1 + $0x168] sm:$0xff]  }
 0x102   : > { %v3199_v54 = vrot.slane %v3197_v42, 2 }
 0x103   : > { %13295 = vmatpush3.bf16.msra.mxu0 %v14700_v13  ;;  %v3143_v13 = vrot.slane %v3141_v63, 1  ;;  %v3212_v63 = vshrl.u32 %v14732_v58, 16 }
 0x104   : > { %13296 = vmatprep.subr.bf16.mxu0 %v14703_v20 }
 0x106   : > { %13261 = vmatmul.mubr.bf16.gmra.mrb[4].mxu0 %v2613_v23  ;;  %v3160_v23 = vrot.slane %v3158_v12, 1  ;;  %v14735_v12 = vld [vmem:[#allocation2 + $0x58] sm:$0xff]  }
 0x107   : > { %13264 = vmatprep.mubr.bf16.mxu0 %v2615_v24  ;;  %13297 = vmatpush3.bf16.msra.mxu0 %v14703_v20  ;;  %v14726_v20 = vld [vmem:[#allocation2 + $0x28] sm:$0xff]   ;;  %v3163_v24 = vrot.slane %v3161_v18, 2 }
 0x108   : > { %13298 = vmatprep.subr.bf16.mxu0 %v14706_v22  ;;  %v3176_v25 = vshrl.u32 %v14726_v20, 16  ;;  %v3179_v26 = vshll.u32 %v14726_v20, 16  ;;  %v3233_v20 = vshll.u32 %v14735_v12, 16 }
 0x10a   : > { %v3178_v37 = vrot.slane %v3176_v25, 1 }
 0x10b   : > { %13299 = vmatpush3.bf16.msra.mxu0 %v14706_v22  ;;  %v2639_v22 = vsel %vm2070_vm9, %v2636_v60, %v2638_v9  ;;  %v14734_v60 = vld [vmem:[#allocation2 + $0x50] sm:$0xff]   ;;  %v3214_v9 = vrot.slane %v3212_v63, 1 }
 0x10c   : > { %13300 = vmatprep.subr.bf16.mxu0 %v14709_v27  ;;  %v3221_v2 = vshrl.u32 %v14734_v60, 16 }
 0x10d   : > { %v3218_v17 = vor.u32 %v3217_v11, %v3214_v9  ;;  %v14747_v11 = vld [vmem:[#allocation2 + $0x98] ss:$0 sps:$4 sm:$0x33]  }
 0x10e   : > { %13265 = vmatmul.mubr.bf16.gmra.mrb[8].mxu0 %v2617_v30  ;;  %v3185_v30 = vshrl.u32 %v14728_v3, 16 }
 0x10f   : > { %13268 = vmatprep.mubr.bf16.mxu0 %v2619_v31  ;;  %13301 = vmatpush3.bf16.msra.mxu0 %v14709_v27  ;;  %v3147_v27 = vor.u32 %v3146_v14, %v3143_v13  ;;  %v3188_v31 = vshll.u32 %v14728_v3, 16  ;;  %v3223_v13 = vrot.slane %v3221_v2, 1  ;;  %v3239_v3 = vshrl.u32 %v14737_v15, 16 }
 0x110   : > { %13302 = vmatprep.subr.bf16.mxu0 %v14712_v29  ;;  %v3187_v45 = vrot.slane %v3185_v30, 1  ;;  %v14740_v30 = vld [vmem:[#allocation2 + $0x70] sm:$0xff]  }
 0x111   : > { %v3156_v36 = vsel %vm3139_vm10, %v3147_v27, %v3155_v6  ;;  %v3190_v46 = vrot.slane %v3188_v31, 2  ;;  %v14738_v27 = vld [vmem:[#allocation2 + $0x68] sm:$0xff]   ;;  %v14746_v31 = vld [vmem:[%s16447_s1 + $0x178] sm:$0xff]  }
 0x113   : > { %13303 = vmatpush3.bf16.msra.mxu0 %v14712_v29  ;;  %v3172_v29 = vrot.slane %v3170_v19, 2  ;;  %v3230_v19 = vshrl.u32 %v14735_v12, 16 }
 0x114   : > { %13304 = vmatprep.subr.bf16.mxu0 %v14715_v35 }
 0x115   : > { %v3173_v43 = vor.u32 %v3172_v29, %v3169_v28  ;;  %v3232_v25 = vrot.slane %v3230_v19, 1  ;;  %v3241_v28 = vrot.slane %v3239_v3, 1 }
 0x116   : > { %13269 = vmatmul.mubr.bf16.gmra.mrb[12].mxu0 %v2621_v40  ;;  %v3164_v40 = vor.u32 %v3163_v24, %v3160_v23  ;;  %v14742_v23 = vld [vmem:[%s16447_s1 + $0x170] sm:$0xff]  }
 0x117   : > { %13272 = vmatprep.mubr.bf16.mxu0 %v2623_v41  ;;  %13305 = vmatpush3.bf16.msra.mxu0 %v14715_v35  ;;  %v14731_v35 = vld [vmem:[#allocation2 + $0x40] sm:$0xff]   ;;  %v3194_v41 = vshrl.u32 %v14729_v32, 16 }
 0x118   : > { %13306 = vmatprep.subr.bf16.mxu0 %v14719_v39  ;;  %v3165_v50 = vsel %vm3139_vm10, %v3155_v6, %v3164_v40  ;;  %v3174_v51 = vsel %vm3139_vm10, %v3164_v40, %v3173_v43  ;;  %v15504_v40 = vld [vmem:[%s16447_s1 + $0x180] sm:$0xff]  }
 0x119   : > { %v3196_v53 = vrot.slane %v3194_v41, 1 }
 0x11b   : > { %13307 = vmatpush3.bf16.msra.mxu0 %v14719_v39  ;;  %v3181_v39 = vrot.slane %v3179_v26, 2  ;;  %v3200_v0 = vor.u32 %v3199_v54, %v3196_v53  ;;  %v3235_v26 = vrot.slane %v3233_v20, 2 }
 0x11c   : > { %13344 = vmatprep.subr.bf16.mxu0 %v15458_v44 }
 0x11d   : > { %v3182_v52 = vor.u32 %v3181_v39, %v3178_v37  ;;  %v3236_v32 = vor.u32 %v3235_v26, %v3232_v25  ;;  %v3257_v37 = vshrl.u32 %v14740_v30, 16  ;;  %v3260_v39 = vshll.u32 %v14740_v30, 16 }
 0x11e   : > { %13273 = vmatmul.mubr.bf16.gmra.mrb[16].mxu0 %v2625_v47  ;;  %v3203_v47 = vshrl.u32 %v14731_v35, 16 }
 0x11f   : > { %13276 = vmatprep.mubr.bf16.mxu0 %v2627_v48  ;;  %v3206_v48 = vshll.u32 %v14731_v35, 16  ;;  %v3251_v35 = vshll.u32 %v14738_v27, 16 }
 0x121   : > { %v3208_v59 = vrot.slane %v3206_v48, 2  ;;  %v3262_v48 = vrot.slane %v3260_v39, 2 }
 0x126   : > { %13277 = vmatmul.mubr.bf16.gmra.mrb[20].mxu0 %v2629_v55  ;;  %v3191_v55 = vor.u32 %v3190_v46, %v3187_v45  ;;  %v14741_v45 = vld [vmem:[#allocation2 + $0x78] sm:$0xff]  }
 0x127   : > { %13280 = vmatprep.mubr.bf16.mxu0 %v2631_v57  ;;  %v3205_v57 = vrot.slane %v3203_v47, 1  ;;  %v3259_v47 = vrot.slane %v3257_v37, 1  ;;  %v14755_v37 = vld [vmem:[#allocation2 + $0x30] sm:$0xff]  }
 0x128   : > { %v3192_v62 = vsel %vm3139_vm10, %v3182_v52, %v3191_v55 }
 0x129   : > { %v3209_v4 = vor.u32 %v3208_v59, %v3205_v57  ;;  %v3263_v53 = vor.u32 %v3262_v48, %v3259_v47  ;;  %v14744_v59 = vld [vmem:[#allocation2 + $0x88] sm:$0xff]   ;;  %v14758_v47 = vld [vmem:[#allocation2 + $0x40] sm:$0xff]  }
 0x12a   : > { %v3287_v1 = vshll.u32 %v14744_v59, 16 }
 0x12b   : > { %v3210_v18 = vsel %vm3139_vm10, %v3200_v0, %v3209_v4  ;;  %v3219_v24 = vsel %vm3139_vm10, %v3209_v4, %v3218_v17 }
 0x12c   : > { %v3289_v9 = vrot.slane %v3287_v1, 2  ;;  %v14778_v1 = vld [vmem:[%s16447_s1 + $0x1c0] sm:$0xff]  }
 0x12e   : > { %13281 = vmatmul.mubr.bf16.gmra.mrb[24].mxu0 %v2633_v5  ;;  %v3224_v5 = vshll.u32 %v14734_v60, 16 }
 0x12f   : > { %13284 = vmatprep.mubr.bf16.mxu0 %v2635_v8  ;;  %v3201_v8 = vsel %vm3139_vm10, %v3191_v55, %v3200_v0  ;;  %v3284_v0 = vshrl.u32 %v14744_v59, 16 }
 0x130   : > { %v3226_v14 = vrot.slane %v3224_v5, 2 }
 0x136   : > { %13285 = vmatmul.mubr.bf16.gmra.mrb[28].mxu0 %v2637_v21  ;;  %v3227_v21 = vor.u32 %v3226_v14, %v3223_v13 }
 0x137   : > { %13288 = vmatprep.mubr.bf16.mxu0 %v2639_v22  ;;  %v3242_v22 = vshll.u32 %v14737_v15, 16  ;;  %v3302_v15 = vshrl.u32 %v14747_v11, 16 }
 0x138   : > { %v3228_v6 = vsel %vm3139_vm10, %v3218_v17, %v3227_v21  ;;  %v3237_v41 = vsel %vm3139_vm10, %v3227_v21, %v3236_v32 }
 0x139   : > { %v3244_v29 = vrot.slane %v3242_v22, 2  ;;  %v3304_v20 = vrot.slane %v3302_v15, 1  ;;  %v14748_v22 = vld [vmem:[#allocation2 + $0x8] sm:$0xfc]  }
 0x13a   : > { %v3808_v25 = vrot.slane %v14748_v22, 2 }
 0x13e   : > { %13289 = vmatmul.mubr.bf16.gmra.mrb[32].mxu0 %v2641_v34  ;;  %v3248_v34 = vshrl.u32 %v14738_v27, 16 }
 0x13f   : > { %13308 = vmatprep.mubr.bf16.mxu0 %v3156_v36  ;;  %v3245_v36 = vor.u32 %v3244_v29, %v3241_v28  ;;  %v14752_v29 = vld [vmem:[#allocation2 + $0x20] sm:$0xff]  }
 0x140   : > { %v3250_v42 = vrot.slane %v3248_v34, 1  ;;  %v14753_v34 = vld [vmem:[#allocation2 + $0x28] sm:$0xff]  }
 0x141   : > { %v3246_v46 = vsel %vm3139_vm10, %v3236_v32, %v3245_v36  ;;  %v3815_v39 = vrot.slane %v14753_v34, 2 }
 0x146   : > { %13309 = vmatmul.mubr.bf16.vlgmr.msra.gmra.mrb[0].mxu0 %v3165_v50 }
 0x147   : > { %13345 = vmatpush3.bf16.msra.mxu0 %v15458_v44  ;;  %13312 = vmatprep.mubr.bf16.mxu0 %v3174_v51  ;;  %v3183_v44 = vsel %vm3139_vm10, %v3173_v43, %v3182_v52  ;;  %v3253_v43 = vrot.slane %v3251_v35, 2  ;;  %v3266_v51 = vshrl.u32 %v14741_v45, 16  ;;  %v3269_v52 = vshll.u32 %v14741_v45, 16  ;;  %v14756_v45 = vld [vmem:[#allocation2 + $0x38] sm:$0xff]  }
 0x148   : > { %13346 = vmatprep.subr.bf16.mxu0 %v14727_v49  ;;  %v3819_v48 = vrot.slane %v14756_v45, 2 }
 0x149   : > { %v3254_v50 = vor.u32 %v3253_v43, %v3250_v42  ;;  %v3268_v57 = vrot.slane %v3266_v51, 1  ;;  %v3271_v58 = vrot.slane %v3269_v52, 2  ;;  %v14757_v42 = vld [vmem:[%s16447_s1 + $0x190] sm:$0xff]   ;;  %v14759_v52 = vld [vmem:[#allocation2 + $0x48] sm:$0xff]  }
 0x14b   : > { %13347 = vmatpush3.bf16.msra.mxu0 %v14727_v49  ;;  %v14743_v49 = vld [vmem:[#allocation2 + $0x80] sm:$0xff]   ;;  %v3264_v60 = vsel %vm3139_vm10, %v3254_v50, %v3263_v53  ;;  %v3272_v63 = vor.u32 %v3271_v58, %v3268_v57  ;;  %v14769_v58 = vld [vmem:[%s16447_s1 + $0x1b0] sm:$0xff]  }
 0x14c   : > { %13348 = vmatprep.subr.bf16.mxu0 %v14730_v56  ;;  %v3275_v54 = vshrl.u32 %v14743_v49, 16  ;;  %v3278_v55 = vshll.u32 %v14743_v49, 16  ;;  %v3821_v49 = vrot.slane %v14758_v47, 2 }
 0x14e   : > { %13313 = vmatmul.mubr.bf16.gmra.mrb[4].mxu0 %v3183_v44  ;;  %v3280_v44 = vrot.slane %v3278_v55, 2  ;;  %v14766_v55 = vld [vmem:[%s16447_s1 + $0x1a8] sm:$0xff]  }
 0x14f   : > { %13316 = vmatprep.mubr.bf16.mxu0 %v3192_v62  ;;  %13349 = vmatpush3.bf16.msra.mxu0 %v14730_v56  ;;  %v3255_v56 = vsel %vm3139_vm10, %v3245_v36, %v3254_v50  ;;  %v14745_v62 = vld [vmem:[#allocation2 + $0x90] sm:$0xff]   ;;  %v14754_v36 = vld [vmem:[%s16447_s1 + $0x188] sm:$0xff]   ;;  %v14763_v50 = vld [vmem:[%s16447_s1 + $0x1a0] sm:$0xff]  }
 0x150   : > { %13350 = vmatprep.subr.bf16.mxu0 %v14733_v61  ;;  %v3293_v4 = vshrl.u32 %v14745_v62, 16  ;;  %v3296_v5 = vshll.u32 %v14745_v62, 16  ;;  %v14773_v62 = vld [vmem:[%s16447_s1 + $0x1b8] sm:$0xff]  }
 0x152   : > { %v3298_v13 = vrot.slane %v3296_v5, 2 }
 0x153   : > { %13351 = vmatpush3.bf16.msra.mxu0 %v14733_v61  ;;  %v3277_v61 = vrot.slane %v3275_v54, 1  ;;  %v14761_v54 = vld [vmem:[#allocation2 + $0x50] sm:$0xff]  }
 0x154   : > { %13352 = vmatprep.subr.bf16.mxu0 %v14736_v7  ;;  %v3825_v57 = vrot.slane %v14761_v54, 2 }
 0x155   : > { %v3281_v2 = vor.u32 %v3280_v44, %v3277_v61  ;;  %v14764_v44 = vld [vmem:[#allocation2 + $0x60] sm:$0xff]  }
 0x156   : > { %13317 = vmatmul.mubr.bf16.gmra.mrb[8].mxu0 %v3201_v8  ;;  %v3286_v8 = vrot.slane %v3284_v0, 1  ;;  %v3829_v0 = vrot.slane %v14764_v44, 2 }
 0x157   : > { %13320 = vmatprep.mubr.bf16.mxu0 %v3210_v18  ;;  %13353 = vmatpush3.bf16.msra.mxu0 %v14736_v7  ;;  %v3273_v7 = vsel %vm3139_vm10, %v3263_v53, %v3272_v63  ;;  %v3282_v12 = vsel %vm3139_vm10, %v3272_v63, %v3281_v2  ;;  %v3295_v18 = vrot.slane %v3293_v4, 1  ;;  %v3822_v53 = vsel %vm253_vm11, %v3819_v48, %v3821_v49  ;;  %v14765_v4 = vld [vmem:[#allocation2 + $0x68] sm:$0xff]  }
 0x158   : > { %13354 = vmatprep.subr.bf16.mxu0 %v14739_v16  ;;  %v3290_v14 = vor.u32 %v3289_v9, %v3286_v8  ;;  %v3831_v8 = vrot.slane %v14765_v4, 2 }
 0x159   : > { %v3299_v17 = vor.u32 %v3298_v13, %v3295_v18  ;;  %v14770_v13 = vld [vmem:[#allocation2 + $0x80] sm:$0xff]  }
 0x15a   : > { %v3291_v19 = vsel %vm3139_vm10, %v3281_v2, %v3290_v14  ;;  %v3837_v15 = vrot.slane %v14770_v13, 2 }
 0x15b   : > { %13355 = vmatpush3.bf16.msra.mxu0 %v14739_v16  ;;  %v3305_v16 = vshll.u32 %v14747_v11, 16  ;;  %v3300_v3 = vsel %vm3139_vm10, %v3290_v14, %v3299_v17  ;;  %v3832_v11 = vsel %vm253_vm11, %v3829_v0, %v3831_v8 }
 0x15c   : > { %13356 = vmatprep.subr.bf16.mxu0 %v14742_v23 }
 0x15d   : > { %v3307_v21 = vrot.slane %v3305_v16, 2 }
 0x15e   : > { %13321 = vmatmul.mubr.bf16.gmra.mrb[12].mxu0 %v3219_v24 }
 0x15f   : > { %13324 = vmatprep.mubr.bf16.mxu0 %v3228_v6  ;;  %13357 = vmatpush3.bf16.msra.mxu0 %v14742_v23  ;;  %v14749_v23 = vld [vmem:[#allocation2 + $0x10] sm:$0xff]   ;;  %v3308_v24 = vor.u32 %v3307_v21, %v3304_v20  ;;  %v14750_v6 = vld [vmem:[#allocation2 + $0x18] sm:$0xff]  }
 0x160   : > { %13358 = vmatprep.subr.bf16.mxu0 %v14746_v31  ;;  %v3809_v26 = vrot.slane %v14749_v23, 2  ;;  %v3811_v30 = vrot.slane %v14750_v6, 2  ;;  %v14772_v20 = vld [vmem:[#allocation2 + $0x90] sm:$0xff]   ;;  %v14774_v23 = vld [vmem:[#allocation2 + $0x98] ss:$0 sps:$4 sm:$0x33]  }
 0x161   : > { %v3309_v27 = vsel %vm3139_vm10, %v3299_v17, %v3308_v24  ;;  %v14771_v17 = vld [vmem:[#allocation2 + $0x88] sm:$0xff]  }
 0x162   : > { %v3810_v28 = vsel %vm253_vm11, %v3808_v25, %v3809_v26  ;;  %v3812_v32 = vsel %vm253_vm11, %v3809_v26, %v3811_v30  ;;  %v3839_v21 = vrot.slane %v14771_v17, 2  ;;  %v14775_v25 = vld [vmem:[#allocation2 + $0x10] sm:$0xfc]   ;;  %v14776_v26 = vld [vmem:[#allocation2 + $0x18] sm:$0xff]  }
 0x163   : > { %13359 = vmatpush3.bf16.msra.mxu0 %v14746_v31  ;;  %v3813_v31 = vrot.slane %v14752_v29, 2  ;;  %v4342_v6 = vrot.slane %v14775_v25, 2 }
 0x164   : > { %13396 = vmatprep.subr.bf16.mxu0 %v15504_v40  ;;  %v3840_v22 = vsel %vm253_vm11, %v3837_v15, %v3839_v21 }
 0x165   : > { %v3814_v35 = vsel %vm253_vm11, %v3811_v30, %v3813_v31  ;;  %v3816_v43 = vsel %vm253_vm11, %v3813_v31, %v3815_v39  ;;  %v14777_v30 = vld [vmem:[#allocation2 + $0x20] sm:$0xff]  }
 0x166   : > { %13325 = vmatmul.mubr.bf16.gmra.mrb[16].mxu0 %v3237_v41  ;;  %v3817_v41 = vrot.slane %v14755_v37, 2  ;;  %v4345_v34 = vrot.slane %v14777_v30, 2  ;;  %v14780_v37 = vld [vmem:[#allocation2 + $0x30] sm:$0xff]  }
 0x167   : > { %13328 = vmatprep.mubr.bf16.mxu0 %v3246_v46 }
 0x168   : > { %v3818_v46 = vsel %vm253_vm11, %v3815_v39, %v3817_v41  ;;  %v3820_v51 = vsel %vm253_vm11, %v3817_v41, %v3819_v48  ;;  %v14781_v41 = vld [vmem:[%s16447_s1 + $0x1c8] sm:$0xff]  }
 0x16e   : > { %13329 = vmatmul.mubr.bf16.gmra.mrb[20].mxu0 %v3255_v56  ;;  %v3823_v56 = vrot.slane %v14759_v52, 2 }
 0x16f   : > { %13332 = vmatprep.mubr.bf16.mxu0 %v3264_v60  ;;  %v14762_v60 = vld [vmem:[#allocation2 + $0x58] sm:$0xff]  }
 0x170   : > { %v3824_v59 = vsel %vm253_vm11, %v3821_v49, %v3823_v56  ;;  %v3826_v61 = vsel %vm253_vm11, %v3823_v56, %v3825_v57  ;;  %v3827_v63 = vrot.slane %v14762_v60, 2  ;;  %v14785_v49 = vld [vmem:[#allocation2 + $0x48] sm:$0xff]  }
 0x171   : > { %v4355_v52 = vrot.slane %v14785_v49, 2 }
 0x172   : > { %v3828_v2 = vsel %vm253_vm11, %v3825_v57, %v3827_v63  ;;  %v3830_v5 = vsel %vm253_vm11, %v3827_v63, %v3829_v0  ;;  %v14788_v57 = vld [vmem:[#allocation2 + $0x58] sm:$0xff]   ;;  %v14791_v0 = vld [vmem:[#allocation2 + $0x68] sm:$0xff]  }
 0x173   : > { %v4359_v60 = vrot.slane %v14788_v57, 2  ;;  %v4363_v4 = vrot.slane %v14791_v0, 2 }
 0x176   : > { %13333 = vmatmul.mubr.bf16.gmra.mrb[24].mxu0 %v3273_v7  ;;  %v14767_v7 = vld [vmem:[#allocation2 + $0x70] sm:$0xff]  }
 0x177   : > { %13336 = vmatprep.mubr.bf16.mxu0 %v3282_v12  ;;  %v3833_v9 = vrot.slane %v14767_v7, 2  ;;  %v14768_v12 = vld [vmem:[#allocation2 + $0x78] sm:$0xff]  }
 0x178   : > { %v3835_v14 = vrot.slane %v14768_v12, 2 }
 0x179   : > { %v3834_v18 = vsel %vm253_vm11, %v3831_v8, %v3833_v9  ;;  %v14792_v8 = vld [vmem:[#allocation2 + $0x70] sm:$0xff]  }
 0x17a   : > { %v3836_v16 = vsel %vm253_vm11, %v3833_v9, %v3835_v14  ;;  %v4365_v12 = vrot.slane %v14792_v8, 2 }
 0x17c   : > { %v4366_v13 = vsel %vm253_vm11, %v4363_v4, %v4365_v12 }
 0x17e   : > { %13337 = vmatmul.mubr.bf16.gmra.mrb[28].mxu0 %v3291_v19  ;;  %v3838_v19 = vsel %vm253_vm11, %v3835_v14, %v3837_v15  ;;  %v14795_v14 = vld [vmem:[#allocation2 + $0x80] sm:$0xff]  }
 0x17f   : > { %13340 = vmatprep.mubr.bf16.mxu0 %v3300_v3  ;;  %v3841_v3 = vrot.slane %v14772_v20, 2  ;;  %v4369_v17 = vrot.slane %v14795_v14, 2  ;;  %v14811_v14 = vld [vmem:[%s16447_s1 + $0x210] sm:$0xff]  }
 0x181   : > { %v3842_v24 = vsel %vm253_vm11, %v3839_v21, %v3841_v3  ;;  %v14798_v21 = vld [vmem:[#allocation2 + $0x90] sm:$0xff]  }
 0x182   : > { %v4373_v25 = vrot.slane %v14798_v21, 2  ;;  %v14813_v21 = vld [vmem:[#allocation2 + $0x50] sm:$0xff]  }
 0x186   : > { %13341 = vmatmul.mubr.bf16.gmra.mrb[32].mxu0 %v3309_v27  ;;  %v3843_v27 = vrot.slane %v14774_v23, 2  ;;  %v14802_v23 = vld [vmem:[#allocation2 + $0x10] sm:$0xfc]  }
 0x187   : > { %13360 = vmatprep.mubr.bf16.mxu0 %v3810_v28  ;;  %v4343_v28 = vrot.slane %v14776_v26, 2 }
 0x188   : > { %v3844_v29 = vsel %vm253_vm11, %v3841_v3, %v3843_v27  ;;  %v14799_v3 = vld [vmem:[#allocation2 + $0x98] sm:$0xff]   ;;  %v4878_v27 = vshrl.u32 %v14802_v23, 16 }
 0x189   : > { %v4344_v31 = vsel %vm253_vm11, %v4342_v6, %v4343_v28  ;;  %v4375_v26 = vrot.slane %v14799_v3, 2  ;;  %v4881_v6 = vshll.u32 %v14802_v23, 16  ;;  %v14814_v23 = vld [vmem:[%s16447_s1 + $0x218] sm:$0xff]  }
 0x18e   : > { %13361 = vmatmul.mubr.bf16.vlgmr.msra.gmra.mrb[0].mxu0 %v3812_v32  ;;  %v14779_v32 = vld [vmem:[#allocation2 + $0x28] sm:$0xff]  }
 0x18f   : > { %13397 = vmatpush3.bf16.msra.mxu0 %v15504_v40  ;;  %13364 = vmatprep.mubr.bf16.mxu0 %v3814_v35  ;;  %v14760_v40 = vld [vmem:[%s16447_s1 + $0x198] sm:$0xff]   ;;  %v4347_v35 = vrot.slane %v14779_v32, 2  ;;  %v14801_v32 = vld [vmem:[#allocation2 + $0xa0] ss:$0 sps:$4 sm:$0x33]  }
 0x190   : > { %13398 = vmatprep.subr.bf16.mxu0 %v14754_v36 }
 0x191   : > { %v4348_v39 = vsel %vm253_vm11, %v4345_v34, %v4347_v35 }
 0x193   : > { %13399 = vmatpush3.bf16.msra.mxu0 %v14754_v36  ;;  %v4346_v36 = vsel %vm253_vm11, %v4343_v28, %v4345_v34  ;;  %v14804_v34 = vld [vmem:[#allocation2 + $0x20] sm:$0xff]  }
 0x194   : > { %13400 = vmatprep.subr.bf16.mxu0 %v14757_v42 }
 0x196   : > { %13365 = vmatmul.mubr.bf16.gmra.mrb[4].mxu0 %v3816_v43  ;;  %v4349_v43 = vrot.slane %v14780_v37, 2 }
 0x197   : > { %13368 = vmatprep.mubr.bf16.mxu0 %v3818_v46  ;;  %13401 = vmatpush3.bf16.msra.mxu0 %v14757_v42  ;;  %v14782_v42 = vld [vmem:[#allocation2 + $0x38] sm:$0xff]   ;;  %v14784_v46 = vld [vmem:[%s16447_s1 + $0x1d0] sm:$0xff]  }
 0x198   : > { %13402 = vmatprep.subr.bf16.mxu0 %v14760_v40  ;;  %v4351_v45 = vrot.slane %v14782_v42, 2  ;;  %v4350_v47 = vsel %vm253_vm11, %v4347_v35, %v4349_v43  ;;  %v4880_v35 = vrot.slane %v4878_v27, 2  ;;  %v4377_v42 = vrot.slane %v14801_v32, 2  ;;  %v14817_v32 = vld [vmem:[%s16447_s1 + $0x220] sm:$0xff]  }
 0x19a   : > { %v4352_v48 = vsel %vm253_vm11, %v4349_v43, %v4351_v45  ;;  %v4895_v43 = vshrl.u32 %v14804_v34, 16  ;;  %v4378_v49 = vsel %vm253_vm11, %v4375_v26, %v4377_v42 }
 0x19b   : > { %13403 = vmatpush3.bf16.msra.mxu0 %v14760_v40  ;;  %v14783_v40 = vld [vmem:[#allocation2 + $0x40] sm:$0xff]  }
 0x19c   : > { %13404 = vmatprep.subr.bf16.mxu0 %v14763_v50 }
 0x19e   : > { %13369 = vmatmul.mubr.bf16.gmra.mrb[8].mxu0 %v3820_v51  ;;  %v4353_v51 = vrot.slane %v14783_v40, 2 }
 0x19f   : > { %13372 = vmatprep.mubr.bf16.mxu0 %v3822_v53  ;;  %13405 = vmatpush3.bf16.msra.mxu0 %v14763_v50  ;;  %v14787_v50 = vld [vmem:[%s16447_s1 + $0x1d8] sm:$0xff]   ;;  %v14790_v53 = vld [vmem:[%s16447_s1 + $0x1e0] sm:$0xff]  }
 0x1a0   : > { %13406 = vmatprep.subr.bf16.mxu0 %v14766_v55  ;;  %v4354_v54 = vsel %vm253_vm11, %v4351_v45, %v4353_v51  ;;  %v4356_v56 = vsel %vm253_vm11, %v4353_v51, %v4355_v52  ;;  %v4898_v45 = vshll.u32 %v14804_v34, 16 }
 0x1a2   : > { %v4900_v51 = vrot.slane %v4898_v45, 3  ;;  %v14820_v45 = vld [vmem:[%s16447_s1 + $0x228] sm:$0xff]  }
 0x1a3   : > { %13407 = vmatpush3.bf16.msra.mxu0 %v14766_v55  ;;  %v14786_v55 = vld [vmem:[#allocation2 + $0x50] sm:$0xff]  }
 0x1a4   : > { %13408 = vmatprep.subr.bf16.mxu0 %v14769_v58 }
 0x1a6   : > { %13373 = vmatmul.mubr.bf16.gmra.mrb[12].mxu0 %v3824_v59  ;;  %v4357_v59 = vrot.slane %v14786_v55, 2 }
 0x1a7   : > { %13376 = vmatprep.mubr.bf16.mxu0 %v3826_v61  ;;  %13409 = vmatpush3.bf16.msra.mxu0 %v14769_v58  ;;  %v14793_v58 = vld [vmem:[%s16447_s1 + $0x1e8] sm:$0xff]   ;;  %v14796_v61 = vld [vmem:[%s16447_s1 + $0x1f0] sm:$0xff]  }
 0x1a8   : > { %13410 = vmatprep.subr.bf16.mxu0 %v14773_v62  ;;  %v4358_v44 = vsel %vm253_vm11, %v4355_v52, %v4357_v59  ;;  %v4360_v63 = vsel %vm253_vm11, %v4357_v59, %v4359_v60  ;;  %v14807_v52 = vld [vmem:[#allocation2 + $0x30] sm:$0xff]  }
 0x1a9   : > { %v4916_v59 = vshll.u32 %v14807_v52, 16 }
 0x1ab   : > { %13411 = vmatpush3.bf16.msra.mxu0 %v14773_v62  ;;  %v14789_v62 = vld [vmem:[#allocation2 + $0x60] sm:$0xff]   ;;  %v4918_v0 = vrot.slane %v4916_v59, 3  ;;  %v14821_v59 = vld [vmem:[#allocation2 + $0x78] sm:$0xff]  }
 0x1ac   : > { %13448 = vmatprep.subr.bf16.mxu0 %v14778_v1 }
 0x1ae   : > { %13377 = vmatmul.mubr.bf16.gmra.mrb[16].mxu0 %v3828_v2  ;;  %v4361_v2 = vrot.slane %v14789_v62, 2 }
 0x1af   : > { %13380 = vmatprep.mubr.bf16.mxu0 %v3830_v5  ;;  %v15592_v5 = vld [vmem:[%s16447_s1 + $0x200] sm:$0xff]  }
 0x1b0   : > { %v4362_v7 = vsel %vm253_vm11, %v4359_v60, %v4361_v2  ;;  %v4364_v9 = vsel %vm253_vm11, %v4361_v2, %v4363_v4  ;;  %v14808_v4 = vld [vmem:[%s16447_s1 + $0x208] sm:$0xff]  }
 0x1b6   : > { %13381 = vmatmul.mubr.bf16.gmra.mrb[20].mxu0 %v3832_v11  ;;  %v14794_v11 = vld [vmem:[#allocation2 + $0x78] sm:$0xff]  }
 0x1b7   : > { %13384 = vmatprep.mubr.bf16.mxu0 %v3834_v18  ;;  %v4367_v18 = vrot.slane %v14794_v11, 2 }
 0x1b9   : > { %v4368_v15 = vsel %vm253_vm11, %v4365_v12, %v4367_v18  ;;  %v4370_v20 = vsel %vm253_vm11, %v4367_v18, %v4369_v17 }
 0x1be   : > { %13385 = vmatmul.mubr.bf16.gmra.mrb[24].mxu0 %v3836_v16  ;;  %v14797_v16 = vld [vmem:[#allocation2 + $0x88] sm:$0xff]  }
 0x1bf   : > { %13388 = vmatprep.mubr.bf16.mxu0 %v3838_v19  ;;  %v4371_v19 = vrot.slane %v14797_v16, 2 }
 0x1c1   : > { %v4374_v30 = vsel %vm253_vm11, %v4371_v19, %v4373_v25 }
 0x1c6   : > { %13389 = vmatmul.mubr.bf16.gmra.mrb[28].mxu0 %v3840_v22  ;;  %v4372_v22 = vsel %vm253_vm11, %v4369_v17, %v4371_v19 }
 0x1c7   : > { %13392 = vmatprep.mubr.bf16.mxu0 %v3842_v24  ;;  %v14803_v24 = vld [vmem:[#allocation2 + $0x18] sm:$0xff]  }
 0x1c8   : > { %v4886_v28 = vshrl.u32 %v14803_v24, 16 }
 0x1ca   : > { %v4888_v37 = vrot.slane %v4886_v28, 2  ;;  %v4952_v28 = vshll.u32 %v14813_v21, 16 }
 0x1ce   : > { %13393 = vmatmul.mubr.bf16.gmra.mrb[32].mxu0 %v3844_v29  ;;  %v4889_v29 = vshll.u32 %v14803_v24, 16  ;;  %v14815_v24 = vld [vmem:[#allocation2 + $0x58] sm:$0xff]  }
 0x1cf   : > { %13412 = vmatprep.mubr.bf16.mxu0 %v4344_v31  ;;  %v4376_v31 = vsel %vm253_vm11, %v4373_v25, %v4375_v26  ;;  %v14848_v25 = vld [vmem:[%s16448_s2] sm:$0xff]   ;;  %v14849_v26 = vld [vmem:[%s16448_s2 + $0x8] sm:$0xff]  }
 0x1d0   : > { %13552 = vmatprep.subr.bf16.mxu1 %v14848_v25 }
 0x1d1   : > { %13553 = vmatpush3.bf16.msra.mxu1 %v14848_v25  ;;  %v14826_v25 = vld [vmem:[#allocation2 + $0x98] sm:$0xff]  }
 0x1d2   : > { %13554 = vmatprep.subr.bf16.mxu1 %v14849_v26 }
 0x1d5   : > { %13555 = vmatpush3.bf16.msra.mxu1 %v14849_v26 }
 0x1d6   : > { %13413 = vmatmul.mubr.bf16.vlgmr.msra.gmra.mrb[0].mxu0 %v4346_v36  ;;  %v4883_v36 = vrot.slane %v4881_v6, 3  ;;  %v4949_v6 = vshrl.u32 %v14813_v21, 16 }
 0x1d7   : > { %13449 = vmatpush3.bf16.msra.mxu0 %v14778_v1  ;;  %13416 = vmatprep.mubr.bf16.mxu0 %v4348_v39  ;;  %v14800_v1 = vld [vmem:[%s16447_s1 + $0x1f8] sm:$0xff]   ;;  %v4891_v39 = vrot.slane %v4889_v29, 3 }
 0x1d8   : > { %13450 = vmatprep.subr.bf16.mxu0 %v14781_v41 }
 0x1db   : > { %13451 = vmatpush3.bf16.msra.mxu0 %v14781_v41  ;;  %v14806_v41 = vld [vmem:[#allocation2 + $0x28] sm:$0xff]  }
 0x1dc   : > { %13452 = vmatprep.subr.bf16.mxu0 %v14784_v46  ;;  %v4904_v40 = vshrl.u32 %v14806_v41, 16 }
 0x1de   : > { %13417 = vmatmul.mubr.bf16.gmra.mrb[4].mxu0 %v4350_v47  ;;  %v4892_v47 = vor.u32 %v4891_v39, %v4888_v37  ;;  %v14816_v37 = vld [vmem:[#allocation2 + $0x60] sm:$0xff]  }
 0x1df   : > { %13420 = vmatprep.mubr.bf16.mxu0 %v4352_v48  ;;  %13453 = vmatpush3.bf16.msra.mxu0 %v14784_v46  ;;  %v4884_v46 = vor.u32 %v4883_v36, %v4880_v35  ;;  %v4907_v48 = vshll.u32 %v14806_v41, 16  ;;  %v4951_v35 = vrot.slane %v4949_v6, 2  ;;  %v4954_v36 = vrot.slane %v4952_v28, 3 }
 0x1e0   : > { %13454 = vmatprep.subr.bf16.mxu0 %v14787_v50 }
 0x1e1   : > { %v4909_v55 = vrot.slane %v4907_v48, 3 }
 0x1e3   : > { %13455 = vmatpush3.bf16.msra.mxu0 %v14787_v50  ;;  %v4897_v50 = vrot.slane %v4895_v43, 2  ;;  %v14818_v43 = vld [vmem:[#allocation2 + $0x68] sm:$0xff]  }
 0x1e4   : > { %13456 = vmatprep.subr.bf16.mxu0 %v14790_v53 }
 0x1e5   : > { %v4901_v57 = vor.u32 %v4900_v51, %v4897_v50  ;;  %v4979_v50 = vshll.u32 %v14818_v43, 16  ;;  %v14823_v51 = vld [vmem:[%s16447_s1 + $0x230] sm:$0xff]  }
 0x1e6   : > { %13421 = vmatmul.mubr.bf16.gmra.mrb[8].mxu0 %v4354_v54  ;;  %v4906_v54 = vrot.slane %v4904_v40, 2  ;;  %v4970_v40 = vshll.u32 %v14816_v37, 16 }
 0x1e7   : > { %13424 = vmatprep.mubr.bf16.mxu0 %v4356_v56  ;;  %13457 = vmatpush3.bf16.msra.mxu0 %v14790_v53  ;;  %v4893_v53 = vsel %vm4876_vm12, %v4884_v46, %v4892_v47  ;;  %v14809_v56 = vld [vmem:[#allocation2 + $0x38] sm:$0xff]   ;;  %v4902_v62 = vsel %vm4876_vm12, %v4892_v47, %v4901_v57  ;;  %v4955_v46 = vor.u32 %v4954_v36, %v4951_v35  ;;  %v4967_v47 = vshrl.u32 %v14816_v37, 16  ;;  %v14828_v35 = vld [vmem:[#allocation2 + $0xa0] ss:$0 sps:$4 sm:$0x77]  }
 0x1e8   : > { %13458 = vmatprep.subr.bf16.mxu0 %v14793_v58  ;;  %v4910_v60 = vor.u32 %v4909_v55, %v4906_v54  ;;  %v4972_v54 = vrot.slane %v4970_v40, 3  ;;  %v14819_v55 = vld [vmem:[#allocation2 + $0x70] sm:$0xff]  }
 0x1ea   : > { %v4911_v2 = vsel %vm4876_vm12, %v4901_v57, %v4910_v60 }
 0x1eb   : > { %13459 = vmatpush3.bf16.msra.mxu0 %v14793_v58  ;;  %v4913_v58 = vshrl.u32 %v14807_v52, 16 }
 0x1ec   : > { %13460 = vmatprep.subr.bf16.mxu0 %v14796_v61 }
 0x1ee   : > { %13425 = vmatmul.mubr.bf16.gmra.mrb[12].mxu0 %v4358_v44  ;;  %v4925_v44 = vshll.u32 %v14809_v56, 16 }
 0x1ef   : > { %13428 = vmatprep.mubr.bf16.mxu0 %v4360_v63  ;;  %13461 = vmatpush3.bf16.msra.mxu0 %v14796_v61  ;;  %v4922_v61 = vshrl.u32 %v14809_v56, 16  ;;  %v4915_v63 = vrot.slane %v4913_v58, 2  ;;  %v4981_v58 = vrot.slane %v4979_v50, 3  ;;  %v14830_v50 = vld [vmem:[#allocation2 + $0x18] sm:$0xff]  }
 0x1f0   : > { %13462 = vmatprep.subr.bf16.mxu0 %v14800_v1  ;;  %v4927_v8 = vrot.slane %v4925_v44, 3  ;;  %v4985_v44 = vshrl.u32 %v14819_v55, 16 }
 0x1f1   : > { %v4919_v11 = vor.u32 %v4918_v0, %v4915_v63  ;;  %v4994_v0 = vshrl.u32 %v14821_v59, 16 }
 0x1f3   : > { %13463 = vmatpush3.bf16.msra.mxu0 %v14800_v1  ;;  %v14810_v1 = vld [vmem:[#allocation2 + $0x40] sm:$0xff]   ;;  %v4920_v17 = vsel %vm4876_vm12, %v4910_v60, %v4919_v11  ;;  %v14827_v60 = vld [vmem:[%s16447_s1 + $0x238] sm:$0xff]  }
 0x1f4   : > { %13500 = vmatprep.subr.bf16.mxu0 %v15592_v5  ;;  %v4931_v12 = vshrl.u32 %v14810_v1, 16  ;;  %v4934_v18 = vshll.u32 %v14810_v1, 16  ;;  %v4997_v1 = vshll.u32 %v14821_v59, 16 }
 0x1f6   : > { %13429 = vmatmul.mubr.bf16.gmra.mrb[16].mxu0 %v4362_v7  ;;  %v4924_v7 = vrot.slane %v4922_v61, 2  ;;  %v4933_v19 = vrot.slane %v4931_v12, 2  ;;  %v4999_v12 = vrot.slane %v4997_v1, 3 }
 0x1f7   : > { %13432 = vmatprep.mubr.bf16.mxu0 %v4364_v9  ;;  %v14812_v9 = vld [vmem:[#allocation2 + $0x48] sm:$0xff]  }
 0x1f8   : > { %v4943_v16 = vshll.u32 %v14812_v9, 16 }
 0x1fe   : > { %13433 = vmatmul.mubr.bf16.gmra.mrb[20].mxu0 %v4366_v13  ;;  %v4928_v13 = vor.u32 %v4927_v8, %v4924_v7  ;;  %v14822_v8 = vld [vmem:[#allocation2 + $0x80] sm:$0xff]  }
 0x1ff   : > { %13436 = vmatprep.mubr.bf16.mxu0 %v4368_v15  ;;  %v4940_v15 = vshrl.u32 %v14812_v9, 16 }
 0x201   : > { %v4942_v3 = vrot.slane %v4940_v15, 2  ;;  %v5006_v15 = vshll.u32 %v14822_v8, 16 }
 0x206   : > { %13437 = vmatmul.mubr.bf16.gmra.mrb[24].mxu0 %v4370_v20  ;;  %v4936_v20 = vrot.slane %v4934_v18, 3  ;;  %v14824_v18 = vld [vmem:[#allocation2 + $0x88] sm:$0xff]  }
 0x207   : > { %13440 = vmatprep.mubr.bf16.mxu0 %v4372_v22  ;;  %v4945_v22 = vrot.slane %v4943_v16, 3 }
 0x208   : > { %v4937_v27 = vor.u32 %v4936_v20, %v4933_v19  ;;  %v5015_v19 = vshll.u32 %v14824_v18, 16 }
 0x209   : > { %v4946_v29 = vor.u32 %v4945_v22, %v4942_v3  ;;  %v14825_v3 = vld [vmem:[#allocation2 + $0x90] sm:$0xff]  }
 0x20a   : > { %v4938_v34 = vsel %vm4876_vm12, %v4928_v13, %v4937_v27  ;;  %v5024_v6 = vshll.u32 %v14825_v3, 16 }
 0x20b   : > { %v4947_v39 = vsel %vm4876_vm12, %v4937_v27, %v4946_v29  ;;  %v4956_v52 = vsel %vm4876_vm12, %v4946_v29, %v4955_v46  ;;  %v5021_v27 = vshrl.u32 %v14825_v3, 16  ;;  %v5030_v29 = vshrl.u32 %v14826_v25, 16 }
 0x20d   : > { %v5032_v37 = vrot.slane %v5030_v29, 2  ;;  %v14844_v29 = vld [vmem:[#allocation2 + $0x88] sm:$0xff]  }
 0x20e   : > { %13441 = vmatmul.mubr.bf16.gmra.mrb[28].mxu0 %v4374_v30  ;;  %v4958_v30 = vshrl.u32 %v14815_v24, 16 }
 0x20f   : > { %13444 = vmatprep.mubr.bf16.mxu0 %v4376_v31  ;;  %v4961_v31 = vshll.u32 %v14815_v24, 16  ;;  %v5017_v24 = vrot.slane %v5015_v19, 3 }
 0x210   : > { %v4960_v41 = vrot.slane %v4958_v30, 2  ;;  %v5033_v30 = vshll.u32 %v14826_v25, 16 }
 0x211   : > { %v4963_v42 = vrot.slane %v4961_v31, 3 }
 0x213   : > { %v4964_v48 = vor.u32 %v4963_v42, %v4960_v41  ;;  %v5039_v42 = vshrl.u32 %v14828_v35, 16 }
 0x215   : > { %v4965_v56 = vsel %vm4876_vm12, %v4955_v46, %v4964_v48 }
 0x216   : > { %13445 = vmatmul.mubr.bf16.gmra.mrb[32].mxu0 %v4378_v49  ;;  %v4976_v49 = vshrl.u32 %v14818_v43, 16  ;;  %v5042_v43 = vshll.u32 %v14828_v35, 16 }
 0x217   : > { %13464 = vmatprep.mubr.bf16.mxu0 %v4893_v53  ;;  %v4969_v53 = vrot.slane %v4967_v47, 2  ;;  %v5041_v47 = vrot.slane %v5039_v42, 2  ;;  %v14847_v42 = vld [vmem:[#allocation2 + $0xa0] ss:$0 sps:$4 sm:$0x77]  }
 0x218   : > { %v4978_v57 = vrot.slane %v4976_v49, 2  ;;  %v5044_v40 = vrot.slane %v5042_v43, 3  ;;  %v14829_v49 = vld [vmem:[#allocation2 + $0x10] sm:$0xf8]  }
 0x219   : > { %v4973_v61 = vor.u32 %v4972_v54, %v4969_v53  ;;  %v5546_v53 = vrot.slane %v14830_v50, 3  ;;  %v14854_v50 = vld [vmem:[%s16448_s2 + $0x30] sm:$0xff]  }
 0x21a   : > { %v4982_v63 = vor.u32 %v4981_v58, %v4978_v57  ;;  %v14832_v57 = vld [vmem:[#allocation2 + $0x28] sm:$0xff]  }
 0x21b   : > { %v5550_v59 = vrot.slane %v14832_v57, 3 }
 0x21c   : > { %v4983_v9 = vsel %vm4876_vm12, %v4973_v61, %v4982_v63 }
 0x21e   : > { %13465 = vmatmul.mubr.bf16.vlgmr.msra.gmra.mrb[0].mxu0 %v4902_v62  ;;  %v4988_v62 = vshll.u32 %v14819_v55, 16  ;;  %v14831_v55 = vld [vmem:[#allocation2 + $0x20] sm:$0xff]  }
 0x21f   : > { %13501 = vmatpush3.bf16.msra.mxu0 %v15592_v5  ;;  %13468 = vmatprep.mubr.bf16.mxu0 %v4911_v2  ;;  %v4929_v5 = vsel %vm4876_vm12, %v4919_v11, %v4928_v13  ;;  %v4974_v2 = vsel %vm4876_vm12, %v4964_v48, %v4973_v61  ;;  %v4996_v11 = vrot.slane %v4994_v0, 2  ;;  %v5548_v58 = vrot.slane %v14831_v55, 3  ;;  %v14833_v61 = vld [vmem:[#allocation2 + $0x30] sm:$0xff]  }
 0x220   : > { %13502 = vmatprep.subr.bf16.mxu0 %v14808_v4  ;;  %v4990_v7 = vrot.slane %v4988_v62, 3  ;;  %v14834_v62 = vld [vmem:[#allocation2 + $0x38] sm:$0xff]  }
 0x221   : > { %v5000_v16 = vor.u32 %v4999_v12, %v4996_v11  ;;  %v5554_v0 = vrot.slane %v14834_v62, 3  ;;  %v14837_v12 = vld [vmem:[#allocation2 + $0x50] sm:$0xff]   ;;  %v15695_v62 = vld [vmem:[%s16449_s3] ss:$0 sm:$0xff] }
 0x223   : > { %13503 = vmatpush3.bf16.msra.mxu0 %v14808_v4  ;;  %v4987_v4 = vrot.slane %v4985_v44, 2  ;;  %v5551_v44 = vsel %vm5544_vm13, %v5548_v58, %v5550_v59 }
 0x224   : > { %13504 = vmatprep.subr.bf16.mxu0 %v14811_v14 }
 0x225   : > { %v4991_v13 = vor.u32 %v4990_v7, %v4987_v4  ;;  %v14836_v7 = vld [vmem:[#allocation2 + $0x48] sm:$0xff]  }
 0x226   : > { %13469 = vmatmul.mubr.bf16.gmra.mrb[4].mxu0 %v4920_v17  ;;  %v5012_v17 = vshrl.u32 %v14824_v18, 16 }
 0x227   : > { %13472 = vmatprep.mubr.bf16.mxu0 %v4929_v5  ;;  %13505 = vmatpush3.bf16.msra.mxu0 %v14811_v14  ;;  %v5003_v14 = vshrl.u32 %v14822_v8, 16  ;;  %v4992_v20 = vsel %vm4876_vm12, %v4982_v63, %v4991_v13  ;;  %v5008_v5 = vrot.slane %v5006_v15, 3  ;;  %v5001_v22 = vsel %vm4876_vm12, %v4991_v13, %v5000_v16  ;;  %v14838_v13 = vld [vmem:[#allocation2 + $0x58] sm:$0xff]  }
 0x228   : > { %13506 = vmatprep.subr.bf16.mxu0 %v14814_v23  ;;  %v5552_v63 = vrot.slane %v14833_v61, 3  ;;  %v5562_v15 = vrot.slane %v14838_v13, 3 }
 0x229   : > { %v5005_v21 = vrot.slane %v5003_v14, 2  ;;  %v5560_v14 = vrot.slane %v14837_v12, 3 }
 0x22a   : > { %v5553_v1 = vsel %vm5544_vm13, %v5550_v59, %v5552_v63  ;;  %v5555_v4 = vsel %vm5544_vm13, %v5552_v63, %v5554_v0 }
 0x22b   : > { %13507 = vmatpush3.bf16.msra.mxu0 %v14814_v23  ;;  %v5014_v23 = vrot.slane %v5012_v17, 2  ;;  %v5009_v26 = vor.u32 %v5008_v5, %v5005_v21  ;;  %v14839_v17 = vld [vmem:[#allocation2 + $0x60] sm:$0xff]   ;;  %v5563_v19 = vsel %vm5544_vm13, %v5560_v14, %v5562_v15 }
 0x22c   : > { %13508 = vmatprep.subr.bf16.mxu0 %v14817_v32  ;;  %v5564_v21 = vrot.slane %v14839_v17, 3 }
 0x22d   : > { %v5018_v28 = vor.u32 %v5017_v24, %v5014_v23  ;;  %v5010_v31 = vsel %vm4876_vm12, %v5000_v16, %v5009_v26  ;;  %v14842_v24 = vld [vmem:[#allocation2 + $0x78] sm:$0xff]  }
 0x22e   : > { %13473 = vmatmul.mubr.bf16.gmra.mrb[8].mxu0 %v4938_v34  ;;  %v5026_v34 = vrot.slane %v5024_v6, 3  ;;  %v5565_v3 = vsel %vm5544_vm13, %v5562_v15, %v5564_v21  ;;  %v14843_v6 = vld [vmem:[#allocation2 + $0x80] sm:$0xff]  }
 0x22f   : > { %13476 = vmatprep.mubr.bf16.mxu0 %v4947_v39  ;;  %13509 = vmatpush3.bf16.msra.mxu0 %v14817_v32  ;;  %v5023_v32 = vrot.slane %v5021_v27, 2  ;;  %v5019_v36 = vsel %vm4876_vm12, %v5009_v26, %v5018_v28  ;;  %v5035_v39 = vrot.slane %v5033_v30, 3  ;;  %v5570_v26 = vrot.slane %v14842_v24, 3 }
 0x230   : > { %13510 = vmatprep.subr.bf16.mxu0 %v14820_v45  ;;  %v5572_v30 = vrot.slane %v14843_v6, 3 }
 0x231   : > { %v5027_v41 = vor.u32 %v5026_v34, %v5023_v32  ;;  %v14845_v34 = vld [vmem:[#allocation2 + $0x90] sm:$0xff]  }
 0x232   : > { %v5573_v32 = vsel %vm5544_vm13, %v5570_v26, %v5572_v30 }
 0x233   : > { %13511 = vmatpush3.bf16.msra.mxu0 %v14820_v45  ;;  %v5036_v45 = vor.u32 %v5035_v39, %v5032_v37  ;;  %v5028_v46 = vsel %vm4876_vm12, %v5018_v28, %v5027_v41  ;;  %v5576_v37 = vrot.slane %v14845_v34, 3  ;;  %v6588_v34 = vld [vmem:[#allocation2 + $0x8] sm:$0xe] }
 0x234   : > { %13512 = vmatprep.subr.bf16.mxu0 %v14823_v51 }
 0x235   : > { %v5037_v48 = vsel %vm4876_vm12, %v5027_v41, %v5036_v45 }
 0x236   : > { %13477 = vmatmul.mubr.bf16.gmra.mrb[12].mxu0 %v4956_v52  ;;  %v5545_v52 = vrot.slane %v14829_v49, 3  ;;  %v14853_v49 = vld [vmem:[%s16448_s2 + $0x28] sm:$0xff]  }
 0x237   : > { %13480 = vmatprep.mubr.bf16.mxu0 %v4965_v56  ;;  %13513 = vmatpush3.bf16.msra.mxu0 %v14823_v51  ;;  %v5045_v51 = vor.u32 %v5044_v40, %v5041_v47  ;;  %v14850_v47 = vld [vmem:[%s16448_s2 + $0x10] sm:$0xff]   ;;  %v14851_v40 = vld [vmem:[%s16448_s2 + $0x18] sm:$0xff]  }
 0x238   : > { %13514 = vmatprep.subr.bf16.mxu0 %v14827_v60  ;;  %v5547_v56 = vsel %vm5544_vm13, %v5545_v52, %v5546_v53  ;;  %13556 = vmatprep.subr.bf16.mxu1 %v14850_v47  ;;  %v14856_v52 = vld [vmem:[#allocation2] sm:$0xff]  }
 0x239   : > { %v5046_v54 = vsel %vm4876_vm12, %v5036_v45, %v5045_v51  ;;  %v5580_v45 = vrot.slane %v14847_v42, 3  ;;  %13557 = vmatpush3.bf16.msra.mxu1 %v14850_v47  ;;  %v14855_v51 = vld [vmem:[%s16448_s2 + $0x38] sm:$0xff]   ;;  %13568 = vmatprep.mubr.bf16.mxu1 %v14856_v52 }
 0x23a   : > { %13558 = vmatprep.subr.bf16.mxu1 %v14851_v40 }
 0x23b   : > { %13515 = vmatpush3.bf16.msra.mxu0 %v14827_v60  ;;  %v5549_v60 = vsel %vm5544_vm13, %v5546_v53, %v5548_v58  ;;  %v15689_v53 = vld [vmem:[%s16448_s2 + $0x40] sm:$0xff]  }
 0x23d   : > { %13559 = vmatpush3.bf16.msra.mxu1 %v14851_v40 }
 0x23e   : > { %13481 = vmatmul.mubr.bf16.gmra.mrb[16].mxu0 %v4974_v2  ;;  %v14835_v2 = vld [vmem:[#allocation2 + $0x40] sm:$0xff]  }
 0x23f   : > { %13484 = vmatprep.mubr.bf16.mxu0 %v4983_v9  ;;  %v5556_v8 = vrot.slane %v14835_v2, 3  ;;  %v5558_v9 = vrot.slane %v14836_v7, 3 }
 0x241   : > { %v5557_v11 = vsel %vm5544_vm13, %v5554_v0, %v5556_v8  ;;  %v5559_v18 = vsel %vm5544_vm13, %v5556_v8, %v5558_v9  ;;  %v5561_v16 = vsel %vm5544_vm13, %v5558_v9, %v5560_v14 }
 0x246   : > { %13485 = vmatmul.mubr.bf16.gmra.mrb[20].mxu0 %v4992_v20  ;;  %v14840_v20 = vld [vmem:[#allocation2 + $0x68] sm:$0xff]  }
 0x247   : > { %13488 = vmatprep.mubr.bf16.mxu0 %v5001_v22  ;;  %v5566_v5 = vrot.slane %v14840_v20, 3  ;;  %v14841_v22 = vld [vmem:[#allocation2 + $0x70] sm:$0xff]  }
 0x248   : > { %v5568_v25 = vrot.slane %v14841_v22, 3 }
 0x249   : > { %v5567_v23 = vsel %vm5544_vm13, %v5564_v21, %v5566_v5 }
 0x24a   : > { %v5569_v27 = vsel %vm5544_vm13, %v5566_v5, %v5568_v25  ;;  %v5571_v28 = vsel %vm5544_vm13, %v5568_v25, %v5570_v26 }
 0x24e   : > { %13489 = vmatmul.mubr.bf16.gmra.mrb[24].mxu0 %v5010_v31  ;;  %v5574_v31 = vrot.slane %v14844_v29, 3 }
 0x24f   : > { %13492 = vmatprep.mubr.bf16.mxu0 %v5019_v36  ;;  %v14846_v36 = vld [vmem:[#allocation2 + $0x98] sm:$0xff]  }
 0x250   : > { %v5575_v35 = vsel %vm5544_vm13, %v5572_v30, %v5574_v31  ;;  %v5578_v39 = vrot.slane %v14846_v36, 3  ;;  %v5577_v41 = vsel %vm5544_vm13, %v5574_v31, %v5576_v37 }
 0x252   : > { %v5579_v43 = vsel %vm5544_vm13, %v5576_v37, %v5578_v39 }
 0x256   : > { %13493 = vmatmul.mubr.bf16.gmra.mrb[28].mxu0 %v5028_v46  ;;  %v5581_v46 = vsel %vm5544_vm13, %v5578_v39, %v5580_v45 }
 0x257   : > { %13496 = vmatprep.mubr.bf16.mxu0 %v5037_v48  ;;  %v14852_v48 = vld [vmem:[%s16448_s2 + $0x20] sm:$0xff]  }
 0x258   : > { %13560 = vmatprep.subr.bf16.mxu1 %v14852_v48 }
 0x259   : > { %13561 = vmatpush3.bf16.msra.mxu1 %v14852_v48 }
 0x25a   : > { %13562 = vmatprep.subr.bf16.mxu1 %v14853_v49 }
 0x25d   : > { %13563 = vmatpush3.bf16.msra.mxu1 %v14853_v49 }
 0x25e   : > { %13497 = vmatmul.mubr.bf16.gmra.mrb[32].mxu0 %v5046_v54  ;;  %13564 = vmatprep.subr.bf16.mxu1 %v14854_v50  ;;  %v237_v54 = vlaneseq }
 0x25f   : > { %13516 = vmatprep.mubr.bf16.mxu0 %v5547_v56 }
 0x260   : > { %v238_v55 = vshrl.u32 %v237_v54, 7 }
 0x261   : > { %13565 = vmatpush3.bf16.msra.mxu1 %v14854_v50 }
 0x262   : > { %13566 = vmatprep.subr.bf16.mxu1 %v14855_v51  ;;  %v239_v56 = vadd.s32 8, %v238_v55  ;;  %v240_v57 = vadd.s32 16, %v238_v55  ;;  %v242_v58 = vrot.slane %v238_v55, 6  ;;  %v254_v2 = vrot.slane %v238_v55, 2 }
 0x264   : > { %v243_v59 = vrot.slane %v239_v56, 6  ;;  %v251_v61 = vrot.slane %v240_v57, 4  ;;  %v15698_v63 = vsel %vm228_vm0, %v240_v57, %v242_v58  ;;  %v255_v13 = vrot.slane %v239_v56, 2 }
 0x265   : > { %13567 = vmatpush3.bf16.msra.mxu1 %v14855_v51  ;;  %vm264_vm15 = vcmp.lt.s32.totalorder %v15698_v63, 16  ;;  %v257_v22 = vrot.slane %v240_v57, 2 }
 0x266   : > { %13517 = vmatmul.mubr.bf16.vlgmr.msra.gmra.mrb[0].mxu0 %v5549_v60  ;;  %13604 = vmatprep.subr.bf16.mxu1 %v15689_v53  ;;  %v249_v60 = vrot.slane %v239_v56, 4  ;;  %v15720_v26 = vsel %vm253_vm11, %v254_v2, %v255_v13 }
 0x267   : > { %13520 = vmatprep.mubr.bf16.mxu0 %v5551_v44  ;;  %v245_v44 = vrot.slane %v240_v57, 6  ;;  %vm269_vm4 = vcmp.lt.s32.totalorder %v15720_v26, 16 }
 0x268   : > { %v252_v9 = vsel %vm247_vm14, %v249_v60, %v251_v61 }
 0x269   : > { %v15712_v20 = vsel %vm253_vm11, %v252_v9, %v254_v2 }
 0x26e   : > { %13521 = vmatmul.mubr.bf16.gmra.mrb[4].mxu0 %v5553_v1  ;;  %v15701_v1 = vsel %vm228_vm0, %v242_v58, %v243_v59 }
 0x26f   : > { %13524 = vmatprep.mubr.bf16.mxu0 %v5555_v4  ;;  %v248_v4 = vrot.slane %v238_v55, 4  ;;  %vm265_vm1 = vcmp.lt.s32.totalorder %v15701_v1, 16 }
 0x271   : > { %v15727_v6 = vsel %vm247_vm14, %v248_v4, %v249_v60 }
 0x272   : > { %vm267_vm5 = vcmp.lt.s32.totalorder %v15727_v6, 16 }
 0x276   : > { %13525 = vmatmul.mubr.bf16.gmra.mrb[8].mxu0 %v5557_v11  ;;  %v246_v11 = vsel %vm228_vm0, %v243_v59, %v245_v44  ;;  %vm268_vm0 = vcmp.lt.s32.totalorder %v15712_v20, 16 }
 0x277   : > { %13528 = vmatprep.mubr.bf16.mxu0 %v5559_v18  ;;  %v15715_v21 = vsel %vm247_vm14, %v246_v11, %v248_v4 }
 0x278   : > { %vm266_vm3 = vcmp.lt.s32.totalorder %v15715_v21, 16 }
 0x27e   : > { %13529 = vmatmul.mubr.bf16.gmra.mrb[12].mxu0 %v5561_v16 }
 0x27f   : > { %13532 = vmatprep.mubr.bf16.mxu0 %v5563_v19 }
 0x286   : > { %13533 = vmatmul.mubr.bf16.gmra.mrb[16].mxu0 %v5565_v3 }
 0x287   : > { %13536 = vmatprep.mubr.bf16.mxu0 %v5567_v23 }
 0x28e   : > { %13537 = vmatmul.mubr.bf16.gmra.mrb[20].mxu0 %v5569_v27 }
 0x28f   : > { %13540 = vmatprep.mubr.bf16.mxu0 %v5571_v28 }
 0x296   : > { %13541 = vmatmul.mubr.bf16.gmra.mrb[24].mxu0 %v5573_v32 }
 0x297   : > { %13544 = vmatprep.mubr.bf16.mxu0 %v5575_v35 }
 0x29e   : > { %13545 = vmatmul.mubr.bf16.gmra.mrb[28].mxu0 %v5577_v41  ;;  %v15732_v41 = vsel %vm253_vm11, %v255_v13, %v257_v22 }
 0x29f   : > { %13548 = vmatprep.mubr.bf16.mxu0 %v5579_v43  ;;  %vm270_vm14 = vcmp.lt.s32.totalorder %v15732_v41, 16 }
 0x2a6   : > { %13549 = vmatmul.mubr.bf16.gmra.mrb[32].mxu0 %v5581_v46 }
 0x339   : > { %v13518_v0 = vpop.f32.mrb[0].mxu0 }
 0x33a   : > { %v5978_v7 = vadd.f32 %v13518_v0, %v15695_v62  ;;  %v5682_v8 = vpop.f32.mrb[1].mxu0 }
 0x33b   : > { %v5976_v12 = vadd.f32 %v15695_v62, %v5682_v8  ;;  %v13519_v18 = vpop.f32.mrb[2].mxu0 }
 0x33c   : > { %v6014_v14 = vmax.f32 %v5978_v7, 0.0  ;;  %v5979_v15 = vadd.f32 %v13519_v18, %v15695_v62  ;;  %v5685_v16 = vpop.f32.mrb[3].mxu0 }
 0x33d   : > { %v6012_v17 = vmax.f32 %v5976_v12, 0.0  ;;  %v5977_v19 = vadd.f32 %v15695_v62, %v5685_v16 }
 0x33e   : > { %v6050_v5 = vsel %vm264_vm15, %v6014_v14, 0.0  ;;  %v6015_v3 = vmax.f32 %v5979_v15, 0.0 }
 0x33f   : > { %v12582_v23 = vpack.c.bf16 %v6050_v5, %v6050_v5  ;;  %v12580_v24 = vpack.c.bf16 %v6012_v17, %v6012_v17  ;;  %v6013_v25 = vmax.f32 %v5977_v19, 0.0 }
 0x340   : > { %v6051_v27 = vsel %vm265_vm1, %v6015_v3, 0.0 }
 0x341   : > { %v6212_v28 = vshrl.u32 %v12582_v23, 16  ;;  %v6215_v29 = vshll.u32 %v12582_v23, 16  ;;  %v6193_v30 = vshrl.u32 %v12580_v24, 16  ;;  %v6196_v31 = vshll.u32 %v12580_v24, 16  ;;  %v13522_v32 = vpop.f32.mrb[4].mxu0 }
 0x342   : > { %v12583_v35 = vpack.c.bf16 %v6051_v27, %v6051_v27  ;;  %v12581_v36 = vpack.c.bf16 %v6013_v25, %v6013_v25  ;;  %v5982_v37 = vadd.f32 %v13522_v32, %v15695_v62  ;;  %v5698_v39 = vpop.f32.mrb[5].mxu0 }
 0x343   : > { %v6214_v42 = vrot.slane %v6212_v28, 6  ;;  %v6217_v43 = vrot.slane %v6215_v29, 7  ;;  %v6195_v45 = vrot.slane %v6193_v30, 6  ;;  %v6198_v46 = vrot.slane %v6196_v31, 7  ;;  %v13523_v47 = vpop.f32.mrb[6].mxu0 }
 0x344   : > { %v6222_v40 = vshrl.u32 %v12583_v35, 16  ;;  %v6225_v48 = vshll.u32 %v12583_v35, 16  ;;  %v6202_v49 = vshrl.u32 %v12581_v36, 16  ;;  %v6205_v50 = vshll.u32 %v12581_v36, 16  ;;  %v5701_v51 = vpop.f32.mrb[7].mxu0 }
 0x345   : > { %v6218_v52 = vor.u32 %v6217_v43, %v6214_v42  ;;  %v6199_v54 = vor.u32 %v6198_v46, %v6195_v45  ;;  %v6018_v55 = vmax.f32 %v5982_v37, 0.0  ;;  %v5980_v56 = vadd.f32 %v15695_v62, %v5698_v39 }
 0x346   : > { %v6224_v57 = vrot.slane %v6222_v40, 6  ;;  %v6227_v58 = vrot.slane %v6225_v48, 7  ;;  %v6204_v59 = vrot.slane %v6202_v49, 6  ;;  %v6207_v60 = vrot.slane %v6205_v50, 7 }
 0x347   : > { %v6220_v61 = vrot.slane %v6218_v52, 4  ;;  %v6200_v44 = vrot.slane %v6199_v54, 4  ;;  %v6589_v0 = vsel %vm15188_vm7, %v6199_v54, %v6588_v34  ;;  %v6054_v2 = vsel %vm268_vm0, %v6018_v55, 0.0  ;;  %v14861_v55 = vld [vmem:[%s16448_s2 + $0x48] sm:$0xff]  }
 0x348   : > { %6590 = vst [vmem:[#allocation2 + $0x8] sm:$0xe] %v6589_v0  ;;  %v6228_v4 = vor.u32 %v6227_v58, %v6224_v57  ;;  %v6208_v7 = vor.u32 %v6207_v60, %v6204_v59  ;;  %v12586_v8 = vpack.c.bf16 %v6054_v2, %v6054_v2  ;;  %v6016_v9 = vmax.f32 %v5980_v56, 0.0 }
 0x349   : > { %v5983_v11 = vadd.f32 %v13523_v47, %v15695_v62  ;;  %v5981_v12 = vadd.f32 %v15695_v62, %v5701_v51  ;;  %v13526_v18 = vpop.f32.mrb[8].mxu0 }
 0x34a   : > { %v6229_v38 = vsel %vm15182_vm6, %v6220_v61, %v6228_v4  ;;  %v6230_v13 = vrot.slane %v6228_v4, 4  ;;  %v6209_v14 = vsel %vm15182_vm6, %v6200_v44, %v6208_v7  ;;  %v6210_v15 = vrot.slane %v6208_v7, 4  ;;  %v5714_v16 = vpop.f32.mrb[9].mxu0 }
 0x34b   : > { %6593 = vst [vmem:[#allocation2 + $0x14] sm:$0xf] %v6229_v38  ;;  %6591 = vst [vmem:[#allocation2 + $0xc] sm:$0xf] %v6209_v14  ;;  %v6252_v17 = vshrl.u32 %v12586_v8, 16  ;;  %v6255_v19 = vshll.u32 %v12586_v8, 16  ;;  %v5986_v27 = vadd.f32 %v13526_v18, %v15695_v62  ;;  %v5984_v32 = vadd.f32 %v15695_v62, %v5714_v16 }
 0x34c   : > { %v6052_v5 = vsel %vm266_vm3, %v6016_v9, 0.0  ;;  %v6019_v3 = vmax.f32 %v5983_v11, 0.0  ;;  %v13527_v22 = vpop.f32.mrb[10].mxu0  ;;  %v6219_v23 = vsel %vm15182_vm6, %v6210_v15, %v6218_v52  ;;  %v6017_v25 = vmax.f32 %v5981_v12, 0.0 }
 0x34d   : > { %v12584_v24 = vpack.c.bf16 %v6052_v5, %v6052_v5  ;;  %v15752_v28 = vpop.f32.mrb[11].mxu0  ;;  %6592 = vst [vmem:[#allocation2 + $0x10] sm:$0xf] %v6219_v23  ;;  %v6254_v29 = vrot.slane %v6252_v17, 6  ;;  %v6257_v30 = vrot.slane %v6255_v19, 7  ;;  %v6022_v43 = vmax.f32 %v5986_v27, 0.0 }
 0x34e   : > { %v6055_v31 = vsel %vm269_vm4, %v6019_v3, 0.0  ;;  %v6053_v37 = vsel %vm267_vm5, %v6017_v25, 0.0  ;;  %v6020_v45 = vmax.f32 %v5984_v32, 0.0  ;;  %v5987_v16 = vadd.f32 %v13527_v22, %v15695_v62 }
 0x34f   : > { %v6232_v34 = vshrl.u32 %v12584_v24, 16  ;;  %v6235_v35 = vshll.u32 %v12584_v24, 16  ;;  %v12587_v36 = vpack.c.bf16 %v6055_v31, %v6055_v31  ;;  %v6258_v39 = vor.u32 %v6257_v30, %v6254_v29 }
 0x350   : > { %v12585_v42 = vpack.c.bf16 %v6053_v37, %v6053_v37  ;;  %v12590_v52 = vpack.c.bf16 %v6022_v43, %v6022_v43  ;;  %v6056_v59 = vsel %vm270_vm14, %v6020_v45, 0.0  ;;  %v6023_v27 = vmax.f32 %v5987_v16, 0.0 }
 0x351   : > { %v6234_v46 = vrot.slane %v6232_v34, 6  ;;  %v6237_v47 = vrot.slane %v6235_v35, 7  ;;  %v6262_v40 = vshrl.u32 %v12587_v36, 16  ;;  %v6265_v48 = vshll.u32 %v12587_v36, 16  ;;  %v13530_v54 = vpop.f32.mrb[12].mxu0 }
 0x352   : > { %v6260_v49 = vrot.slane %v6258_v39, 4  ;;  %v6242_v50 = vshrl.u32 %v12585_v42, 16  ;;  %v6245_v51 = vshll.u32 %v12585_v42, 16  ;;  %v5730_v60 = vpop.f32.mrb[13].mxu0  ;;  %v6292_v0 = vshrl.u32 %v12590_v52, 16  ;;  %v14857_v7 = vld [vmem:[#allocation2 + $0x8] sm:$0xff]  }
 0x353   : > { %v6238_v56 = vor.u32 %v6237_v47, %v6234_v46  ;;  %v6264_v57 = vrot.slane %v6262_v40, 6  ;;  %v6267_v58 = vrot.slane %v6265_v48, 7  ;;  %v6295_v2 = vshll.u32 %v12590_v52, 16  ;;  %v13531_v4 = vpop.f32.mrb[14].mxu0  ;;  %13569 = vmatmul.mubr.bf16.vlgmr.msra.gmra.mrb[0].mxu1 %v14857_v7  ;;  %v14883_v20 = vld [vmem:[#allocation2 + $0x8] sm:$0xff]  }
 0x354   : > { %v6244_v61 = vrot.slane %v6242_v50, 6  ;;  %v6247_v44 = vrot.slane %v6245_v51, 7  ;;  %v12588_v12 = vpack.c.bf16 %v6056_v59, %v6056_v59  ;;  %v5733_v18 = vpop.f32.mrb[15].mxu0  ;;  %v6294_v14 = vrot.slane %v6292_v0, 6  ;;  %v14859_v17 = vld [vmem:[#allocation2 + $0x10] sm:$0xff]   ;;  %13605 = vmatpush3.bf16.msra.mxu1 %v15689_v53 }
 0x355   : > { %v6239_v8 = vsel %vm15182_vm6, %v6230_v13, %v6238_v56  ;;  %v6240_v9 = vrot.slane %v6238_v56, 4  ;;  %v6268_v11 = vor.u32 %v6267_v58, %v6264_v57  ;;  %v6297_v15 = vrot.slane %v6295_v2, 7  ;;  %v14865_v13 = vld [vmem:[%s16448_s2 + $0x50] sm:$0xff]   ;;  %13572 = vmatprep.mubr.bf16.mxu1 %v14859_v17  ;;  %13606 = vmatprep.subr.bf16.mxu1 %v14861_v55 }
 0x356   : > { %6594 = vst [vmem:[#allocation2 + $0x18] sm:$0xf] %v6239_v8  ;;  %v6248_v38 = vor.u32 %v6247_v44, %v6244_v61  ;;  %v6272_v3 = vshrl.u32 %v12588_v12, 16  ;;  %v6275_v23 = vshll.u32 %v12588_v12, 16  ;;  %v5985_v53 = vadd.f32 %v15695_v62, %v15752_v28  ;;  %v14884_v10 = vld [vmem:[#allocation2 + $0x10] sm:$0xff]  }
 0x357   : > { %v6269_v19 = vsel %vm15182_vm6, %v6260_v49, %v6268_v11  ;;  %v6270_v5 = vrot.slane %v6268_v11, 4  ;;  %v15775_v22 = vor.u32 %v6297_v15, %v6294_v14  ;;  %v5990_v31 = vadd.f32 %v13530_v54, %v15695_v62 }
 0x358   : > { %6597 = vst [vmem:[#allocation2 + $0x24] sm:$0xf] %v6269_v19  ;;  %v6249_v24 = vsel %vm15182_vm6, %v6240_v9, %v6248_v38  ;;  %v6250_v25 = vrot.slane %v6248_v38, 4  ;;  %v6274_v29 = vrot.slane %v6272_v3, 6  ;;  %v6277_v30 = vrot.slane %v6275_v23, 7  ;;  %13607 = vmatpush3.bf16.msra.mxu1 %v14861_v55 }
 0x359   : > { %6595 = vst [vmem:[#allocation2 + $0x1c] sm:$0xf] %v6249_v24  ;;  %v6300_v34 = vrot.slane %v15775_v22, 4  ;;  %v6059_v35 = vsel %vm264_vm15, %v6023_v27, 0.0  ;;  %v5988_v36 = vadd.f32 %v15695_v62, %v5730_v60  ;;  %v13534_v37 = vpop.f32.mrb[16].mxu0  ;;  %v6021_v45 = vmax.f32 %v5985_v53, 0.0  ;;  %13608 = vmatprep.subr.bf16.mxu1 %v14865_v13 }
 0x35a   : > { %v6259_v32 = vsel %vm15182_vm6, %v6250_v25, %v6258_v39  ;;  %v15786_v42 = vor.u32 %v6277_v30, %v6274_v29  ;;  %v12591_v43 = vpack.c.bf16 %v6059_v35, %v6059_v35  ;;  %v6026_v46 = vmax.f32 %v5990_v31, 0.0  ;;  %v15788_v28 = vpop.f32.mrb[17].mxu0  ;;  %v14868_v39 = vld [vmem:[%s16448_s2 + $0x58] sm:$0xff]   ;;  %v14874_v29 = vld [vmem:[%s16448_s2 + $0x68] sm:$0xff]  }
 0x35b   : > { %6596 = vst [vmem:[#allocation2 + $0x20] sm:$0xf] %v6259_v32  ;;  %v6024_v47 = vmax.f32 %v5988_v36, 0.0  ;;  %v5991_v40 = vadd.f32 %v13531_v4, %v15695_v62  ;;  %v5989_v48 = vadd.f32 %v15695_v62, %v5733_v18  ;;  %v15796_v49 = vadd.f32 %v13534_v37, %v15695_v62  ;;  %v15798_v50 = vpop.f32.mrb[18].mxu0  ;;  %v14871_v4 = vld [vmem:[%s16448_s2 + $0x60] sm:$0xff]  }
 0x35c   : > { %v6279_v51 = vsel %vm15182_vm6, %v6270_v5, %v15786_v42  ;;  %v6280_v52 = vrot.slane %v15786_v42, 4  ;;  %v6302_v54 = vshrl.u32 %v12591_v43, 16  ;;  %v6305_v55 = vshll.u32 %v12591_v43, 16  ;;  %v15804_v56 = vpop.f32.mrb[19].mxu0  ;;  %13609 = vmatpush3.bf16.msra.mxu1 %v14865_v13 }
 0x35d   : > { %6598 = vst [vmem:[#allocation2 + $0x28] sm:$0xf] %v6279_v51  ;;  %v12589_v57 = vpack.c.bf16 %v6021_v45, %v6021_v45  ;;  %v6062_v58 = vsel %vm267_vm5, %v6026_v46, 0.0  ;;  %v6060_v59 = vsel %vm265_vm1, %v6024_v47, 0.0  ;;  %v6027_v60 = vmax.f32 %v5991_v40, 0.0  ;;  %13610 = vmatprep.subr.bf16.mxu1 %v14868_v39 }
 0x35e   : > { %v6304_v61 = vrot.slane %v6302_v54, 6  ;;  %v6307_v44 = vrot.slane %v6305_v55, 7  ;;  %v12594_v0 = vpack.c.bf16 %v6062_v58, %v6062_v58  ;;  %v12592_v2 = vpack.c.bf16 %v6060_v59, %v6060_v59 }
 0x35f   : > { %v6282_v7 = vshrl.u32 %v12589_v57, 16  ;;  %v6285_v8 = vshll.u32 %v12589_v57, 16  ;;  %v6063_v9 = vsel %vm268_vm0, %v6027_v60, 0.0  ;;  %v6025_v11 = vmax.f32 %v5989_v48, 0.0 }
 0x360   : > { %v6308_v12 = vor.u32 %v6307_v44, %v6304_v61  ;;  %v6332_v18 = vshrl.u32 %v12594_v0, 16  ;;  %v6335_v38 = vshll.u32 %v12594_v0, 16  ;;  %v6312_v14 = vshrl.u32 %v12592_v2, 16  ;;  %v14860_v15 = vld [vmem:[#allocation2 + $0x18] sm:$0xff]   ;;  %13611 = vmatpush3.bf16.msra.mxu1 %v14868_v39 }
 0x361   : > { %v6284_v16 = vrot.slane %v6282_v7, 6  ;;  %v6287_v17 = vrot.slane %v6285_v8, 7  ;;  %v6315_v19 = vshll.u32 %v12592_v2, 16  ;;  %v12595_v5 = vpack.c.bf16 %v6063_v9, %v6063_v9  ;;  %13573 = vmatmul.mubr.bf16.gmra.mrb[4].mxu1 %v14860_v15  ;;  %v13538_v27 = vpop.f32.mrb[20].mxu0  ;;  %13612 = vmatprep.subr.bf16.mxu1 %v14871_v4 }
 0x362   : > { %v14862_v3 = vld [vmem:[#allocation2 + $0x20] sm:$0xff]   ;;  %v6309_v23 = vsel %vm15182_vm6, %v6300_v34, %v6308_v12  ;;  %v6310_v13 = vrot.slane %v6308_v12, 4  ;;  %v6334_v24 = vrot.slane %v6332_v18, 6  ;;  %v6337_v25 = vrot.slane %v6335_v38, 7  ;;  %v5762_v35 = vpop.f32.mrb[21].mxu0 }
 0x363   : > { %6601 = vst [vmem:[#allocation2 + $0x34] sm:$0xf] %v6309_v23  ;;  %v6288_v30 = vor.u32 %v6287_v17, %v6284_v16  ;;  %v6314_v53 = vrot.slane %v6312_v14, 6  ;;  %v6317_v31 = vrot.slane %v6315_v19, 7  ;;  %v6342_v32 = vshrl.u32 %v12595_v5, 16  ;;  %13576 = vmatprep.mubr.bf16.mxu1 %v14862_v3  ;;  %v13539_v43 = vpop.f32.mrb[22].mxu0 }
 0x364   : > { %v15820_v36 = vor.u32 %v6337_v25, %v6334_v24  ;;  %v6345_v34 = vshll.u32 %v12595_v5, 16  ;;  %v6061_v37 = vsel %vm266_vm3, %v6025_v11, 0.0  ;;  %v6030_v42 = vmax.f32 %v15796_v49, 0.0  ;;  %v15827_v48 = vpop.f32.mrb[23].mxu0  ;;  %13613 = vmatpush3.bf16.msra.mxu1 %v14871_v4  ;;  %v14880_v16 = vld [vmem:[%s16448_s2 + $0x78] sm:$0xff]  }
 0x365   : > { %v6289_v45 = vsel %vm15182_vm6, %v6280_v52, %v6288_v30  ;;  %v6290_v46 = vrot.slane %v6288_v30, 4  ;;  %v6318_v47 = vor.u32 %v6317_v31, %v6314_v53  ;;  %v6344_v40 = vrot.slane %v6342_v32, 6  ;;  %13614 = vmatprep.subr.bf16.mxu1 %v14874_v29 }
 0x366   : > { %6599 = vst [vmem:[#allocation2 + $0x2c] sm:$0xf] %v6289_v45  ;;  %v6340_v39 = vrot.slane %v15820_v36, 4  ;;  %v6347_v51 = vrot.slane %v6345_v34, 7  ;;  %v12593_v54 = vpack.c.bf16 %v6061_v37, %v6061_v37  ;;  %v12598_v55 = vpack.c.bf16 %v6030_v42, %v6030_v42 }
 0x367   : > { %v6299_v49 = vsel %vm15182_vm6, %v6290_v46, %v15775_v22  ;;  %v6319_v57 = vsel %vm15182_vm6, %v6310_v13, %v6318_v47  ;;  %v6320_v58 = vrot.slane %v6318_v47, 4  ;;  %v5992_v52 = vadd.f32 %v15695_v62, %v15788_v28  ;;  %v14877_v22 = vld [vmem:[%s16448_s2 + $0x70] sm:$0xff]  }
 0x368   : > { %6600 = vst [vmem:[#allocation2 + $0x30] sm:$0xf] %v6299_v49  ;;  %6602 = vst [vmem:[#allocation2 + $0x38] sm:$0xf] %v6319_v57  ;;  %v15837_v59 = vor.u32 %v6347_v51, %v6344_v40  ;;  %v6322_v60 = vshrl.u32 %v12593_v54, 16  ;;  %v6325_v61 = vshll.u32 %v12593_v54, 16  ;;  %v5995_v7 = vadd.f32 %v15798_v50, %v15695_v62  ;;  %13615 = vmatpush3.bf16.msra.mxu1 %v14874_v29 }
 0x369   : > { %v6372_v44 = vshrl.u32 %v12598_v55, 16  ;;  %v6375_v0 = vshll.u32 %v12598_v55, 16  ;;  %v6028_v2 = vmax.f32 %v5992_v52, 0.0  ;;  %v5993_v28 = vadd.f32 %v15695_v62, %v15804_v56  ;;  %v15846_v4 = vpop.f32.mrb[24].mxu0  ;;  %13616 = vmatprep.subr.bf16.mxu1 %v14877_v22  ;;  %v15881_v57 = vld [vmem:[%s16448_s2 + $0x80] sm:$0xff]  }
 0x36a   : > { %v6349_v8 = vsel %vm15182_vm6, %v6340_v39, %v15837_v59  ;;  %v6350_v9 = vrot.slane %v15837_v59, 4  ;;  %v6324_v11 = vrot.slane %v6322_v60, 6  ;;  %v6327_v12 = vrot.slane %v6325_v61, 7  ;;  %v15852_v18 = vpop.f32.mrb[25].mxu0 }
 0x36b   : > { %6605 = vst [vmem:[#allocation2 + $0x44] sm:$0xf] %v6349_v8  ;;  %v6374_v38 = vrot.slane %v6372_v44, 6  ;;  %v6377_v14 = vrot.slane %v6375_v0, 7  ;;  %v6064_v50 = vsel %vm269_vm4, %v6028_v2, 0.0  ;;  %v6031_v15 = vmax.f32 %v5995_v7, 0.0 }
 0x36c   : > { %v15856_v56 = vpop.f32.mrb[26].mxu0  ;;  %v6328_v17 = vor.u32 %v6327_v12, %v6324_v11  ;;  %v12596_v19 = vpack.c.bf16 %v6064_v50, %v6064_v50  ;;  %v6029_v5 = vmax.f32 %v5993_v28, 0.0  ;;  %v5998_v3 = vadd.f32 %v13538_v27, %v15695_v62  ;;  %13617 = vmatpush3.bf16.msra.mxu1 %v14877_v22 }
 0x36d   : > { %v15862_v23 = vpop.f32.mrb[27].mxu0  ;;  %v15864_v13 = vor.u32 %v6377_v14, %v6374_v38  ;;  %v12599_v24 = vpack.c.bf16 %v6031_v15, %v6031_v15  ;;  %v5996_v25 = vadd.f32 %v15695_v62, %v5762_v35  ;;  %v5999_v30 = vadd.f32 %v13539_v43, %v15695_v62  ;;  %v14863_v29 = vld [vmem:[#allocation2 + $0x28] sm:$0xff]   ;;  %13618 = vmatprep.subr.bf16.mxu1 %v14880_v16 }
 0x36e   : > { %v6329_v53 = vsel %vm15182_vm6, %v6320_v58, %v6328_v17  ;;  %v6330_v31 = vrot.slane %v6328_v17, 4  ;;  %v6352_v32 = vshrl.u32 %v12596_v19, 16  ;;  %v6355_v34 = vshll.u32 %v12596_v19, 16  ;;  %13577 = vmatmul.mubr.bf16.gmra.mrb[8].mxu1 %v14863_v29 }
 0x36f   : > { %6603 = vst [vmem:[#allocation2 + $0x3c] sm:$0xf] %v6329_v53  ;;  %v6380_v27 = vrot.slane %v15864_v13, 4  ;;  %v6382_v37 = vshrl.u32 %v12599_v24, 16  ;;  %v6385_v42 = vshll.u32 %v12599_v24, 16  ;;  %v6065_v45 = vsel %vm270_vm14, %v6029_v5, 0.0 }
 0x370   : > { %v6339_v35 = vsel %vm15182_vm6, %v6330_v31, %v15820_v36  ;;  %v6354_v43 = vrot.slane %v6352_v32, 6  ;;  %v6357_v46 = vrot.slane %v6355_v34, 7  ;;  %v12597_v47 = vpack.c.bf16 %v6065_v45, %v6065_v45  ;;  %v14864_v40 = vld [vmem:[#allocation2 + $0x30] sm:$0xff]   ;;  %13619 = vmatpush3.bf16.msra.mxu1 %v14880_v16 }
 0x371   : > { %6604 = vst [vmem:[#allocation2 + $0x40] sm:$0xf] %v6339_v35  ;;  %v6384_v39 = vrot.slane %v6382_v37, 6  ;;  %v6387_v51 = vrot.slane %v6385_v42, 7  ;;  %v6034_v54 = vmax.f32 %v5998_v3, 0.0  ;;  %v6032_v55 = vmax.f32 %v5996_v25, 0.0  ;;  %13580 = vmatprep.mubr.bf16.mxu1 %v14864_v40  ;;  %13656 = vmatprep.subr.bf16.mxu1 %v15881_v57 }
 0x372   : > { %v15876_v49 = vpop.f32.mrb[28].mxu0  ;;  %v6358_v58 = vor.u32 %v6357_v46, %v6354_v43  ;;  %v6362_v36 = vshrl.u32 %v12597_v47, 16  ;;  %v6365_v52 = vshll.u32 %v12597_v47, 16  ;;  %v6035_v59 = vmax.f32 %v5999_v30, 0.0 }
 0x373   : > { %v15883_v60 = vpop.f32.mrb[29].mxu0  ;;  %v6388_v61 = vor.u32 %v6387_v51, %v6384_v39  ;;  %v6070_v44 = vsel %vm266_vm3, %v6034_v54, 0.0  ;;  %v6068_v22 = vsel %vm264_vm15, %v6032_v55, 0.0  ;;  %v5997_v0 = vadd.f32 %v15695_v62, %v15827_v48 }
 0x374   : > { %v15891_v2 = vpop.f32.mrb[30].mxu0  ;;  %v6359_v7 = vsel %vm15182_vm6, %v6350_v9, %v6358_v58  ;;  %v6360_v28 = vrot.slane %v6358_v58, 4  ;;  %v6364_v8 = vrot.slane %v6362_v36, 6  ;;  %v6367_v11 = vrot.slane %v6365_v52, 7 }
 0x375   : > { %v15895_v12 = vpop.f32.mrb[31].mxu0  ;;  %6606 = vst [vmem:[#allocation2 + $0x48] sm:$0xf] %v6359_v7  ;;  %v6389_v38 = vsel %vm15182_vm6, %v6380_v27, %v6388_v61  ;;  %v6390_v14 = vrot.slane %v6388_v61, 4  ;;  %v12602_v50 = vpack.c.bf16 %v6070_v44, %v6070_v44  ;;  %v12600_v15 = vpack.c.bf16 %v6068_v22, %v6068_v22 }
 0x376   : > { %6609 = vst [vmem:[#allocation2 + $0x54] sm:$0xf] %v6389_v38  ;;  %v6368_v48 = vor.u32 %v6367_v11, %v6364_v8  ;;  %v6071_v9 = vsel %vm267_vm5, %v6035_v59, 0.0  ;;  %v6033_v17 = vmax.f32 %v5997_v0, 0.0  ;;  %v6002_v19 = vadd.f32 %v15846_v4, %v15695_v62  ;;  %v14866_v5 = vld [vmem:[#allocation2 + $0x38] sm:$0xff]  }
 0x377   : > { %v6412_v16 = vshrl.u32 %v12602_v50, 16  ;;  %v6415_v3 = vshll.u32 %v12602_v50, 16  ;;  %v6392_v24 = vshrl.u32 %v12600_v15, 16  ;;  %v6395_v25 = vshll.u32 %v12600_v15, 16  ;;  %13581 = vmatmul.mubr.bf16.gmra.mrb[12].mxu1 %v14866_v5 }
 0x378   : > { %v6369_v30 = vsel %vm15182_vm6, %v6360_v28, %v6368_v48  ;;  %v6370_v29 = vrot.slane %v6368_v48, 4  ;;  %v12603_v53 = vpack.c.bf16 %v6071_v9, %v6071_v9  ;;  %v6069_v31 = vsel %vm265_vm1, %v6033_v17, 0.0  ;;  %v14867_v32 = vld [vmem:[#allocation2 + $0x40] sm:$0xff]  }
 0x379   : > { %6607 = vst [vmem:[#allocation2 + $0x4c] sm:$0xf] %v6369_v30  ;;  %v6414_v34 = vrot.slane %v6412_v16, 6  ;;  %v6417_v27 = vrot.slane %v6415_v3, 7  ;;  %v6394_v37 = vrot.slane %v6392_v24, 6  ;;  %v6397_v4 = vrot.slane %v6395_v25, 7  ;;  %13584 = vmatprep.mubr.bf16.mxu1 %v14867_v32 }
 0x37a   : > { %v15908_v42 = vpop.f32.mrb[32].mxu0  ;;  %v6379_v45 = vsel %vm15182_vm6, %v6370_v29, %v15864_v13  ;;  %v6422_v35 = vshrl.u32 %v12603_v53, 16  ;;  %v6425_v43 = vshll.u32 %v12603_v53, 16  ;;  %v12601_v46 = vpack.c.bf16 %v6069_v31, %v6069_v31 }
 0x37b   : > { %v15913_v47 = vpop.f32.mrb[33].mxu0  ;;  %6608 = vst [vmem:[#allocation2 + $0x50] sm:$0xf] %v6379_v45  ;;  %v6418_v40 = vor.u32 %v6417_v27, %v6414_v34  ;;  %v6398_v39 = vor.u32 %v6397_v4, %v6394_v37  ;;  %v6038_v51 = vmax.f32 %v6002_v19, 0.0  ;;  %v6000_v54 = vadd.f32 %v15695_v62, %v15852_v18 }
 0x37c   : > { %v15917_v55 = vpop.f32.mrb[34].mxu0  ;;  %v6424_v58 = vrot.slane %v6422_v35, 6  ;;  %v6427_v36 = vrot.slane %v6425_v43, 7  ;;  %v6402_v52 = vshrl.u32 %v12601_v46, 16  ;;  %v6405_v59 = vshll.u32 %v12601_v46, 16 }
 0x37d   : > { %v6420_v13 = vrot.slane %v6418_v40, 4  ;;  %v6399_v61 = vsel %vm15182_vm6, %v6390_v14, %v6398_v39  ;;  %v6400_v44 = vrot.slane %v6398_v39, 4  ;;  %v6074_v22 = vsel %vm270_vm14, %v6038_v51, 0.0  ;;  %v15923_v0 = vpop.f32.mrb[35].mxu0 }
 0x37e   : > { %6610 = vst [vmem:[#allocation2 + $0x58] sm:$0xf] %v6399_v61  ;;  %v6428_v7 = vor.u32 %v6427_v36, %v6424_v58  ;;  %v6404_v28 = vrot.slane %v6402_v52, 6  ;;  %v6407_v18 = vrot.slane %v6405_v59, 7  ;;  %v12606_v8 = vpack.c.bf16 %v6074_v22, %v6074_v22 }
 0x37f   : > { %v6036_v11 = vmax.f32 %v6000_v54, 0.0  ;;  %v6003_v38 = vadd.f32 %v15856_v56, %v15695_v62  ;;  %v6001_v50 = vadd.f32 %v15695_v62, %v15862_v23  ;;  %v6006_v14 = vadd.f32 %v15876_v49, %v15695_v62 }
 0x380   : > { %v6429_v15 = vsel %vm15182_vm6, %v6420_v13, %v6428_v7  ;;  %v6430_v48 = vrot.slane %v6428_v7, 4  ;;  %v6408_v9 = vor.u32 %v6407_v18, %v6404_v28  ;;  %v6452_v17 = vshrl.u32 %v12606_v8, 16  ;;  %v14869_v19 = vld [vmem:[#allocation2 + $0x48] sm:$0xff]  }
 0x381   : > { %6613 = vst [vmem:[#allocation2 + $0x64] sm:$0xf] %v6429_v15  ;;  %v6455_v5 = vshll.u32 %v12606_v8, 16  ;;  %v6072_v16 = vsel %vm268_vm0, %v6036_v11, 0.0  ;;  %v6039_v3 = vmax.f32 %v6003_v38, 0.0  ;;  %v6037_v56 = vmax.f32 %v6001_v50, 0.0  ;;  %13585 = vmatmul.mubr.bf16.gmra.mrb[16].mxu1 %v14869_v19 }
 0x382   : > { %v6409_v23 = vsel %vm15182_vm6, %v6400_v44, %v6408_v9  ;;  %v6410_v24 = vrot.slane %v6408_v9, 4  ;;  %v6454_v25 = vrot.slane %v6452_v17, 6  ;;  %v12604_v49 = vpack.c.bf16 %v6072_v16, %v6072_v16  ;;  %v14870_v30 = vld [vmem:[#allocation2 + $0x50] sm:$0xff]  }
 0x383   : > { %6611 = vst [vmem:[#allocation2 + $0x5c] sm:$0xf] %v6409_v23  ;;  %v6457_v29 = vrot.slane %v6455_v5, 7  ;;  %v12607_v53 = vpack.c.bf16 %v6039_v3, %v6039_v3  ;;  %v6073_v31 = vsel %vm269_vm4, %v6037_v56, 0.0  ;;  %v6042_v32 = vmax.f32 %v6006_v14, 0.0  ;;  %13588 = vmatprep.mubr.bf16.mxu1 %v14870_v30 }
 0x384   : > { %v6419_v34 = vsel %vm15182_vm6, %v6410_v24, %v6418_v40  ;;  %v6432_v27 = vshrl.u32 %v12604_v49, 16  ;;  %v6435_v37 = vshll.u32 %v12604_v49, 16  ;;  %v12605_v4 = vpack.c.bf16 %v6073_v31, %v6073_v31  ;;  %v15090_v3 = vld [vmem:[%s16449_s3] ss:$0 sm:$0xff] }
 0x385   : > { %6612 = vst [vmem:[#allocation2 + $0x60] sm:$0xf] %v6419_v34  ;;  %v6458_v45 = vor.u32 %v6457_v29, %v6454_v25  ;;  %v6462_v35 = vshrl.u32 %v12607_v53, 16  ;;  %v6465_v43 = vshll.u32 %v12607_v53, 16  ;;  %v6078_v46 = vsel %vm265_vm1, %v6042_v32, 0.0 }
 0x386   : > { %v6434_v39 = vrot.slane %v6432_v27, 6  ;;  %v6437_v51 = vrot.slane %v6435_v37, 7  ;;  %v6442_v54 = vshrl.u32 %v12605_v4, 16  ;;  %v6445_v58 = vshll.u32 %v12605_v4, 16 }
 0x387   : > { %v6460_v36 = vrot.slane %v6458_v45, 4  ;;  %v6464_v52 = vrot.slane %v6462_v35, 6  ;;  %v6467_v59 = vrot.slane %v6465_v43, 7  ;;  %v12610_v13 = vpack.c.bf16 %v6078_v46, %v6078_v46 }
 0x388   : > { %v6438_v40 = vor.u32 %v6437_v51, %v6434_v39  ;;  %v6444_v61 = vrot.slane %v6442_v54, 6  ;;  %v6447_v44 = vrot.slane %v6445_v58, 7  ;;  %v6004_v22 = vadd.f32 %v15695_v62, %v15883_v60 }
 0x389   : > { %v6468_v7 = vor.u32 %v6467_v59, %v6464_v52  ;;  %v6492_v28 = vshrl.u32 %v12610_v13, 16  ;;  %v6495_v18 = vshll.u32 %v12610_v13, 16  ;;  %v6007_v1 = vadd.f32 %v15891_v2, %v15695_v62 }
 0x38a   : > { %v6439_v8 = vsel %vm15182_vm6, %v6430_v48, %v6438_v40  ;;  %v6440_v11 = vrot.slane %v6438_v40, 4  ;;  %v6448_v38 = vor.u32 %v6447_v44, %v6444_v61  ;;  %v6040_v50 = vmax.f32 %v6004_v22, 0.0  ;;  %v14872_v14 = vld [vmem:[#allocation2 + $0x58] sm:$0xff]  }
 0x38b   : > { %6614 = vst [vmem:[#allocation2 + $0x68] sm:$0xf] %v6439_v8  ;;  %v6469_v15 = vsel %vm15182_vm6, %v6460_v36, %v6468_v7  ;;  %v6470_v9 = vrot.slane %v6468_v7, 4  ;;  %v6494_v17 = vrot.slane %v6492_v28, 6  ;;  %v6497_v60 = vrot.slane %v6495_v18, 7  ;;  %13589 = vmatmul.mubr.bf16.gmra.mrb[20].mxu1 %v14872_v14 }
 0x38c   : > { %6617 = vst [vmem:[#allocation2 + $0x74] sm:$0xf] %v6469_v15  ;;  %v6449_v19 = vsel %vm15182_vm6, %v6440_v11, %v6448_v38  ;;  %v6450_v5 = vrot.slane %v6448_v38, 4  ;;  %v12608_v62 = vpack.c.bf16 %v6040_v50, %v6040_v50  ;;  %v6043_v2 = vmax.f32 %v6007_v1, 0.0  ;;  %v14873_v48 = vld [vmem:[#allocation2 + $0x60] sm:$0xff]  }
 0x38d   : > { %6615 = vst [vmem:[#allocation2 + $0x6c] sm:$0xf] %v6449_v19  ;;  %v15953_v16 = vor.u32 %v6497_v60, %v6494_v17  ;;  %v6005_v56 = vadd.f32 %v15090_v3, %v15895_v12  ;;  %v6010_v23 = vadd.f32 %v15090_v3, %v15908_v42  ;;  %v6008_v24 = vadd.f32 %v15090_v3, %v15913_v47 }
 0x38e   : > { %v6459_v25 = vsel %vm15182_vm6, %v6450_v5, %v6458_v45  ;;  %v6472_v49 = vshrl.u32 %v12608_v62, 16  ;;  %v6475_v30 = vshll.u32 %v12608_v62, 16  ;;  %v6079_v29 = vsel %vm266_vm3, %v6043_v2, 0.0  ;;  %13592 = vmatprep.mubr.bf16.mxu1 %v14873_v48 }
 0x38f   : > { %6616 = vst [vmem:[#allocation2 + $0x70] sm:$0xf] %v6459_v25  ;;  %v6500_v53 = vrot.slane %v15953_v16, 4  ;;  %v12611_v31 = vpack.c.bf16 %v6079_v29, %v6079_v29  ;;  %v6041_v32 = vmax.f32 %v6005_v56, 0.0  ;;  %v6046_v34 = vmax.f32 %v6010_v23, 0.0  ;;  %v14882_v29 = vld [vmem:[#allocation2] sm:$0xff]  }
 0x390   : > { %v6474_v12 = vrot.slane %v6472_v49, 6  ;;  %v6477_v27 = vrot.slane %v6475_v30, 7  ;;  %v6044_v42 = vmax.f32 %v6008_v24, 0.0  ;;  %v6011_v47 = vadd.f32 %v15090_v3, %v15917_v55 }
 0x391   : > { %v6502_v37 = vshrl.u32 %v12611_v31, 16  ;;  %v6505_v4 = vshll.u32 %v12611_v31, 16  ;;  %v6077_v45 = vsel %vm264_vm15, %v6041_v32, 0.0  ;;  %v6082_v21 = vsel %vm269_vm4, %v6046_v34, 0.0 }
 0x392   : > { %v6478_v35 = vor.u32 %v6477_v27, %v6474_v12  ;;  %v12609_v43 = vpack.c.bf16 %v6077_v45, %v6077_v45  ;;  %v12614_v46 = vpack.c.bf16 %v6082_v21, %v6082_v21  ;;  %v6080_v39 = vsel %vm267_vm5, %v6044_v42, 0.0 }
 0x393   : > { %v6504_v51 = vrot.slane %v6502_v37, 6  ;;  %v6507_v54 = vrot.slane %v6505_v4, 7  ;;  %v12612_v58 = vpack.c.bf16 %v6080_v39, %v6080_v39  ;;  %v6047_v36 = vmax.f32 %v6011_v47, 0.0 }
 0x394   : > { %v6479_v55 = vsel %vm15182_vm6, %v6470_v9, %v6478_v35  ;;  %v6480_v52 = vrot.slane %v6478_v35, 4  ;;  %v6482_v59 = vshrl.u32 %v12609_v43, 16  ;;  %v6485_v63 = vshll.u32 %v12609_v43, 16  ;;  %v14875_v13 = vld [vmem:[#allocation2 + $0x68] sm:$0xff]  }
 0x395   : > { %6618 = vst [vmem:[#allocation2 + $0x78] sm:$0xf] %v6479_v55  ;;  %v6508_v26 = vor.u32 %v6507_v54, %v6504_v51  ;;  %v6532_v40 = vshrl.u32 %v12614_v46, 16  ;;  %v6535_v61 = vshll.u32 %v12614_v46, 16  ;;  %v6512_v44 = vshrl.u32 %v12612_v58, 16  ;;  %13593 = vmatmul.mubr.bf16.gmra.mrb[24].mxu1 %v14875_v13  ;;  %v14886_v55 = vld [vmem:[#allocation2 + $0x18] sm:$0xff]  }
 0x396   : > { %v6484_v22 = vrot.slane %v6482_v59, 6  ;;  %v6487_v7 = vrot.slane %v6485_v63, 7  ;;  %v6515_v6 = vshll.u32 %v12612_v58, 16  ;;  %v6083_v28 = vsel %vm270_vm14, %v6047_v36, 0.0  ;;  %v14876_v11 = vld [vmem:[#allocation2 + $0x70] sm:$0xff]  }
 0x397   : > { %v6509_v18 = vsel %vm15182_vm6, %v6500_v53, %v6508_v26  ;;  %v6534_v1 = vrot.slane %v6532_v40, 6  ;;  %v6537_v8 = vrot.slane %v6535_v61, 7  ;;  %v6514_v50 = vrot.slane %v6512_v44, 6  ;;  %13596 = vmatprep.mubr.bf16.mxu1 %v14876_v11  ;;  %v6626_v53 = vld [vmem:[#allocation2 + $0x98] sm:$0x3]  ;;  %v14887_v40 = vld [vmem:[#allocation2 + $0x20] sm:$0xff]  }
 0x398   : > { %6621 = vst [vmem:[#allocation2 + $0x84] sm:$0xf] %v6509_v18  ;;  %v6488_v38 = vor.u32 %v6487_v7, %v6484_v22  ;;  %v6517_v14 = vrot.slane %v6515_v6, 7  ;;  %v12615_v15 = vpack.c.bf16 %v6083_v28, %v6083_v28  ;;  %v6510_v9 = vrot.slane %v6508_v26, 4  ;;  %v14888_v7 = vld [vmem:[#allocation2 + $0x28] sm:$0xff]  }
 0x399   : > { %v6538_v17 = vor.u32 %v6537_v8, %v6534_v1  ;;  %v6009_v60 = vadd.f32 %v15090_v3, %v15923_v0  ;;  %v7199_v21 = vshll.u32 %v14882_v29, 16  ;;  %v7197_v39 = vshrl.u32 %v14882_v29, 16  ;;  %v14889_v28 = vld [vmem:[%s16448_s2 + $0x88] sm:$0xff]  }
 0x39a   : > { %v6489_v41 = vsel %vm15182_vm6, %v6480_v52, %v6488_v38  ;;  %v6490_v19 = vrot.slane %v6488_v38, 4  ;;  %v6518_v5 = vor.u32 %v6517_v14, %v6514_v50  ;;  %v6542_v62 = vshrl.u32 %v12615_v15, 16  ;;  %v14890_v50 = vld [vmem:[#allocation2 + $0x30] sm:$0xff]  }
 0x39b   : > { %6619 = vst [vmem:[#allocation2 + $0x7c] sm:$0xf] %v6489_v41  ;;  %v6545_v2 = vshll.u32 %v12615_v15, 16  ;;  %v6045_v48 = vmax.f32 %v6009_v60, 0.0  ;;  %v6540_v23 = vrot.slane %v6538_v17, 4  ;;  %v7201_v51 = vrot.slane %v7199_v21, 1 }
 0x39c   : > { %v6499_v56 = vsel %vm15182_vm6, %v6490_v19, %v15953_v16  ;;  %v6519_v24 = vsel %vm15182_vm6, %v6510_v9, %v6518_v5  ;;  %v6544_v25 = vrot.slane %v6542_v62, 6  ;;  %v6520_v12 = vrot.slane %v6518_v5, 4  ;;  %v14892_v15 = vld [vmem:[%s16448_s2 + $0x90] sm:$0xff]   ;;  %v14891_v41 = vld [vmem:[#allocation2 + $0x38] sm:$0xff]  }
 0x39d   : > { %6620 = vst [vmem:[#allocation2 + $0x80] sm:$0xf] %v6499_v56  ;;  %6622 = vst [vmem:[#allocation2 + $0x88] sm:$0xf] %v6519_v24  ;;  %v6547_v0 = vrot.slane %v6545_v2, 7  ;;  %v6081_v3 = vsel %vm268_vm0, %v6045_v48, 0.0  ;;  %v7202_v58 = vor.u32 %v7201_v51, %v7197_v39 }
 0x39e   : > { %v12613_v49 = vpack.c.bf16 %v6081_v3, %v6081_v3  ;;  %v7204_v54 = vshll.u32 %v14883_v20, 16  ;;  %v7212_v59 = vshll.u32 %v14884_v10, 16  ;;  %v7220_v13 = vshll.u32 %v14886_v55, 16  ;;  %v14893_v24 = vld [vmem:[#allocation2 + $0x40] sm:$0xff]  }
 0x39f   : > { %v6548_v30 = vor.u32 %v6547_v0, %v6544_v25  ;;  %v7208_v26 = vshrl.u32 %v14883_v20, 16  ;;  %v7216_v44 = vshrl.u32 %v14884_v10, 16  ;;  %v7228_v6 = vshll.u32 %v14887_v40, 16  ;;  %v14898_v25 = vld [vmem:[%s16448_s2 + $0xa0] sm:$0xff]   ;;  %v14897_v20 = vld [vmem:[#allocation2 + $0x58] sm:$0xff]  }
 0x3a0   : > { %v6522_v31 = vshrl.u32 %v12613_v49, 16  ;;  %v6525_v32 = vshll.u32 %v12613_v49, 16  ;;  %v7206_v36 = vrot.slane %v7204_v54, 1  ;;  %v7214_v61 = vrot.slane %v7212_v59, 1 }
 0x3a1   : > { %v6549_v16 = vsel %vm15182_vm6, %v6540_v23, %v6548_v30  ;;  %v6550_v34 = vrot.slane %v6548_v30, 4  ;;  %v7222_v22 = vrot.slane %v7220_v13, 1  ;;  %v7236_v11 = vshll.u32 %v14888_v7, 16  ;;  %v14894_v30 = vld [vmem:[#allocation2 + $0x48] sm:$0xff]  }
 0x3a2   : > { %6625 = vst [vmem:[#allocation2 + $0x94] sm:$0xf] %v6549_v16  ;;  %v6524_v27 = vrot.slane %v6522_v31, 6  ;;  %v6527_v42 = vrot.slane %v6525_v32, 7  ;;  %v14878_v47 = vld [vmem:[#allocation2 + $0x78] sm:$0xff]   ;;  %v7207_v63 = vsel %vm1424_vm8, %v7202_v58, %v7206_v36  ;;  %v7210_v33 = vor.u32 %v7208_v26, %v7206_v36  ;;  %v14899_v58 = vld [vmem:[#allocation2 + $0x60] sm:$0xff]  }
 0x3a3   : > { %v6627_v37 = vsel %vm15167_vm2, %v6550_v34, %v6626_v53  ;;  %13597 = vmatmul.mubr.bf16.gmra.mrb[28].mxu1 %v14878_v47  ;;  %v7218_v18 = vor.u32 %v7216_v44, %v7214_v61  ;;  %v7224_v38 = vshrl.u32 %v14886_v55, 16  ;;  %v7230_v14 = vrot.slane %v7228_v6, 1  ;;  %v14901_v53 = vld [vmem:[%s16448_s2 + $0xa8] sm:$0xff]   ;;  %v14904_v47 = vld [vmem:[%s16448_s2 + $0xb0] sm:$0xff]   ;;  %v16031_v36 = vld [vmem:[%s16448_s2 + $0xc0] sm:$0xff]  }
 0x3a4   : > { %6628 = vst [vmem:[#allocation2 + $0x98] sm:$0x3] %v6627_v37  ;;  %v6528_v4 = vor.u32 %v6527_v42, %v6524_v27  ;;  %v14879_v45 = vld [vmem:[#allocation2 + $0x80] sm:$0xff]   ;;  %v7215_v1 = vsel %vm1424_vm8, %v7210_v33, %v7214_v61  ;;  %v7238_v60 = vrot.slane %v7236_v11, 1  ;;  %v7244_v19 = vshll.u32 %v14890_v50, 16  ;;  %v14896_v42 = vld [vmem:[#allocation2 + $0x50] sm:$0xff]  }
 0x3a5   : > { %13600 = vmatprep.mubr.bf16.mxu1 %v14879_v45  ;;  %v7223_v8 = vsel %vm1424_vm8, %v7218_v18, %v7222_v22  ;;  %v7226_v9 = vor.u32 %v7224_v38, %v7222_v22  ;;  %v7252_v48 = vshll.u32 %v14891_v41, 16  ;;  %v7240_v56 = vshrl.u32 %v14888_v7, 16  ;;  %v14902_v7 = vld [vmem:[#allocation2 + $0x70] sm:$0xff]  }
 0x3a6   : > { %v6529_v35 = vsel %vm15182_vm6, %v6520_v12, %v6528_v4  ;;  %v6530_v43 = vrot.slane %v6528_v4, 4  ;;  %v7246_v23 = vrot.slane %v7244_v19, 1  ;;  %v7248_v3 = vshrl.u32 %v14890_v50, 16 }
 0x3a7   : > { %6623 = vst [vmem:[#allocation2 + $0x8c] sm:$0xf] %v6529_v35  ;;  %v7231_v62 = vsel %vm1424_vm8, %v7226_v9, %v7230_v14  ;;  %v7242_v0 = vor.u32 %v7240_v56, %v7238_v60  ;;  %v7254_v49 = vrot.slane %v7252_v48, 1  ;;  %v7260_v29 = vshll.u32 %v14893_v24, 16 }
 0x3a8   : > { %v6539_v46 = vsel %vm15182_vm6, %v6530_v43, %v6538_v17  ;;  %v7232_v17 = vshrl.u32 %v14887_v40, 16  ;;  %v7250_v31 = vor.u32 %v7248_v3, %v7246_v23  ;;  %v7268_v34 = vshll.u32 %v14894_v30, 16  ;;  %v14907_v43 = vld [vmem:[%s16448_s2 + $0xb8] sm:$0xff]  }
 0x3a9   : > { %6624 = vst [vmem:[#allocation2 + $0x90] sm:$0xf] %v6539_v46  ;;  %v7247_v32 = vsel %vm1424_vm8, %v7242_v0, %v7246_v23  ;;  %v7256_v12 = vshrl.u32 %v14891_v41, 16  ;;  %v7262_v27 = vrot.slane %v7260_v29, 1  ;;  %v7264_v4 = vshrl.u32 %v14893_v24, 16 }
 0x3aa   : > { %v7234_v5 = vor.u32 %v7232_v17, %v7230_v14  ;;  %v7255_v16 = vsel %vm1424_vm8, %v7250_v31, %v7254_v49  ;;  %v7270_v45 = vrot.slane %v7268_v34, 1  ;;  %v7276_v35 = vshll.u32 %v14896_v42, 16  ;;  %v14905_v17 = vld [vmem:[#allocation2 + $0x80] sm:$0xff]  }
 0x3ab   : > { %v7258_v37 = vor.u32 %v7256_v12, %v7254_v49  ;;  %v7266_v21 = vor.u32 %v7264_v4, %v7262_v27  ;;  %v7284_v51 = vshll.u32 %v14897_v20, 16  ;;  %v7272_v54 = vshrl.u32 %v14894_v30, 16  ;;  %v14909_v29 = vld [vmem:[#allocation2] sm:$0xfe]  }
 0x3ac   : > { %v7239_v2 = vsel %vm1424_vm8, %v7234_v5, %v7238_v60  ;;  %v7278_v10 = vrot.slane %v7276_v35, 1  ;;  %v7280_v59 = vshrl.u32 %v14896_v42, 16  ;;  %v7292_v26 = vshll.u32 %v14899_v58, 16 }
 0x3ad   : > { %v7263_v46 = vsel %vm1424_vm8, %v7258_v37, %v7262_v27  ;;  %v7271_v39 = vsel %vm1424_vm8, %v7266_v21, %v7270_v45  ;;  %v7274_v55 = vor.u32 %v7272_v54, %v7270_v45  ;;  %v7288_v44 = vshrl.u32 %v14897_v20, 16  ;;  %v14911_v20 = vld [vmem:[#allocation2 + $0x10] sm:$0xff]   ;;  %v14913_v45 = vld [vmem:[#allocation2 + $0x18] sm:$0xff]   ;;  %v14915_v54 = vld [vmem:[#allocation2 + $0x28] sm:$0xff]  }
 0x3ae   : > { %v14881_v52 = vld [vmem:[#allocation2 + $0x88] sm:$0xff]   ;;  %v7282_v13 = vor.u32 %v7280_v59, %v7278_v10  ;;  %v7294_v22 = vrot.slane %v7292_v26, 1  ;;  %v7308_v11 = vshll.u32 %v14902_v7, 16  ;;  %v7312_v19 = vshrl.u32 %v14902_v7, 16  ;;  %v14925_v26 = vld [vmem:[%s16448_s2 + $0xe0] sm:$0xff]  }
 0x3af   : > { %13601 = vmatmul.mubr.bf16.gmra.mrb[32].mxu1 %v14881_v52  ;;  %v14900_v52 = vld [vmem:[#allocation2 + $0x68] sm:$0xff]   ;;  %v7279_v40 = vsel %vm1424_vm8, %v7274_v55, %v7278_v10  ;;  %v7328_v3 = vshrl.u32 %v14905_v17, 16  ;;  %v7841_v42 = vrot.slane %v14909_v29, 1  ;;  %v7844_v21 = vrot.slane %v14911_v20, 1  ;;  %v14919_v10 = vld [vmem:[%s16448_s2 + $0xd0] sm:$0xff]   ;;  %v14938_v20 = vld [vmem:[#allocation2 + $0x18] sm:$0xff]  }
 0x3b0   : > { %13620 = vmatprep.mubr.bf16.mxu1 %v7207_v63  ;;  %v7286_v63 = vrot.slane %v7284_v51, 1  ;;  %v7300_v33 = vshll.u32 %v14900_v52, 16  ;;  %v7310_v9 = vrot.slane %v7308_v11, 1  ;;  %v14906_v41 = vld [vmem:[#allocation2 + $0x88] sm:$0xff]   ;;  %v7846_v35 = vrot.slane %v14913_v45, 1  ;;  %v14940_v45 = vld [vmem:[#allocation2 + $0x20] sm:$0xff]  }
 0x3b1   : > { %v7332_v56 = vshll.u32 %v14906_v41, 16  ;;  %v14908_v24 = vld [vmem:[#allocation2 + $0x90] ss:$0 sps:$4 sm:$0x11]   ;;  %v7336_v34 = vshrl.u32 %v14906_v41, 16  ;;  %v7850_v55 = vrot.slane %v14915_v54, 1 }
 0x3b2   : > { %v7287_v61 = vsel %vm1424_vm8, %v7282_v13, %v7286_v63  ;;  %v7290_v6 = vor.u32 %v7288_v44, %v7286_v63  ;;  %v7302_v18 = vrot.slane %v7300_v33, 1  ;;  %v7340_v31 = vshll.u32 %v14908_v24, 16  ;;  %v14917_v63 = vld [vmem:[#allocation2 + $0x30] sm:$0xff]   ;;  %v14928_v33 = vld [vmem:[%s16448_s2 + $0xe8] sm:$0xff]   ;;  %v14926_v41 = vld [vmem:[#allocation2 + $0x60] sm:$0xff]  }
 0x3b3   : > { %v7334_v49 = vrot.slane %v7332_v56, 1  ;;  %v7847_v51 = vsel %vm2070_vm9, %v7844_v21, %v7846_v35  ;;  %v14942_v54 = vld [vmem:[#allocation2 + $0x30] sm:$0xff]  }
 0x3b4   : > { %v7295_v38 = vsel %vm1424_vm8, %v7290_v6, %v7294_v22  ;;  %v7342_v27 = vrot.slane %v7340_v31, 1  ;;  %v14921_v6 = vld [vmem:[#allocation2 + $0x48] sm:$0xff]  }
 0x3b5   : > { %v7338_v12 = vor.u32 %v7336_v34, %v7334_v49  ;;  %v14937_v34 = vld [vmem:[#allocation2 + $0x10] sm:$0xff]  }
 0x3b7   : > { %13621 = vmatmul.mubr.bf16.vlgmr.msra.gmra.mrb[0].mxu1 %v7215_v1  ;;  %v14903_v1 = vld [vmem:[#allocation2 + $0x78] sm:$0xff]   ;;  %v7343_v37 = vsel %vm1424_vm8, %v7338_v12, %v7342_v27  ;;  %v14936_v12 = vld [vmem:[#allocation2 + $0x8] sm:$0xfe]  }
 0x3b8   : > { %13624 = vmatprep.mubr.bf16.mxu1 %v7223_v8  ;;  %13657 = vmatpush3.bf16.msra.mxu1 %v15881_v57  ;;  %v14895_v57 = vld [vmem:[%s16448_s2 + $0x98] sm:$0xff]   ;;  %v7316_v14 = vshll.u32 %v14903_v1, 16  ;;  %v7320_v23 = vshrl.u32 %v14903_v1, 16  ;;  %v7858_v1 = vrot.slane %v14921_v6, 1  ;;  %v14948_v6 = vld [vmem:[#allocation2 + $0x50] sm:$0xff]  }
 0x3b9   : > { %13658 = vmatprep.subr.bf16.mxu1 %v14889_v28 }
 0x3ba   : > { %v7318_v5 = vrot.slane %v7316_v14, 1  ;;  %v14924_v14 = vld [vmem:[#allocation2 + $0x58] sm:$0xff]  }
 0x3bc   : > { %13659 = vmatpush3.bf16.msra.mxu1 %v14889_v28  ;;  %v7296_v28 = vshrl.u32 %v14899_v58, 16  ;;  %v7322_v0 = vor.u32 %v7320_v23, %v7318_v5  ;;  %v14930_v23 = vld [vmem:[#allocation2 + $0x78] sm:$0xff]  }
 0x3bd   : > { %13660 = vmatprep.subr.bf16.mxu1 %v14892_v15 }
 0x3be   : > { %v7298_v8 = vor.u32 %v7296_v28, %v7294_v22  ;;  %v14920_v22 = vld [vmem:[#allocation2 + $0x40] sm:$0xff]   ;;  %v14931_v28 = vld [vmem:[%s16448_s2 + $0xf0] sm:$0xff]  }
 0x3bf   : > { %13625 = vmatmul.mubr.bf16.gmra.mrb[4].mxu1 %v7231_v62  ;;  %v7324_v62 = vshll.u32 %v14905_v17, 16  ;;  %v7862_v17 = vrot.slane %v14924_v14, 1  ;;  %v14951_v14 = vld [vmem:[#allocation2 + $0x60] sm:$0xff]  }
 0x3c0   : > { %13628 = vmatprep.mubr.bf16.mxu1 %v7239_v2  ;;  %13661 = vmatpush3.bf16.msra.mxu1 %v14892_v15  ;;  %v7303_v50 = vsel %vm1424_vm8, %v7298_v8, %v7302_v18  ;;  %v7304_v15 = vshrl.u32 %v14900_v52, 16  ;;  %v14922_v52 = vld [vmem:[%s16448_s2 + $0xd8] sm:$0xff]  }
 0x3c1   : > { %13662 = vmatprep.subr.bf16.mxu1 %v14895_v57  ;;  %v14934_v8 = vld [vmem:[%s16448_s2 + $0xf8] sm:$0xff]  }
 0x3c2   : > { %v7306_v60 = vor.u32 %v7304_v15, %v7302_v18  ;;  %v7856_v18 = vrot.slane %v14920_v22, 1  ;;  %v14939_v15 = vld [vmem:[%s16448_s2 + $0x100] sm:$0xff]   ;;  %v14947_v22 = vld [vmem:[#allocation2 + $0x48] sm:$0xff]  }
 0x3c4   : > { %13663 = vmatpush3.bf16.msra.mxu1 %v14895_v57  ;;  %v7314_v57 = vor.u32 %v7312_v19, %v7310_v9  ;;  %v7311_v2 = vsel %vm1424_vm8, %v7306_v60, %v7310_v9 }
 0x3c5   : > { %13664 = vmatprep.subr.bf16.mxu1 %v14898_v25 }
 0x3c6   : > { %v7319_v48 = vsel %vm1424_vm8, %v7314_v57, %v7318_v5  ;;  %v14927_v5 = vld [vmem:[#allocation2 + $0x68] sm:$0xff]   ;;  %v7864_v57 = vrot.slane %v14926_v41, 1 }
 0x3c7   : > { %13629 = vmatmul.mubr.bf16.gmra.mrb[8].mxu1 %v7247_v32  ;;  %v14953_v41 = vld [vmem:[#allocation2 + $0x68] sm:$0xff]  }
 0x3c8   : > { %13632 = vmatprep.mubr.bf16.mxu1 %v7255_v16  ;;  %13665 = vmatpush3.bf16.msra.mxu1 %v14898_v25  ;;  %v7326_v25 = vrot.slane %v7324_v62, 1  ;;  %v14910_v16 = vld [vmem:[#allocation2 + $0x8] sm:$0xff]   ;;  %v7866_v62 = vrot.slane %v14927_v5, 1  ;;  %v14954_v5 = vld [vmem:[#allocation2 + $0x70] sm:$0xff]  }
 0x3c9   : > { %13666 = vmatprep.subr.bf16.mxu1 %v14901_v53 }
 0x3ca   : > { %v7330_v30 = vor.u32 %v7328_v3, %v7326_v25  ;;  %v7867_v56 = vsel %vm2070_vm9, %v7864_v57, %v7866_v62  ;;  %v14932_v3 = vld [vmem:[#allocation2 + $0x80] sm:$0xff]  }
 0x3cb   : > { %v7872_v29 = vrot.slane %v14932_v3, 1  ;;  %v14959_v3 = vld [vmem:[#allocation2 + $0x88] sm:$0xff]  }
 0x3cc   : > { %13667 = vmatpush3.bf16.msra.mxu1 %v14901_v53  ;;  %v7327_v53 = vsel %vm1424_vm8, %v7322_v0, %v7326_v25  ;;  %v7335_v32 = vsel %vm1424_vm8, %v7330_v30, %v7334_v49  ;;  %v7870_v25 = vrot.slane %v14930_v23, 1  ;;  %v14933_v30 = vld [vmem:[#allocation2 + $0x88] sm:$0xff]   ;;  %v14957_v23 = vld [vmem:[#allocation2 + $0x80] sm:$0xff]  }
 0x3cd   : > { %13668 = vmatprep.subr.bf16.mxu1 %v14904_v47 }
 0x3ce   : > { %v7873_v31 = vsel %vm2070_vm9, %v7870_v25, %v7872_v29 }
 0x3cf   : > { %13633 = vmatmul.mubr.bf16.gmra.mrb[12].mxu1 %v7263_v46 }
 0x3d0   : > { %13636 = vmatprep.mubr.bf16.mxu1 %v7271_v39  ;;  %13669 = vmatpush3.bf16.msra.mxu1 %v14904_v47  ;;  %v7842_v47 = vrot.slane %v14910_v16, 1  ;;  %v14914_v39 = vld [vmem:[#allocation2 + $0x20] sm:$0xff]  }
 0x3d1   : > { %13670 = vmatprep.subr.bf16.mxu1 %v14907_v43  ;;  %v7848_v58 = vrot.slane %v14914_v39, 1  ;;  %v14941_v39 = vld [vmem:[#allocation2 + $0x28] sm:$0xff]  }
 0x3d2   : > { %v7843_v4 = vsel %vm2070_vm9, %v7841_v42, %v7842_v47  ;;  %v7845_v46 = vsel %vm2070_vm9, %v7842_v47, %v7844_v21  ;;  %v8376_v42 = vrot.slane %v14937_v34, 1  ;;  %v8375_v47 = vrot.slane %v14936_v12, 1 }
 0x3d3   : > { %v7849_v59 = vsel %vm2070_vm9, %v7846_v35, %v7848_v58  ;;  %v7851_v13 = vsel %vm2070_vm9, %v7848_v58, %v7850_v55  ;;  %v8378_v21 = vrot.slane %v14938_v20, 1  ;;  %v8380_v35 = vrot.slane %v14940_v45, 1 }
 0x3d4   : > { %13671 = vmatpush3.bf16.msra.mxu1 %v14907_v43  ;;  %v14916_v43 = vld [vmem:[%s16448_s2 + $0xc8] sm:$0xff]   ;;  %v8382_v58 = vrot.slane %v14941_v39, 1 }
 0x3d5   : > { %13708 = vmatprep.subr.bf16.mxu1 %v16031_v36 }
 0x3d7   : > { %13637 = vmatmul.mubr.bf16.gmra.mrb[16].mxu1 %v7279_v40  ;;  %v7852_v40 = vrot.slane %v14917_v63, 1  ;;  %v14944_v63 = vld [vmem:[#allocation2 + $0x38] sm:$0xff]  }
 0x3d8   : > { %13640 = vmatprep.mubr.bf16.mxu1 %v7287_v61 }
 0x3d9   : > { %v7853_v44 = vsel %vm2070_vm9, %v7850_v55, %v7852_v40  ;;  %v8384_v55 = vrot.slane %v14942_v54, 1 }
 0x3df   : > { %13641 = vmatmul.mubr.bf16.gmra.mrb[20].mxu1 %v7295_v38  ;;  %v14923_v38 = vld [vmem:[#allocation2 + $0x50] sm:$0xff]  }
 0x3e0   : > { %13644 = vmatprep.mubr.bf16.mxu1 %v7303_v50  ;;  %v7859_v50 = vsel %vm2070_vm9, %v7856_v18, %v7858_v1  ;;  %v7860_v9 = vrot.slane %v14923_v38, 1  ;;  %v14950_v38 = vld [vmem:[#allocation2 + $0x58] sm:$0xff]  }
 0x3e2   : > { %v7861_v60 = vsel %vm2070_vm9, %v7858_v1, %v7860_v9  ;;  %v7863_v19 = vsel %vm2070_vm9, %v7860_v9, %v7862_v17  ;;  %v8392_v1 = vrot.slane %v14948_v6, 1  ;;  %v8394_v9 = vrot.slane %v14950_v38, 1  ;;  %v14971_v38 = vld [vmem:[#allocation2 + $0x38] sm:$0xff]  }
 0x3e7   : > { %13645 = vmatmul.mubr.bf16.gmra.mrb[24].mxu1 %v7311_v2  ;;  %v7865_v2 = vsel %vm2070_vm9, %v7862_v17, %v7864_v57  ;;  %v8396_v17 = vrot.slane %v14951_v14, 1  ;;  %v8398_v57 = vrot.slane %v14953_v41, 1 }
 0x3e8   : > { %13648 = vmatprep.mubr.bf16.mxu1 %v7319_v48  ;;  %v14929_v48 = vld [vmem:[#allocation2 + $0x70] sm:$0xff]  }
 0x3e9   : > { %v7868_v24 = vrot.slane %v14929_v48, 1  ;;  %v14956_v48 = vld [vmem:[#allocation2 + $0x78] sm:$0xff]  }
 0x3eb   : > { %v7869_v0 = vsel %vm2070_vm9, %v7866_v62, %v7868_v24  ;;  %v7871_v49 = vsel %vm2070_vm9, %v7868_v24, %v7870_v25  ;;  %v8400_v62 = vrot.slane %v14954_v5, 1  ;;  %v8402_v24 = vrot.slane %v14956_v48, 1  ;;  %v14976_v48 = vld [vmem:[%s16448_s2 + $0x158] sm:$0xff]  }
 0x3ec   : > { %v8404_v25 = vrot.slane %v14957_v23, 1  ;;  %v8966_v5 = vshll.u32 %v14971_v38, 16 }
 0x3ee   : > { %v8968_v23 = vrot.slane %v8966_v5, 2 }
 0x3ef   : > { %13649 = vmatmul.mubr.bf16.gmra.mrb[28].mxu1 %v7327_v53  ;;  %v7874_v53 = vrot.slane %v14933_v30, 1  ;;  %v14960_v30 = vld [vmem:[#allocation2 + $0x90] sm:$0xff]  }
 0x3f0   : > { %13652 = vmatprep.mubr.bf16.mxu1 %v7335_v32  ;;  %v14935_v32 = vld [vmem:[#allocation2 + $0x90] ss:$0 sps:$4 sm:$0x11]  }
 0x3f1   : > { %v7875_v16 = vsel %vm2070_vm9, %v7872_v29, %v7874_v53  ;;  %v7876_v27 = vrot.slane %v14935_v32, 1  ;;  %v14964_v29 = vld [vmem:[#allocation2 + $0x10] sm:$0xff]   ;;  %v8408_v32 = vrot.slane %v14960_v30, 1  ;;  %v14979_v30 = vld [vmem:[%s16448_s2 + $0x160] sm:$0xff]  }
 0x3f2   : > { %v8921_v34 = vshll.u32 %v14964_v29, 16 }
 0x3f4   : > { %v8923_v45 = vrot.slane %v8921_v34, 2 }
 0x3f7   : > { %13653 = vmatmul.mubr.bf16.gmra.mrb[32].mxu1 %v7343_v37  ;;  %v7877_v37 = vsel %vm2070_vm9, %v7874_v53, %v7876_v27  ;;  %v14963_v53 = vld [vmem:[#allocation2 + $0x8] sm:$0xfe]  }
 0x3f8   : > { %13672 = vmatprep.mubr.bf16.mxu1 %v7843_v4  ;;  %v8377_v4 = vsel %vm2070_vm9, %v8375_v47, %v8376_v42  ;;  %v8910_v12 = vshrl.u32 %v14963_v53, 16  ;;  %v8913_v27 = vshll.u32 %v14963_v53, 16  ;;  %v14962_v47 = vld [vmem:[#allocation2 + $0x98] ss:$0 sps:$4 sm:$0x11]  }
 0x3ff   : > { %13673 = vmatmul.mubr.bf16.vlgmr.msra.gmra.mrb[0].mxu1 %v7845_v46  ;;  %v8379_v46 = vsel %vm2070_vm9, %v8376_v42, %v8378_v21 }
 0x400   : > { %13676 = vmatprep.mubr.bf16.mxu1 %v7847_v51  ;;  %13709 = vmatpush3.bf16.msra.mxu1 %v16031_v36  ;;  %v14918_v36 = vld [vmem:[#allocation2 + $0x38] sm:$0xff]   ;;  %v8381_v51 = vsel %vm2070_vm9, %v8378_v21, %v8380_v35  ;;  %v14967_v21 = vld [vmem:[#allocation2 + $0x20] sm:$0xff]  }
 0x401   : > { %13710 = vmatprep.subr.bf16.mxu1 %v14916_v43  ;;  %v7854_v61 = vrot.slane %v14918_v36, 1  ;;  %v14945_v36 = vld [vmem:[#allocation2 + $0x40] sm:$0xff]  }
 0x403   : > { %v7855_v7 = vsel %vm2070_vm9, %v7852_v40, %v7854_v61  ;;  %v7857_v11 = vsel %vm2070_vm9, %v7854_v61, %v7856_v18  ;;  %v8386_v40 = vrot.slane %v14944_v63, 1  ;;  %v8388_v61 = vrot.slane %v14945_v36, 1 }
 0x404   : > { %13711 = vmatpush3.bf16.msra.mxu1 %v14916_v43  ;;  %v14943_v43 = vld [vmem:[%s16448_s2 + $0x108] sm:$0xff]   ;;  %v8390_v18 = vrot.slane %v14947_v22, 1 }
 0x405   : > { %13712 = vmatprep.subr.bf16.mxu1 %v14919_v10 }
 0x407   : > { %13677 = vmatmul.mubr.bf16.gmra.mrb[4].mxu1 %v7849_v59  ;;  %v8383_v59 = vsel %vm2070_vm9, %v8380_v35, %v8382_v58  ;;  %v8912_v35 = vrot.slane %v8910_v12, 1  ;;  %v14982_v12 = vld [vmem:[%s16448_s2 + $0x168] sm:$0xff]  }
 0x408   : > { %13680 = vmatprep.mubr.bf16.mxu1 %v7851_v13  ;;  %13713 = vmatpush3.bf16.msra.mxu1 %v14919_v10  ;;  %v14946_v10 = vld [vmem:[%s16448_s2 + $0x110] sm:$0xff]   ;;  %v8385_v13 = vsel %vm2070_vm9, %v8382_v58, %v8384_v55  ;;  %v8939_v58 = vshll.u32 %v14967_v21, 16 }
 0x409   : > { %13714 = vmatprep.subr.bf16.mxu1 %v14922_v52 }
 0x40c   : > { %13715 = vmatpush3.bf16.msra.mxu1 %v14922_v52  ;;  %v14949_v52 = vld [vmem:[%s16448_s2 + $0x118] sm:$0xff]  }
 0x40d   : > { %13716 = vmatprep.subr.bf16.mxu1 %v14925_v26 }
 0x40f   : > { %13681 = vmatmul.mubr.bf16.gmra.mrb[8].mxu1 %v7853_v44  ;;  %v8387_v44 = vsel %vm2070_vm9, %v8384_v55, %v8386_v40 }
 0x410   : > { %13684 = vmatprep.mubr.bf16.mxu1 %v7855_v7  ;;  %13717 = vmatpush3.bf16.msra.mxu1 %v14925_v26  ;;  %v14952_v26 = vld [vmem:[%s16448_s2 + $0x120] sm:$0xff]   ;;  %v8389_v7 = vsel %vm2070_vm9, %v8386_v40, %v8388_v61  ;;  %v8941_v40 = vrot.slane %v8939_v58, 2  ;;  %v14988_v58 = vld [vmem:[%s16448_s2 + $0x178] sm:$0xff]  }
 0x411   : > { %13718 = vmatprep.subr.bf16.mxu1 %v14928_v33 }
 0x414   : > { %13719 = vmatpush3.bf16.msra.mxu1 %v14928_v33  ;;  %v14955_v33 = vld [vmem:[%s16448_s2 + $0x128] sm:$0xff]  }
 0x415   : > { %13720 = vmatprep.subr.bf16.mxu1 %v14931_v28 }
 0x417   : > { %13685 = vmatmul.mubr.bf16.gmra.mrb[12].mxu1 %v7857_v11  ;;  %v8391_v11 = vsel %vm2070_vm9, %v8388_v61, %v8390_v18  ;;  %v14969_v61 = vld [vmem:[#allocation2 + $0x30] sm:$0xff]  }
 0x418   : > { %13688 = vmatprep.mubr.bf16.mxu1 %v7859_v50  ;;  %13721 = vmatpush3.bf16.msra.mxu1 %v14931_v28  ;;  %v14958_v28 = vld [vmem:[%s16448_s2 + $0x130] sm:$0xff]   ;;  %v8393_v50 = vsel %vm2070_vm9, %v8390_v18, %v8392_v1  ;;  %v8954_v6 = vshrl.u32 %v14969_v61, 16  ;;  %v14970_v18 = vld [vmem:[%s16448_s2 + $0x148] sm:$0xff]  }
 0x419   : > { %13722 = vmatprep.subr.bf16.mxu1 %v14934_v8 }
 0x41a   : > { %v8956_v14 = vrot.slane %v8954_v6, 1 }
 0x41c   : > { %13723 = vmatpush3.bf16.msra.mxu1 %v14934_v8  ;;  %v14961_v8 = vld [vmem:[%s16448_s2 + $0x138] sm:$0xff]  }
 0x41d   : > { %13760 = vmatprep.subr.bf16.mxu1 %v14939_v15 }
 0x41f   : > { %13689 = vmatmul.mubr.bf16.gmra.mrb[16].mxu1 %v7861_v60  ;;  %v8395_v60 = vsel %vm2070_vm9, %v8392_v1, %v8394_v9 }
 0x420   : > { %13692 = vmatprep.mubr.bf16.mxu1 %v7863_v19  ;;  %v8397_v19 = vsel %vm2070_vm9, %v8394_v9, %v8396_v17 }
 0x427   : > { %13693 = vmatmul.mubr.bf16.gmra.mrb[20].mxu1 %v7865_v2  ;;  %v8399_v2 = vsel %vm2070_vm9, %v8396_v17, %v8398_v57  ;;  %v14972_v17 = vld [vmem:[#allocation2 + $0x40] sm:$0xff]  }
 0x428   : > { %13696 = vmatprep.mubr.bf16.mxu1 %v7867_v56  ;;  %v8401_v56 = vsel %vm2070_vm9, %v8398_v57, %v8400_v62 }
 0x42f   : > { %13697 = vmatmul.mubr.bf16.gmra.mrb[24].mxu1 %v7869_v0  ;;  %v8403_v0 = vsel %vm2070_vm9, %v8400_v62, %v8402_v24  ;;  %v8972_v62 = vshrl.u32 %v14972_v17, 16 }
 0x430   : > { %13700 = vmatprep.mubr.bf16.mxu1 %v7871_v49  ;;  %v8405_v49 = vsel %vm2070_vm9, %v8402_v24, %v8404_v25  ;;  %v14974_v24 = vld [vmem:[#allocation2 + $0x48] sm:$0xff]  }
 0x431   : > { %v8981_v53 = vshrl.u32 %v14974_v24, 16 }
 0x437   : > { %13701 = vmatmul.mubr.bf16.gmra.mrb[28].mxu1 %v7873_v31  ;;  %v8406_v31 = vrot.slane %v14959_v3, 1 }
 0x438   : > { %13704 = vmatprep.mubr.bf16.mxu1 %v7875_v16  ;;  %v8918_v16 = vshrl.u32 %v14964_v29, 16 }
 0x439   : > { %v8407_v42 = vsel %vm2070_vm9, %v8404_v25, %v8406_v31  ;;  %v8409_v20 = vsel %vm2070_vm9, %v8406_v31, %v8408_v32  ;;  %v8984_v31 = vshll.u32 %v14974_v24, 16 }
 0x43f   : > { %13705 = vmatmul.mubr.bf16.gmra.mrb[32].mxu1 %v7877_v37  ;;  %v14965_v37 = vld [vmem:[#allocation2 + $0x18] sm:$0xff]  }
 0x440   : > { %13724 = vmatprep.mubr.bf16.mxu1 %v8377_v4  ;;  %v8920_v4 = vrot.slane %v8918_v16, 1  ;;  %v8927_v39 = vshrl.u32 %v14965_v37, 16 }
 0x442   : > { %v8924_v54 = vor.u32 %v8923_v45, %v8920_v4 }
 0x447   : > { %13725 = vmatmul.mubr.bf16.vlgmr.msra.gmra.mrb[0].mxu1 %v8379_v46  ;;  %v8410_v46 = vrot.slane %v14962_v47, 1  ;;  %v8986_v47 = vrot.slane %v8984_v31, 2 }
 0x448   : > { %13728 = vmatprep.mubr.bf16.mxu1 %v8381_v51  ;;  %13761 = vmatpush3.bf16.msra.mxu1 %v14939_v15  ;;  %v16119_v15 = vld [vmem:[%s16448_s2 + $0x140] sm:$0xff]   ;;  %v8930_v51 = vshll.u32 %v14965_v37, 16  ;;  %v14977_v37 = vld [vmem:[#allocation2 + $0x58] sm:$0xff]  }
 0x449   : > { %13762 = vmatprep.subr.bf16.mxu1 %v14943_v43 }
 0x44a   : > { %v8932_v63 = vrot.slane %v8930_v51, 2 }
 0x44c   : > { %13763 = vmatpush3.bf16.msra.mxu1 %v14943_v43  ;;  %v8915_v43 = vrot.slane %v8913_v27, 2 }
 0x44d   : > { %13764 = vmatprep.subr.bf16.mxu1 %v14946_v10 }
 0x44e   : > { %v8916_v55 = vor.u32 %v8915_v43, %v8912_v35  ;;  %v14985_v35 = vld [vmem:[%s16448_s2 + $0x170] sm:$0xff]  }
 0x44f   : > { %13729 = vmatmul.mubr.bf16.gmra.mrb[4].mxu1 %v8383_v59  ;;  %v8929_v59 = vrot.slane %v8927_v39, 1  ;;  %v9002_v39 = vshll.u32 %v14977_v37, 16 }
 0x450   : > { %13732 = vmatprep.mubr.bf16.mxu1 %v8385_v13  ;;  %13765 = vmatpush3.bf16.msra.mxu1 %v14946_v10  ;;  %v8936_v10 = vshrl.u32 %v14967_v21, 16  ;;  %v14968_v13 = vld [vmem:[#allocation2 + $0x28] sm:$0xff]   ;;  %v8925_v36 = vsel %vm3139_vm10, %v8916_v55, %v8924_v54  ;;  %v14978_v21 = vld [vmem:[#allocation2 + $0x60] sm:$0xff]  }
 0x451   : > { %13766 = vmatprep.subr.bf16.mxu1 %v14949_v52  ;;  %v8948_v22 = vshll.u32 %v14968_v13, 16 }
 0x454   : > { %13767 = vmatpush3.bf16.msra.mxu1 %v14949_v52  ;;  %v8411_v52 = vsel %vm2070_vm9, %v8408_v32, %v8410_v46  ;;  %v8999_v46 = vshrl.u32 %v14977_v37, 16 }
 0x455   : > { %13768 = vmatprep.subr.bf16.mxu1 %v14952_v26 }
 0x457   : > { %13733 = vmatmul.mubr.bf16.gmra.mrb[8].mxu1 %v8387_v44  ;;  %v8945_v44 = vshrl.u32 %v14968_v13, 16 }
 0x458   : > { %13736 = vmatprep.mubr.bf16.mxu1 %v8389_v7  ;;  %13769 = vmatpush3.bf16.msra.mxu1 %v14952_v26  ;;  %v8938_v26 = vrot.slane %v8936_v10, 1  ;;  %v9011_v10 = vshll.u32 %v14978_v21, 16 }
 0x459   : > { %13770 = vmatprep.subr.bf16.mxu1 %v14955_v33 }
 0x45a   : > { %v8942_v7 = vor.u32 %v8941_v40, %v8938_v26  ;;  %v9013_v26 = vrot.slane %v9011_v10, 2  ;;  %v14981_v40 = vld [vmem:[#allocation2 + $0x70] sm:$0xff]  }
 0x45b   : > { %v9026_v6 = vshrl.u32 %v14981_v40, 16 }
 0x45c   : > { %13771 = vmatpush3.bf16.msra.mxu1 %v14955_v33  ;;  %v8933_v33 = vor.u32 %v8932_v63, %v8929_v59  ;;  %v9004_v59 = vrot.slane %v9002_v39, 2  ;;  %v14980_v63 = vld [vmem:[#allocation2 + $0x68] sm:$0xff]  }
 0x45d   : > { %13772 = vmatprep.subr.bf16.mxu1 %v14958_v28  ;;  %v14990_v39 = vld [vmem:[#allocation2 + $0x8] sm:$0xfc]  }
 0x45e   : > { %v8934_v1 = vsel %vm3139_vm10, %v8924_v54, %v8933_v33  ;;  %v9008_v54 = vshrl.u32 %v14978_v21, 16  ;;  %v9576_v10 = vrot.slane %v14990_v39, 2  ;;  %v15017_v39 = vld [vmem:[#allocation2 + $0x10] sm:$0xfc]  }
 0x45f   : > { %13737 = vmatmul.mubr.bf16.gmra.mrb[12].mxu1 %v8391_v11  ;;  %v8950_v11 = vrot.slane %v8948_v22, 2  ;;  %v9020_v22 = vshll.u32 %v14980_v63, 16 }
 0x460   : > { %13740 = vmatprep.mubr.bf16.mxu1 %v8393_v50  ;;  %13773 = vmatpush3.bf16.msra.mxu1 %v14958_v28  ;;  %v8957_v28 = vshll.u32 %v14969_v61, 16  ;;  %v8943_v50 = vsel %vm3139_vm10, %v8933_v33, %v8942_v7  ;;  %v16165_v61 = vld [vmem:[%s16448_s2 + $0x180] sm:$0xff]  }
 0x461   : > { %13774 = vmatprep.subr.bf16.mxu1 %v14961_v8 }
 0x462   : > { %v8959_v9 = vrot.slane %v8957_v28, 2  ;;  %v9029_v28 = vshll.u32 %v14981_v40, 16  ;;  %v14995_v40 = vld [vmem:[#allocation2 + $0x28] sm:$0xff]  }
 0x464   : > { %13775 = vmatpush3.bf16.msra.mxu1 %v14961_v8  ;;  %v8947_v8 = vrot.slane %v8945_v44, 1  ;;  %v8960_v57 = vor.u32 %v8959_v9, %v8956_v14  ;;  %v9017_v44 = vshrl.u32 %v14980_v63, 16  ;;  %v9031_v14 = vrot.slane %v9029_v28, 2  ;;  %v14984_v9 = vld [vmem:[#allocation2 + $0x80] sm:$0xff]   ;;  %v15003_v28 = vld [vmem:[%s16448_s2 + $0x198] sm:$0xff]  }
 0x465   : > { %13812 = vmatprep.subr.bf16.mxu1 %v16119_v15  ;;  %v9044_v5 = vshrl.u32 %v14984_v9, 16 }
 0x466   : > { %v8951_v41 = vor.u32 %v8950_v11, %v8947_v8  ;;  %v9022_v8 = vrot.slane %v9020_v22, 2  ;;  %v14983_v11 = vld [vmem:[#allocation2 + $0x78] sm:$0xff]   ;;  %v15000_v22 = vld [vmem:[%s16448_s2 + $0x190] sm:$0xff]  }
 0x467   : > { %13741 = vmatmul.mubr.bf16.gmra.mrb[16].mxu1 %v8395_v60  ;;  %v14973_v60 = vld [vmem:[%s16448_s2 + $0x150] sm:$0xff]  }
 0x468   : > { %13744 = vmatprep.mubr.bf16.mxu1 %v8397_v19  ;;  %v8963_v19 = vshrl.u32 %v14971_v38, 16  ;;  %v8961_v25 = vsel %vm3139_vm10, %v8951_v41, %v8960_v57 }
 0x46f   : > { %13745 = vmatmul.mubr.bf16.gmra.mrb[20].mxu1 %v8399_v2  ;;  %v8975_v2 = vshll.u32 %v14972_v17, 16 }
 0x470   : > { %13748 = vmatprep.mubr.bf16.mxu1 %v8401_v56  ;;  %v8952_v56 = vsel %vm3139_vm10, %v8942_v7, %v8951_v41  ;;  %v9038_v41 = vshll.u32 %v14983_v11, 16 }
 0x471   : > { %v8977_v3 = vrot.slane %v8975_v2, 2 }
 0x477   : > { %13749 = vmatmul.mubr.bf16.gmra.mrb[24].mxu1 %v8403_v0  ;;  %v8974_v0 = vrot.slane %v8972_v62, 1 }
 0x478   : > { %13752 = vmatprep.mubr.bf16.mxu1 %v8405_v49  ;;  %v14975_v49 = vld [vmem:[#allocation2 + $0x50] sm:$0xff]  }
 0x479   : > { %v8978_v32 = vor.u32 %v8977_v3, %v8974_v0  ;;  %v8990_v16 = vshrl.u32 %v14975_v49, 16  ;;  %v8993_v34 = vshll.u32 %v14975_v49, 16 }
 0x47b   : > { %v8992_v4 = vrot.slane %v8990_v16, 1  ;;  %v8995_v45 = vrot.slane %v8993_v34, 2  ;;  %v14989_v34 = vld [vmem:[#allocation2 + $0x98] ss:$0 sps:$4 sm:$0x33]  }
 0x47c   : > { %v9071_v37 = vshrl.u32 %v14989_v34, 16 }
 0x47d   : > { %v8996_v51 = vor.u32 %v8995_v45, %v8992_v4 }
 0x47e   : > { %v9073_v21 = vrot.slane %v9071_v37, 1 }
 0x47f   : > { %13753 = vmatmul.mubr.bf16.gmra.mrb[28].mxu1 %v8407_v42  ;;  %v8983_v42 = vrot.slane %v8981_v53, 1 }
 0x480   : > { %13756 = vmatprep.mubr.bf16.mxu1 %v8409_v20 }
 0x481   : > { %v8987_v43 = vor.u32 %v8986_v47, %v8983_v42 }
 0x483   : > { %v8988_v55 = vsel %vm3139_vm10, %v8978_v32, %v8987_v43  ;;  %v8997_v13 = vsel %vm3139_vm10, %v8987_v43, %v8996_v51 }
 0x487   : > { %13757 = vmatmul.mubr.bf16.gmra.mrb[32].mxu1 %v8411_v52  ;;  %v9001_v52 = vrot.slane %v8999_v46, 1  ;;  %v14991_v46 = vld [vmem:[#allocation2 + $0x10] sm:$0xff]  }
 0x488   : > { %13776 = vmatprep.mubr.bf16.mxu1 %v8925_v36  ;;  %v9010_v36 = vrot.slane %v9008_v54, 1  ;;  %v9577_v54 = vrot.slane %v14991_v46, 2  ;;  %v15018_v46 = vld [vmem:[#allocation2 + $0x18] sm:$0xff]  }
 0x489   : > { %v9005_v33 = vor.u32 %v9004_v59, %v9001_v52  ;;  %v14994_v59 = vld [vmem:[#allocation2 + $0x20] sm:$0xff]  }
 0x48a   : > { %v9014_v7 = vor.u32 %v9013_v26, %v9010_v36  ;;  %v9578_v52 = vsel %vm253_vm11, %v9576_v10, %v9577_v54  ;;  %v14997_v36 = vld [vmem:[%s16448_s2 + $0x188] sm:$0xff]   ;;  %v10110_v10 = vrot.slane %v15017_v39, 2 }
 0x48c   : > { %v9015_v38 = vsel %vm3139_vm10, %v9005_v33, %v9014_v7 }
 0x48f   : > { %13777 = vmatmul.mubr.bf16.vlgmr.msra.gmra.mrb[0].mxu1 %v8934_v1  ;;  %v9019_v1 = vrot.slane %v9017_v44, 1  ;;  %v14996_v44 = vld [vmem:[#allocation2 + $0x30] sm:$0xff]  }
 0x490   : > { %13780 = vmatprep.mubr.bf16.mxu1 %v8943_v50  ;;  %13813 = vmatpush3.bf16.msra.mxu1 %v16119_v15  ;;  %v8965_v15 = vrot.slane %v8963_v19, 1  ;;  %v9028_v50 = vrot.slane %v9026_v6, 1  ;;  %v9585_v6 = vrot.slane %v14996_v44, 2  ;;  %v15023_v44 = vld [vmem:[#allocation2 + $0x38] sm:$0xff]  }
 0x491   : > { %13814 = vmatprep.subr.bf16.mxu1 %v14970_v18  ;;  %v9023_v17 = vor.u32 %v9022_v8, %v9019_v1  ;;  %v14998_v1 = vld [vmem:[#allocation2 + $0x38] sm:$0xff]  }
 0x492   : > { %v8969_v29 = vor.u32 %v8968_v23, %v8965_v15  ;;  %v9032_v19 = vor.u32 %v9031_v14, %v9028_v50  ;;  %v9046_v23 = vrot.slane %v9044_v5, 1  ;;  %v15009_v14 = vld [vmem:[%s16448_s2 + $0x1a8] sm:$0xff]  }
 0x493   : > { %v9024_v62 = vsel %vm3139_vm10, %v9014_v7, %v9023_v17  ;;  %v9583_v7 = vrot.slane %v14995_v40, 2  ;;  %v15022_v40 = vld [vmem:[#allocation2 + $0x30] sm:$0xff]  }
 0x494   : > { %13815 = vmatpush3.bf16.msra.mxu1 %v14970_v18  ;;  %v8970_v27 = vsel %vm3139_vm10, %v8960_v57, %v8969_v29  ;;  %v8979_v20 = vsel %vm3139_vm10, %v8969_v29, %v8978_v32  ;;  %v9006_v18 = vsel %vm3139_vm10, %v8996_v51, %v9005_v33  ;;  %v9047_v57 = vshll.u32 %v14984_v9, 16 }
 0x495   : > { %13816 = vmatprep.subr.bf16.mxu1 %v14973_v60  ;;  %v9033_v15 = vsel %vm3139_vm10, %v9023_v17, %v9032_v19  ;;  %v9586_v8 = vsel %vm253_vm11, %v9583_v7, %v9585_v6  ;;  %v15001_v17 = vld [vmem:[#allocation2 + $0x48] sm:$0xff]  }
 0x496   : > { %v9049_v24 = vrot.slane %v9047_v57, 2  ;;  %v9591_v5 = vrot.slane %v15001_v17, 2  ;;  %v15028_v17 = vld [vmem:[#allocation2 + $0x50] sm:$0xff]  }
 0x497   : > { %13781 = vmatmul.mubr.bf16.gmra.mrb[4].mxu1 %v8952_v56  ;;  %v14986_v56 = vld [vmem:[#allocation2 + $0x88] sm:$0xff]  }
 0x498   : > { %13784 = vmatprep.mubr.bf16.mxu1 %v8961_v25  ;;  %13817 = vmatpush3.bf16.msra.mxu1 %v14973_v60  ;;  %v9035_v60 = vshrl.u32 %v14983_v11, 16  ;;  %v14987_v25 = vld [vmem:[#allocation2 + $0x90] sm:$0xff]   ;;  %v9053_v3 = vshrl.u32 %v14986_v56, 16  ;;  %v9056_v49 = vshll.u32 %v14986_v56, 16  ;;  %v15006_v11 = vld [vmem:[%s16448_s2 + $0x1a0] sm:$0xff]  }
 0x499   : > { %13818 = vmatprep.subr.bf16.mxu1 %v14976_v48  ;;  %v9062_v29 = vshrl.u32 %v14987_v25, 16  ;;  %v9065_v53 = vshll.u32 %v14987_v25, 16 }
 0x49a   : > { %v9037_v2 = vrot.slane %v9035_v60, 1  ;;  %v9055_v32 = vrot.slane %v9053_v3, 1  ;;  %v9058_v16 = vrot.slane %v9056_v49, 2  ;;  %v15007_v3 = vld [vmem:[#allocation2 + $0x68] sm:$0xff]  }
 0x49b   : > { %v9067_v42 = vrot.slane %v9065_v53, 2 }
 0x49c   : > { %13819 = vmatpush3.bf16.msra.mxu1 %v14976_v48  ;;  %v9040_v48 = vrot.slane %v9038_v41, 2  ;;  %v9059_v47 = vor.u32 %v9058_v16, %v9055_v32  ;;  %v15002_v41 = vld [vmem:[#allocation2 + $0x50] sm:$0xff]   ;;  %v15010_v32 = vld [vmem:[#allocation2 + $0x78] sm:$0xff]  }
 0x49d   : > { %13820 = vmatprep.subr.bf16.mxu1 %v14979_v30  ;;  %v9593_v57 = vrot.slane %v15002_v41, 2  ;;  %v15029_v41 = vld [vmem:[#allocation2 + $0x58] sm:$0xff]  }
 0x49e   : > { %v9041_v0 = vor.u32 %v9040_v48, %v9037_v2  ;;  %v15004_v48 = vld [vmem:[#allocation2 + $0x58] sm:$0xff]  }
 0x49f   : > { %13785 = vmatmul.mubr.bf16.gmra.mrb[8].mxu1 %v8970_v27  ;;  %v9064_v27 = vrot.slane %v9062_v29, 1  ;;  %v9594_v56 = vsel %vm253_vm11, %v9591_v5, %v9593_v57  ;;  %v9599_v29 = vrot.slane %v15007_v3, 2  ;;  %v15034_v3 = vld [vmem:[#allocation2 + $0x70] sm:$0xff]  }
 0x4a0   : > { %13788 = vmatprep.mubr.bf16.mxu1 %v8979_v20  ;;  %13821 = vmatpush3.bf16.msra.mxu1 %v14979_v30  ;;  %v9050_v30 = vor.u32 %v9049_v24, %v9046_v23  ;;  %v9042_v31 = vsel %vm3139_vm10, %v9032_v19, %v9041_v0  ;;  %v9074_v20 = vshll.u32 %v14989_v34, 16  ;;  %v15012_v19 = vld [vmem:[%s16448_s2 + $0x1b0] sm:$0xff]   ;;  %v15020_v23 = vld [vmem:[%s16448_s2 + $0x1c0] sm:$0xff]   ;;  %v9595_v24 = vrot.slane %v15004_v48, 2 }
 0x4a1   : > { %13822 = vmatprep.subr.bf16.mxu1 %v14982_v12  ;;  %v9068_v4 = vor.u32 %v9067_v42, %v9064_v27  ;;  %v15011_v34 = vld [vmem:[#allocation2 + $0x80] sm:$0xff]  }
 0x4a2   : > { %v9060_v45 = vsel %vm3139_vm10, %v9050_v30, %v9059_v47  ;;  %v9605_v27 = vrot.slane %v15011_v34, 2  ;;  %v15031_v48 = vld [vmem:[#allocation2 + $0x60] sm:$0xff]   ;;  %v15038_v34 = vld [vmem:[#allocation2 + $0x88] sm:$0xff]  }
 0x4a3   : > { %v9069_v43 = vsel %vm3139_vm10, %v9059_v47, %v9068_v4  ;;  %v15013_v47 = vld [vmem:[#allocation2 + $0x88] sm:$0xff]  }
 0x4a4   : > { %13823 = vmatpush3.bf16.msra.mxu1 %v14982_v12  ;;  %v9051_v12 = vsel %vm3139_vm10, %v9041_v0, %v9050_v30  ;;  %v9596_v0 = vsel %vm253_vm11, %v9593_v57, %v9595_v24  ;;  %v15008_v30 = vld [vmem:[#allocation2 + $0x70] sm:$0xff]   ;;  %v10127_v57 = vrot.slane %v15029_v41, 2 }
 0x4a5   : > { %13824 = vmatprep.subr.bf16.mxu1 %v14985_v35  ;;  %v9601_v53 = vrot.slane %v15008_v30, 2  ;;  %v15035_v30 = vld [vmem:[#allocation2 + $0x78] sm:$0xff]  }
 0x4a7   : > { %13789 = vmatmul.mubr.bf16.gmra.mrb[12].mxu1 %v8988_v55  ;;  %v14992_v55 = vld [vmem:[#allocation2 + $0x18] sm:$0xff]   ;;  %v9602_v16 = vsel %vm253_vm11, %v9599_v29, %v9601_v53 }
 0x4a8   : > { %13792 = vmatprep.mubr.bf16.mxu1 %v8997_v13  ;;  %13825 = vmatpush3.bf16.msra.mxu1 %v14985_v35  ;;  %v9076_v35 = vrot.slane %v9074_v20, 2  ;;  %v9579_v63 = vrot.slane %v14992_v55, 2  ;;  %v9581_v13 = vrot.slane %v14994_v59, 2  ;;  %v15014_v20 = vld [vmem:[#allocation2 + $0x90] sm:$0xff]   ;;  %v15019_v55 = vld [vmem:[#allocation2 + $0x20] sm:$0xff]   ;;  %v15021_v59 = vld [vmem:[#allocation2 + $0x28] sm:$0xff]  }
 0x4a9   : > { %13826 = vmatprep.subr.bf16.mxu1 %v14988_v58 }
 0x4aa   : > { %v9077_v51 = vor.u32 %v9076_v35, %v9073_v21  ;;  %v9580_v26 = vsel %vm253_vm11, %v9577_v54, %v9579_v63  ;;  %v9582_v33 = vsel %vm253_vm11, %v9579_v63, %v9581_v13  ;;  %v15016_v35 = vld [vmem:[#allocation2 + $0x98] ss:$0 sps:$4 sm:$0x33]   ;;  %v10111_v54 = vrot.slane %v15018_v46, 2 }
 0x4ab   : > { %v10113_v63 = vrot.slane %v15019_v55, 2 }
 0x4ac   : > { %13827 = vmatpush3.bf16.msra.mxu1 %v14988_v58  ;;  %v9078_v58 = vsel %vm3139_vm10, %v9068_v4, %v9077_v51  ;;  %v9607_v4 = vrot.slane %v15013_v47, 2  ;;  %v9611_v51 = vrot.slane %v15016_v35, 2  ;;  %v15040_v47 = vld [vmem:[#allocation2 + $0x90] sm:$0xff]  }
 0x4ad   : > { %13864 = vmatprep.subr.bf16.mxu1 %v16165_v61 }
 0x4ae   : > { %v9608_v21 = vsel %vm253_vm11, %v9605_v27, %v9607_v4 }
 0x4af   : > { %13793 = vmatmul.mubr.bf16.gmra.mrb[16].mxu1 %v9006_v18  ;;  %v9584_v18 = vsel %vm253_vm11, %v9581_v13, %v9583_v7  ;;  %v10115_v13 = vrot.slane %v15021_v59, 2  ;;  %v10117_v7 = vrot.slane %v15022_v40, 2 }
 0x4b0   : > { %13796 = vmatprep.mubr.bf16.mxu1 %v9015_v38  ;;  %v9587_v38 = vrot.slane %v14998_v1, 2  ;;  %v15025_v1 = vld [vmem:[#allocation2 + $0x40] sm:$0xff]  }
 0x4b2   : > { %v9588_v9 = vsel %vm253_vm11, %v9585_v6, %v9587_v38  ;;  %v10119_v6 = vrot.slane %v15023_v44, 2 }
 0x4b7   : > { %13797 = vmatmul.mubr.bf16.gmra.mrb[20].mxu1 %v9024_v62  ;;  %v15015_v62 = vld [vmem:[%s16448_s2 + $0x1b8] sm:$0xff]  }
 0x4b8   : > { %13800 = vmatprep.mubr.bf16.mxu1 %v9033_v15  ;;  %v15005_v15 = vld [vmem:[#allocation2 + $0x60] sm:$0xff]  }
 0x4b9   : > { %v9597_v25 = vrot.slane %v15005_v15, 2  ;;  %v15032_v15 = vld [vmem:[#allocation2 + $0x68] sm:$0xff]  }
 0x4bb   : > { %v9598_v49 = vsel %vm253_vm11, %v9595_v24, %v9597_v25  ;;  %v10129_v24 = vrot.slane %v15031_v48, 2  ;;  %v15052_v48 = vld [vmem:[#allocation2 + $0x40] sm:$0xff]  }
 0x4bf   : > { %13801 = vmatmul.mubr.bf16.gmra.mrb[24].mxu1 %v9042_v31  ;;  %v9600_v31 = vsel %vm253_vm11, %v9597_v25, %v9599_v29  ;;  %v10131_v25 = vrot.slane %v15032_v15, 2  ;;  %v10133_v29 = vrot.slane %v15034_v3, 2 }
 0x4c0   : > { %13804 = vmatprep.mubr.bf16.mxu1 %v9051_v12  ;;  %v9603_v12 = vrot.slane %v15010_v32, 2  ;;  %v15037_v32 = vld [vmem:[#allocation2 + $0x80] sm:$0xff]  }
 0x4c2   : > { %v9604_v42 = vsel %vm253_vm11, %v9601_v53, %v9603_v12  ;;  %v9606_v37 = vsel %vm253_vm11, %v9603_v12, %v9605_v27  ;;  %v10135_v53 = vrot.slane %v15035_v30, 2  ;;  %v10137_v12 = vrot.slane %v15037_v32, 2  ;;  %v15057_v32 = vld [vmem:[%s16448_s2 + $0x218] sm:$0xff]  }
 0x4c3   : > { %v10139_v27 = vrot.slane %v15038_v34, 2  ;;  %v10701_v30 = vshll.u32 %v15052_v48, 16 }
 0x4c5   : > { %v10703_v34 = vrot.slane %v10701_v30, 3 }
 0x4c7   : > { %13805 = vmatmul.mubr.bf16.gmra.mrb[28].mxu1 %v9060_v45  ;;  %v9609_v45 = vrot.slane %v15014_v20, 2  ;;  %v15041_v20 = vld [vmem:[#allocation2 + $0x98] sm:$0xff]  }
 0x4c8   : > { %13808 = vmatprep.mubr.bf16.mxu1 %v9069_v43  ;;  %v10143_v35 = vrot.slane %v15041_v20, 2  ;;  %v15060_v20 = vld [vmem:[%s16448_s2 + $0x220] sm:$0xff]  }
 0x4c9   : > { %v9610_v43 = vsel %vm253_vm11, %v9607_v4, %v9609_v45  ;;  %v15045_v4 = vld [vmem:[#allocation2 + $0x18] sm:$0xff]  }
 0x4ca   : > { %v10656_v46 = vshll.u32 %v15045_v4, 16 }
 0x4cc   : > { %v10658_v59 = vrot.slane %v10656_v46, 3 }
 0x4cf   : > { %13809 = vmatmul.mubr.bf16.gmra.mrb[32].mxu1 %v9078_v58  ;;  %v9612_v58 = vsel %vm253_vm11, %v9609_v45, %v9611_v51  ;;  %v15044_v45 = vld [vmem:[#allocation2 + $0x10] sm:$0xfc]  }
 0x4d0   : > { %13828 = vmatprep.mubr.bf16.mxu1 %v9578_v52  ;;  %v10112_v52 = vsel %vm253_vm11, %v10110_v10, %v10111_v54  ;;  %v10645_v39 = vshrl.u32 %v15044_v45, 16  ;;  %v10648_v51 = vshll.u32 %v15044_v45, 16  ;;  %v15043_v10 = vld [vmem:[#allocation2 + $0xa0] ss:$0 sps:$4 sm:$0x33]  }
 0x4d7   : > { %13829 = vmatmul.mubr.bf16.vlgmr.msra.gmra.mrb[0].mxu1 %v9580_v26  ;;  %v10114_v26 = vsel %vm253_vm11, %v10111_v54, %v10113_v63 }
 0x4d8   : > { %13832 = vmatprep.mubr.bf16.mxu1 %v9582_v33  ;;  %13865 = vmatpush3.bf16.msra.mxu1 %v16165_v61  ;;  %v14999_v61 = vld [vmem:[#allocation2 + $0x40] sm:$0xff]   ;;  %v10116_v33 = vsel %vm253_vm11, %v10113_v63, %v10115_v13  ;;  %v15048_v63 = vld [vmem:[#allocation2 + $0x28] sm:$0xff]  }
 0x4d9   : > { %13866 = vmatprep.subr.bf16.mxu1 %v14997_v36  ;;  %v9589_v50 = vrot.slane %v14999_v61, 2  ;;  %v15026_v61 = vld [vmem:[#allocation2 + $0x48] sm:$0xff]  }
 0x4db   : > { %v9590_v60 = vsel %vm253_vm11, %v9587_v38, %v9589_v50  ;;  %v9592_v2 = vsel %vm253_vm11, %v9589_v50, %v9591_v5  ;;  %v10121_v38 = vrot.slane %v15025_v1, 2  ;;  %v10123_v50 = vrot.slane %v15026_v61, 2 }
 0x4dc   : > { %13867 = vmatpush3.bf16.msra.mxu1 %v14997_v36  ;;  %v15024_v36 = vld [vmem:[%s16448_s2 + $0x1c8] sm:$0xff]   ;;  %v10125_v5 = vrot.slane %v15028_v17, 2 }
 0x4dd   : > { %13868 = vmatprep.subr.bf16.mxu1 %v15000_v22 }
 0x4df   : > { %13833 = vmatmul.mubr.bf16.gmra.mrb[4].mxu1 %v9584_v18  ;;  %v10118_v18 = vsel %vm253_vm11, %v10115_v13, %v10117_v7  ;;  %v10647_v13 = vrot.slane %v10645_v39, 2  ;;  %v15063_v39 = vld [vmem:[%s16448_s2 + $0x228] sm:$0xff]  }
 0x4e0   : > { %13836 = vmatprep.mubr.bf16.mxu1 %v9586_v8  ;;  %13869 = vmatpush3.bf16.msra.mxu1 %v15000_v22  ;;  %v15027_v22 = vld [vmem:[%s16448_s2 + $0x1d0] sm:$0xff]   ;;  %v10120_v8 = vsel %vm253_vm11, %v10117_v7, %v10119_v6  ;;  %v10674_v7 = vshll.u32 %v15048_v63, 16 }
 0x4e1   : > { %13870 = vmatprep.subr.bf16.mxu1 %v15003_v28 }
 0x4e4   : > { %13871 = vmatpush3.bf16.msra.mxu1 %v15003_v28  ;;  %v15030_v28 = vld [vmem:[%s16448_s2 + $0x1d8] sm:$0xff]  }
 0x4e5   : > { %13872 = vmatprep.subr.bf16.mxu1 %v15006_v11 }
 0x4e7   : > { %13837 = vmatmul.mubr.bf16.gmra.mrb[8].mxu1 %v9588_v9  ;;  %v10122_v9 = vsel %vm253_vm11, %v10119_v6, %v10121_v38 }
 0x4e8   : > { %13840 = vmatprep.mubr.bf16.mxu1 %v9590_v60  ;;  %13873 = vmatpush3.bf16.msra.mxu1 %v15006_v11  ;;  %v15033_v11 = vld [vmem:[%s16448_s2 + $0x1e0] sm:$0xff]   ;;  %v10124_v60 = vsel %vm253_vm11, %v10121_v38, %v10123_v50  ;;  %v10676_v38 = vrot.slane %v10674_v7, 3  ;;  %v15069_v7 = vld [vmem:[%s16448_s2 + $0x238] sm:$0xff]  }
 0x4e9   : > { %13874 = vmatprep.subr.bf16.mxu1 %v15009_v14 }
 0x4ec   : > { %13875 = vmatpush3.bf16.msra.mxu1 %v15009_v14  ;;  %v15036_v14 = vld [vmem:[%s16448_s2 + $0x1e8] sm:$0xff]  }
 0x4ed   : > { %13876 = vmatprep.subr.bf16.mxu1 %v15012_v19 }
 0x4ef   : > { %13841 = vmatmul.mubr.bf16.gmra.mrb[12].mxu1 %v9592_v2  ;;  %v10126_v2 = vsel %vm253_vm11, %v10123_v50, %v10125_v5  ;;  %v15050_v50 = vld [vmem:[#allocation2 + $0x38] sm:$0xff]  }
 0x4f0   : > { %13844 = vmatprep.mubr.bf16.mxu1 %v9594_v56  ;;  %13877 = vmatpush3.bf16.msra.mxu1 %v15012_v19  ;;  %v15039_v19 = vld [vmem:[%s16448_s2 + $0x1f0] sm:$0xff]   ;;  %v10128_v56 = vsel %vm253_vm11, %v10125_v5, %v10127_v57  ;;  %v10689_v41 = vshrl.u32 %v15050_v50, 16  ;;  %v15051_v5 = vld [vmem:[%s16448_s2 + $0x208] sm:$0xff]  }
 0x4f1   : > { %13878 = vmatprep.subr.bf16.mxu1 %v15015_v62 }
 0x4f2   : > { %v10691_v15 = vrot.slane %v10689_v41, 2 }
 0x4f4   : > { %13879 = vmatpush3.bf16.msra.mxu1 %v15015_v62  ;;  %v15042_v62 = vld [vmem:[%s16448_s2 + $0x1f8] sm:$0xff]  }
 0x4f5   : > { %13916 = vmatprep.subr.bf16.mxu1 %v15020_v23 }
 0x4f7   : > { %13845 = vmatmul.mubr.bf16.gmra.mrb[16].mxu1 %v9596_v0  ;;  %v10130_v0 = vsel %vm253_vm11, %v10127_v57, %v10129_v24 }
 0x4f8   : > { %13848 = vmatprep.mubr.bf16.mxu1 %v9598_v49  ;;  %v10132_v49 = vsel %vm253_vm11, %v10129_v24, %v10131_v25 }
 0x4ff   : > { %13849 = vmatmul.mubr.bf16.gmra.mrb[20].mxu1 %v9600_v31  ;;  %v10134_v31 = vsel %vm253_vm11, %v10131_v25, %v10133_v29  ;;  %v15053_v25 = vld [vmem:[#allocation2 + $0x48] sm:$0xff]  }
 0x500   : > { %13852 = vmatprep.mubr.bf16.mxu1 %v9602_v16  ;;  %v10136_v16 = vsel %vm253_vm11, %v10133_v29, %v10135_v53 }
 0x507   : > { %13853 = vmatmul.mubr.bf16.gmra.mrb[24].mxu1 %v9604_v42  ;;  %v10138_v42 = vsel %vm253_vm11, %v10135_v53, %v10137_v12  ;;  %v10707_v53 = vshrl.u32 %v15053_v25, 16 }
 0x508   : > { %13856 = vmatprep.mubr.bf16.mxu1 %v9606_v37  ;;  %v10140_v37 = vsel %vm253_vm11, %v10137_v12, %v10139_v27  ;;  %v15055_v12 = vld [vmem:[#allocation2 + $0x50] sm:$0xff]  }
 0x509   : > { %v10716_v45 = vshrl.u32 %v15055_v12, 16 }
 0x50f   : > { %13857 = vmatmul.mubr.bf16.gmra.mrb[28].mxu1 %v9608_v21  ;;  %v10141_v21 = vrot.slane %v15040_v47, 2 }
 0x510   : > { %13860 = vmatprep.mubr.bf16.mxu1 %v9610_v43  ;;  %v10653_v43 = vshrl.u32 %v15045_v4, 16 }
 0x511   : > { %v10142_v54 = vsel %vm253_vm11, %v10139_v27, %v10141_v21  ;;  %v10144_v55 = vsel %vm253_vm11, %v10141_v21, %v10143_v35  ;;  %v10719_v21 = vshll.u32 %v15055_v12, 16  ;;  %v15068_v12 = vld [vmem:[#allocation2 + $0x98] sm:$0xff]  }
 0x517   : > { %13861 = vmatmul.mubr.bf16.gmra.mrb[32].mxu1 %v9612_v58  ;;  %v15046_v58 = vld [vmem:[#allocation2 + $0x20] sm:$0xff]  }
 0x518   : > { %13880 = vmatprep.mubr.bf16.mxu1 %v10112_v52  ;;  %v10655_v52 = vrot.slane %v10653_v43, 2  ;;  %v10662_v40 = vshrl.u32 %v15046_v58, 16 }
 0x51a   : > { %v10659_v44 = vor.u32 %v10658_v59, %v10655_v52 }
 0x51f   : > { %13881 = vmatmul.mubr.bf16.vlgmr.msra.gmra.mrb[0].mxu1 %v10114_v26  ;;  %v10145_v26 = vrot.slane %v15043_v10, 2  ;;  %v10721_v10 = vrot.slane %v10719_v21, 3 }
 0x520   : > { %13884 = vmatprep.mubr.bf16.mxu1 %v10116_v33  ;;  %13917 = vmatpush3.bf16.msra.mxu1 %v15020_v23  ;;  %v16253_v23 = vld [vmem:[%s16448_s2 + $0x200] sm:$0xff]   ;;  %v10665_v33 = vshll.u32 %v15046_v58, 16 }
 0x521   : > { %13918 = vmatprep.subr.bf16.mxu1 %v15024_v36  ;;  %v15058_v58 = vld [vmem:[#allocation2 + $0x60] sm:$0xff]  }
 0x522   : > { %v10667_v1 = vrot.slane %v10665_v33, 3 }
 0x524   : > { %13919 = vmatpush3.bf16.msra.mxu1 %v15024_v36  ;;  %v10650_v36 = vrot.slane %v10648_v51, 3 }
 0x525   : > { %13920 = vmatprep.subr.bf16.mxu1 %v15027_v22 }
 0x526   : > { %v10651_v6 = vor.u32 %v10650_v36, %v10647_v13  ;;  %v15066_v13 = vld [vmem:[%s16448_s2 + $0x230] sm:$0xff]  }
 0x527   : > { %13885 = vmatmul.mubr.bf16.gmra.mrb[4].mxu1 %v10118_v18  ;;  %v10664_v18 = vrot.slane %v10662_v40, 2  ;;  %v10737_v40 = vshll.u32 %v15058_v58, 16 }
 0x528   : > { %13888 = vmatprep.mubr.bf16.mxu1 %v10120_v8  ;;  %13921 = vmatpush3.bf16.msra.mxu1 %v15027_v22  ;;  %v10671_v22 = vshrl.u32 %v15048_v63, 16  ;;  %v15049_v8 = vld [vmem:[#allocation2 + $0x30] sm:$0xff]   ;;  %v10660_v61 = vsel %vm4876_vm12, %v10651_v6, %v10659_v44  ;;  %v15059_v63 = vld [vmem:[#allocation2 + $0x68] sm:$0xff]  }
 0x529   : > { %13922 = vmatprep.subr.bf16.mxu1 %v15030_v28  ;;  %v10683_v17 = vshll.u32 %v15049_v8, 16 }
 0x52c   : > { %13923 = vmatpush3.bf16.msra.mxu1 %v15030_v28  ;;  %v10146_v28 = vsel %vm253_vm11, %v10143_v35, %v10145_v26  ;;  %v10734_v26 = vshrl.u32 %v15058_v58, 16 }
 0x52d   : > { %13924 = vmatprep.subr.bf16.mxu1 %v15033_v11 }
 0x52f   : > { %13889 = vmatmul.mubr.bf16.gmra.mrb[8].mxu1 %v10122_v9  ;;  %v10680_v9 = vshrl.u32 %v15049_v8, 16 }
 0x530   : > { %13892 = vmatprep.mubr.bf16.mxu1 %v10124_v60  ;;  %13925 = vmatpush3.bf16.msra.mxu1 %v15033_v11  ;;  %v10673_v11 = vrot.slane %v10671_v22, 2  ;;  %v10746_v22 = vshll.u32 %v15059_v63, 16 }
 0x531   : > { %13926 = vmatprep.subr.bf16.mxu1 %v15036_v14 }
 0x532   : > { %v10677_v60 = vor.u32 %v10676_v38, %v10673_v11  ;;  %v10748_v11 = vrot.slane %v10746_v22, 3  ;;  %v15062_v38 = vld [vmem:[#allocation2 + $0x78] sm:$0xff]  }
 0x533   : > { %v10764_v41 = vshll.u32 %v15062_v38, 16 }
 0x534   : > { %13927 = vmatpush3.bf16.msra.mxu1 %v15036_v14  ;;  %v10668_v14 = vor.u32 %v10667_v1, %v10664_v18  ;;  %v10739_v18 = vrot.slane %v10737_v40, 3  ;;  %v15061_v1 = vld [vmem:[#allocation2 + $0x70] sm:$0xff]  }
 0x535   : > { %13928 = vmatprep.subr.bf16.mxu1 %v15039_v19 }
 0x536   : > { %v10669_v57 = vsel %vm4876_vm12, %v10659_v44, %v10668_v14  ;;  %v10743_v44 = vshrl.u32 %v15059_v63, 16 }
 0x537   : > { %13893 = vmatmul.mubr.bf16.gmra.mrb[12].mxu1 %v10126_v2  ;;  %v10685_v2 = vrot.slane %v10683_v17, 3 }
 0x538   : > { %13896 = vmatprep.mubr.bf16.mxu1 %v10128_v56  ;;  %13929 = vmatpush3.bf16.msra.mxu1 %v15039_v19  ;;  %v10692_v19 = vshll.u32 %v15050_v50, 16  ;;  %v10678_v56 = vsel %vm4876_vm12, %v10668_v14, %v10677_v60  ;;  %v10752_v14 = vshrl.u32 %v15061_v1, 16 }
 0x539   : > { %13930 = vmatprep.subr.bf16.mxu1 %v15042_v62 }
 0x53a   : > { %v10694_v24 = vrot.slane %v10692_v19, 3 }
 0x53c   : > { %13931 = vmatpush3.bf16.msra.mxu1 %v15042_v62  ;;  %v10682_v62 = vrot.slane %v10680_v9, 2  ;;  %v10695_v29 = vor.u32 %v10694_v24, %v10691_v15  ;;  %v10755_v9 = vshll.u32 %v15061_v1, 16  ;;  %v15065_v15 = vld [vmem:[#allocation2 + $0x88] sm:$0xff]  }
 0x53d   : > { %13968 = vmatprep.subr.bf16.mxu1 %v16253_v23  ;;  %v10782_v30 = vshll.u32 %v15065_v15, 16 }
 0x53e   : > { %v10686_v3 = vor.u32 %v10685_v2, %v10682_v62  ;;  %v15064_v62 = vld [vmem:[#allocation2 + $0x80] sm:$0xff]  }
 0x53f   : > { %13897 = vmatmul.mubr.bf16.gmra.mrb[16].mxu1 %v10130_v0  ;;  %v15054_v0 = vld [vmem:[%s16448_s2 + $0x210] sm:$0xff]  }
 0x540   : > { %13900 = vmatprep.mubr.bf16.mxu1 %v10132_v49  ;;  %v10698_v49 = vshrl.u32 %v15052_v48, 16  ;;  %v10696_v27 = vsel %vm4876_vm12, %v10686_v3, %v10695_v29 }
 0x547   : > { %13901 = vmatmul.mubr.bf16.gmra.mrb[20].mxu1 %v10134_v31  ;;  %v10710_v31 = vshll.u32 %v15053_v25, 16  ;;  %v10770_v25 = vshrl.u32 %v15064_v62, 16 }
 0x548   : > { %13904 = vmatprep.mubr.bf16.mxu1 %v10136_v16  ;;  %v10687_v16 = vsel %vm4876_vm12, %v10677_v60, %v10686_v3  ;;  %v10761_v60 = vshrl.u32 %v15062_v38, 16  ;;  %v15076_v38 = vld [vmem:[#allocation2 + $0x38] sm:$0xff]  }
 0x549   : > { %v10712_v47 = vrot.slane %v10710_v31, 3 }
 0x54a   : > { %v10763_v48 = vrot.slane %v10761_v60, 2 }
 0x54f   : > { %13905 = vmatmul.mubr.bf16.gmra.mrb[24].mxu1 %v10138_v42  ;;  %v10709_v42 = vrot.slane %v10707_v53, 2  ;;  %v10772_v53 = vrot.slane %v10770_v25, 2  ;;  %v15081_v25 = vld [vmem:[#allocation2 + $0x60] sm:$0xff]  }
 0x550   : > { %13908 = vmatprep.mubr.bf16.mxu1 %v10140_v37  ;;  %v15056_v37 = vld [vmem:[#allocation2 + $0x58] sm:$0xff]  }
 0x551   : > { %v10713_v35 = vor.u32 %v10712_v47, %v10709_v42  ;;  %v10725_v43 = vshrl.u32 %v15056_v37, 16  ;;  %v10728_v46 = vshll.u32 %v15056_v37, 16 }
 0x553   : > { %v10727_v52 = vrot.slane %v10725_v43, 2  ;;  %v10730_v59 = vrot.slane %v10728_v46, 3  ;;  %v15070_v43 = vld [vmem:[#allocation2 + $0xa0] ss:$0 sps:$4 sm:$0x77]  }
 0x554   : > { %v10809_v58 = vshll.u32 %v15070_v43, 16 }
 0x555   : > { %v10731_v33 = vor.u32 %v10730_v59, %v10727_v52 }
 0x556   : > { %v10811_v63 = vrot.slane %v10809_v58, 3  ;;  %v16326_v58 = vld [vmem:[%s16450_s4] ss:$0 sm:$0xff] }
 0x557   : > { %13909 = vmatmul.mubr.bf16.gmra.mrb[28].mxu1 %v10142_v54  ;;  %v10718_v54 = vrot.slane %v10716_v45, 2 }
 0x558   : > { %13912 = vmatprep.mubr.bf16.mxu1 %v10144_v55 }
 0x559   : > { %v10722_v36 = vor.u32 %v10721_v10, %v10718_v54  ;;  %v10806_v10 = vshrl.u32 %v15070_v43, 16 }
 0x55b   : > { %v10723_v6 = vsel %vm4876_vm12, %v10713_v35, %v10722_v36  ;;  %v10732_v8 = vsel %vm4876_vm12, %v10722_v36, %v10731_v33  ;;  %v10808_v59 = vrot.slane %v10806_v10, 2  ;;  %v15072_v36 = vld [vmem:[#allocation2 + $0x18] sm:$0xff]  }
 0x55d   : > { %v10812_v40 = vor.u32 %v10811_v63, %v10808_v59 }
 0x55f   : > { %13913 = vmatmul.mubr.bf16.gmra.mrb[32].mxu1 %v10146_v28  ;;  %v10736_v28 = vrot.slane %v10734_v26, 2  ;;  %v15071_v26 = vld [vmem:[#allocation2 + $0x10] sm:$0xf8]  }
 0x560   : > { %13932 = vmatprep.mubr.bf16.mxu1 %v10660_v61  ;;  %v10745_v61 = vrot.slane %v10743_v44, 2  ;;  %v11311_v44 = vrot.slane %v15071_v26, 3 }
 0x561   : > { %v10740_v50 = vor.u32 %v10739_v18, %v10736_v28  ;;  %v15074_v28 = vld [vmem:[#allocation2 + $0x28] sm:$0xff]  }
 0x562   : > { %v10749_v17 = vor.u32 %v10748_v11, %v10745_v61  ;;  %v11316_v1 = vrot.slane %v15074_v28, 3  ;;  %v15075_v61 = vld [vmem:[#allocation2 + $0x30] sm:$0xff]  }
 0x563   : > { %v10741_v19 = vsel %vm4876_vm12, %v10731_v33, %v10740_v50  ;;  %v11312_v33 = vrot.slane %v15072_v36, 3 }
 0x564   : > { %v10750_v2 = vsel %vm4876_vm12, %v10740_v50, %v10749_v17  ;;  %v11318_v50 = vrot.slane %v15075_v61, 3 }
 0x567   : > { %13933 = vmatmul.mubr.bf16.vlgmr.msra.gmra.mrb[0].mxu1 %v10669_v57  ;;  %v10757_v57 = vrot.slane %v10755_v9, 3  ;;  %v11319_v9 = vsel %vm5544_vm13, %v11316_v1, %v11318_v50 }
 0x568   : > { %13936 = vmatprep.mubr.bf16.mxu1 %v10678_v56  ;;  %13969 = vmatpush3.bf16.msra.mxu1 %v16253_v23  ;;  %v10700_v23 = vrot.slane %v10698_v49, 2  ;;  %v10766_v56 = vrot.slane %v10764_v41, 3  ;;  %v10779_v49 = vshrl.u32 %v15065_v15, 16  ;;  %v15078_v41 = vld [vmem:[#allocation2 + $0x48] sm:$0xff]  }
 0x569   : > { %13970 = vmatprep.subr.bf16.mxu1 %v15051_v5 }
 0x56a   : > { %v10704_v4 = vor.u32 %v10703_v34, %v10700_v23  ;;  %v10767_v3 = vor.u32 %v10766_v56, %v10763_v48  ;;  %v10781_v23 = vrot.slane %v10779_v49, 2  ;;  %v10784_v34 = vrot.slane %v10782_v30, 3  ;;  %v15080_v48 = vld [vmem:[#allocation2 + $0x58] sm:$0xff]  }
 0x56b   : > { %v11328_v15 = vrot.slane %v15080_v48, 3  ;;  %v11330_v49 = vrot.slane %v15081_v25, 3  ;;  %v11783_v48 = vld [vmem:[%s15158_s6 + $0x28] sm:$0xff] }
 0x56c   : > { %13971 = vmatpush3.bf16.msra.mxu1 %v15051_v5  ;;  %v10705_v51 = vsel %vm4876_vm12, %v10695_v29, %v10704_v4  ;;  %v10714_v55 = vsel %vm4876_vm12, %v10704_v4, %v10713_v35  ;;  %v10754_v5 = vrot.slane %v10752_v14, 2  ;;  %v10785_v37 = vor.u32 %v10784_v34, %v10781_v23 }
 0x56d   : > { %13972 = vmatprep.subr.bf16.mxu1 %v15054_v0  ;;  %v10800_v4 = vshll.u32 %v15068_v12, 16  ;;  %v11320_v14 = vrot.slane %v15076_v38, 3 }
 0x56e   : > { %v10758_v24 = vor.u32 %v10757_v57, %v10754_v5  ;;  %v11324_v5 = vrot.slane %v15078_v41, 3 }
 0x56f   : > { %13937 = vmatmul.mubr.bf16.gmra.mrb[4].mxu1 %v10687_v16  ;;  %v11321_v60 = vsel %vm5544_vm13, %v11318_v50, %v11320_v14 }
 0x570   : > { %13940 = vmatprep.mubr.bf16.mxu1 %v10696_v27  ;;  %13973 = vmatpush3.bf16.msra.mxu1 %v15054_v0  ;;  %v10773_v0 = vshll.u32 %v15064_v62, 16  ;;  %v10759_v29 = vsel %vm4876_vm12, %v10749_v17, %v10758_v24  ;;  %v10768_v16 = vsel %vm4876_vm12, %v10758_v24, %v10767_v3  ;;  %v15077_v17 = vld [vmem:[#allocation2 + $0x40] sm:$0xff]   ;;  %v15079_v62 = vld [vmem:[#allocation2 + $0x50] sm:$0xff]  }
 0x571   : > { %13974 = vmatprep.subr.bf16.mxu1 %v15057_v32  ;;  %v11326_v56 = vrot.slane %v15079_v62, 3 }
 0x572   : > { %v10775_v31 = vrot.slane %v10773_v0, 3 }
 0x573   : > { %v11327_v24 = vsel %vm5544_vm13, %v11324_v5, %v11326_v56  ;;  %v11329_v0 = vsel %vm5544_vm13, %v11326_v56, %v11328_v15 }
 0x574   : > { %13975 = vmatpush3.bf16.msra.mxu1 %v15057_v32  ;;  %v15067_v32 = vld [vmem:[#allocation2 + $0x90] sm:$0xff]   ;;  %v10776_v27 = vor.u32 %v10775_v31, %v10772_v53 }
 0x575   : > { %13976 = vmatprep.subr.bf16.mxu1 %v15060_v20  ;;  %v10788_v42 = vshrl.u32 %v15067_v32, 16  ;;  %v10791_v47 = vshll.u32 %v15067_v32, 16  ;;  %v15083_v53 = vld [vmem:[#allocation2 + $0x70] sm:$0xff]   ;;  %v15084_v32 = vld [vmem:[#allocation2 + $0x78] sm:$0xff]  }
 0x576   : > { %v10777_v45 = vsel %vm4876_vm12, %v10767_v3, %v10776_v27  ;;  %v10786_v46 = vsel %vm4876_vm12, %v10776_v27, %v10785_v37  ;;  %v15082_v3 = vld [vmem:[#allocation2 + $0x68] sm:$0xff]   ;;  %v11336_v23 = vrot.slane %v15084_v32, 3 }
 0x577   : > { %13941 = vmatmul.mubr.bf16.gmra.mrb[8].mxu1 %v10705_v51  ;;  %v10790_v21 = vrot.slane %v10788_v42, 2  ;;  %v10793_v35 = vrot.slane %v10791_v47, 3  ;;  %v10802_v51 = vrot.slane %v10800_v4, 3  ;;  %v11332_v30 = vrot.slane %v15082_v3, 3  ;;  %v15086_v42 = vld [vmem:[#allocation2 + $0x88] sm:$0xff]   ;;  %v15087_v4 = vld [vmem:[#allocation2 + $0x90] sm:$0xff]  }
 0x578   : > { %13944 = vmatprep.mubr.bf16.mxu1 %v10714_v55  ;;  %13977 = vmatpush3.bf16.msra.mxu1 %v15060_v20  ;;  %v10797_v20 = vshrl.u32 %v15068_v12, 16  ;;  %v15085_v12 = vld [vmem:[#allocation2 + $0x80] sm:$0xff]  }
 0x579   : > { %13978 = vmatprep.subr.bf16.mxu1 %v15063_v39  ;;  %v10794_v54 = vor.u32 %v10793_v35, %v10790_v21  ;;  %v11333_v31 = vsel %vm5544_vm13, %v11330_v49, %v11332_v30  ;;  %v11338_v47 = vrot.slane %v15085_v12, 3  ;;  %v15088_v21 = vld [vmem:[#allocation2 + $0x98] sm:$0xff]   ;;  %v11342_v35 = vrot.slane %v15087_v4, 3 }
 0x57a   : > { %v11344_v43 = vrot.slane %v15088_v21, 3  ;;  %v11789_v12 = vld [vmem:[%s15158_s6 + $0x58] sm:$0xff] }
 0x57b   : > { %v10795_v52 = vsel %vm4876_vm12, %v10785_v37, %v10794_v54  ;;  %v11340_v37 = vrot.slane %v15086_v42, 3 }
 0x57c   : > { %13979 = vmatpush3.bf16.msra.mxu1 %v15063_v39  ;;  %v10799_v39 = vrot.slane %v10797_v20, 2  ;;  %v11339_v20 = vsel %vm5544_vm13, %v11336_v23, %v11338_v47 }
 0x57d   : > { %13980 = vmatprep.subr.bf16.mxu1 %v15066_v13 }
 0x57e   : > { %v10803_v55 = vor.u32 %v10802_v51, %v10799_v39  ;;  %v15089_v39 = vld [vmem:[#allocation2 + $0xa0] ss:$0 sps:$4 sm:$0x77]   ;;  %v11345_v51 = vsel %vm5544_vm13, %v11342_v35, %v11344_v43 }
 0x57f   : > { %13945 = vmatmul.mubr.bf16.gmra.mrb[12].mxu1 %v10723_v6  ;;  %v11313_v6 = vsel %vm5544_vm13, %v11311_v44, %v11312_v33 }
 0x580   : > { %13948 = vmatprep.mubr.bf16.mxu1 %v10732_v8  ;;  %13981 = vmatpush3.bf16.msra.mxu1 %v15066_v13  ;;  %v10804_v13 = vsel %vm4876_vm12, %v10794_v54, %v10803_v55  ;;  %v10813_v22 = vsel %vm4876_vm12, %v10803_v55, %v10812_v40  ;;  %v11346_v54 = vrot.slane %v15089_v39, 3  ;;  %v11781_v40 = vld [vmem:[%s15158_s6 + $0x18] sm:$0xff] }
 0x581   : > { %13982 = vmatprep.subr.bf16.mxu1 %v15069_v7 }
 0x582   : > { %v11347_v10 = vsel %vm5544_vm13, %v11344_v43, %v11346_v54  ;;  %v11792_v54 = vld [vmem:[%s15158_s6 + $0x70] sm:$0xff] }
 0x584   : > { %13983 = vmatpush3.bf16.msra.mxu1 %v15069_v7  ;;  %v15073_v7 = vld [vmem:[#allocation2 + $0x20] sm:$0xff]  }
 0x585   : > { %v11314_v18 = vrot.slane %v15073_v7, 3  ;;  %v11779_v7 = vld [vmem:[%s15158_s6 + $0x8] sm:$0xff] }
 0x587   : > { %13949 = vmatmul.mubr.bf16.gmra.mrb[16].mxu1 %v10741_v19  ;;  %v11315_v8 = vsel %vm5544_vm13, %v11312_v33, %v11314_v18  ;;  %v11317_v11 = vsel %vm5544_vm13, %v11314_v18, %v11316_v1  ;;  %v11322_v19 = vrot.slane %v15077_v17, 3 }
 0x588   : > { %13952 = vmatprep.mubr.bf16.mxu1 %v10750_v2 }
 0x589   : > { %v11323_v57 = vsel %vm5544_vm13, %v11320_v14, %v11322_v19  ;;  %v11325_v2 = vsel %vm5544_vm13, %v11322_v19, %v11324_v5  ;;  %v11784_v14 = vld [vmem:[%s15158_s6 + $0x30] sm:$0xff]  ;;  %v11785_v5 = vld [vmem:[%s15158_s6 + $0x38] sm:$0xff] }
 0x58f   : > { %13953 = vmatmul.mubr.bf16.gmra.mrb[20].mxu1 %v10759_v29  ;;  %v11331_v29 = vsel %vm5544_vm13, %v11328_v15, %v11330_v49 }
 0x590   : > { %13956 = vmatprep.mubr.bf16.mxu1 %v10768_v16  ;;  %v11334_v16 = vrot.slane %v15083_v53, 3  ;;  %v11788_v53 = vld [vmem:[%s15158_s6 + $0x50] sm:$0xff] }
 0x592   : > { %v11335_v34 = vsel %vm5544_vm13, %v11332_v30, %v11334_v16  ;;  %v11337_v27 = vsel %vm5544_vm13, %v11334_v16, %v11336_v23  ;;  %v11786_v16 = vld [vmem:[%s15158_s6 + $0x40] sm:$0xff] }
 0x597   : > { %13957 = vmatmul.mubr.bf16.gmra.mrb[24].mxu1 %v10777_v45  ;;  %v11341_v45 = vsel %vm5544_vm13, %v11338_v47, %v11340_v37 }
 0x598   : > { %13960 = vmatprep.mubr.bf16.mxu1 %v10786_v46  ;;  %v11343_v46 = vsel %vm5544_vm13, %v11340_v37, %v11342_v35  ;;  %v11787_v37 = vld [vmem:[%s15158_s6 + $0x48] sm:$0xff] }
 0x59f   : > { %13961 = vmatmul.mubr.bf16.gmra.mrb[28].mxu1 %v10795_v52  ;;  %v11780_v52 = vld [vmem:[%s15158_s6 + $0x10] sm:$0xff] }
 0x5a0   : > { %13964 = vmatprep.mubr.bf16.mxu1 %v10804_v13  ;;  %v11778_v13 = vld [vmem:[%s15158_s6] sm:$0xff] }
 0x5a7   : > { %13965 = vmatmul.mubr.bf16.gmra.mrb[32].mxu1 %v10813_v22 }
 0x5a8   : > { %13984 = vmatprep.mubr.bf16.mxu1 %v11313_v6 }
 0x5af   : > { %13985 = vmatmul.mubr.bf16.vlgmr.msra.gmra.mrb[0].mxu1 %v11315_v8 }
 0x5b0   : > { %13988 = vmatprep.mubr.bf16.mxu1 %v11317_v11 }
 0x5b7   : > { %13989 = vmatmul.mubr.bf16.gmra.mrb[4].mxu1 %v11319_v9 }
 0x5b8   : > { %13992 = vmatprep.mubr.bf16.mxu1 %v11321_v60  ;;  %v11782_v60 = vld [vmem:[%s15158_s6 + $0x20] sm:$0xff] }
 0x5bf   : > { %13993 = vmatmul.mubr.bf16.gmra.mrb[8].mxu1 %v11323_v57 }
 0x5c0   : > { %13996 = vmatprep.mubr.bf16.mxu1 %v11325_v2 }
 0x5c7   : > { %13997 = vmatmul.mubr.bf16.gmra.mrb[12].mxu1 %v11327_v24 }
 0x5c8   : > { %14000 = vmatprep.mubr.bf16.mxu1 %v11329_v0 }
 0x5cf   : > { %14001 = vmatmul.mubr.bf16.gmra.mrb[16].mxu1 %v11331_v29 }
 0x5d0   : > { %14004 = vmatprep.mubr.bf16.mxu1 %v11333_v31 }
 0x5d7   : > { %14005 = vmatmul.mubr.bf16.gmra.mrb[20].mxu1 %v11335_v34 }
 0x5d8   : > { %14008 = vmatprep.mubr.bf16.mxu1 %v11337_v27 }
 0x5df   : > { %14009 = vmatmul.mubr.bf16.gmra.mrb[24].mxu1 %v11339_v20 }
 0x5e0   : > { %14012 = vmatprep.mubr.bf16.mxu1 %v11341_v45 }
 0x5e7   : > { %14013 = vmatmul.mubr.bf16.gmra.mrb[28].mxu1 %v11343_v46 }
 0x5e8   : > { %14016 = vmatprep.mubr.bf16.mxu1 %v11345_v51 }
 0x5ef   : > { %14017 = vmatmul.mubr.bf16.gmra.mrb[32].mxu1 %v11347_v10 }
 0x682   : > { %v13986_v55 = vpop.f32.mrb[0].mxu1 }
 0x683   : > { %v11744_v59 = vadd.f32 %v13986_v55, %v16326_v58  ;;  %v11448_v63 = vpop.f32.mrb[1].mxu1 }
 0x684   : > { %v11742_v36 = vadd.f32 %v16326_v58, %v11448_v63  ;;  %v13987_v26 = vpop.f32.mrb[2].mxu1 }
 0x685   : > { %v11816_v33 = vadd.f32 %v11780_v52, %v11744_v59  ;;  %v11745_v44 = vadd.f32 %v13987_v26, %v16326_v58  ;;  %v11451_v22 = vpop.f32.mrb[3].mxu1  ;;  %v11790_v52 = vld [vmem:[%s15158_s6 + $0x60] sm:$0xff] }
 0x686   : > { %v11814_v6 = vadd.f32 %v11778_v13, %v11742_v36  ;;  %v11743_v28 = vadd.f32 %v16326_v58, %v11451_v22  ;;  %v11793_v13 = vld [vmem:[%s15158_s6 + $0x78] sm:$0xff] }
 0x687   : > { %v11852_v18 = vmax.f32 %v11816_v33, 0.0  ;;  %v11817_v1 = vadd.f32 %v11781_v40, %v11745_v44  ;;  %v11791_v33 = vld [vmem:[%s15158_s6 + $0x68] sm:$0xff] }
 0x688   : > { %v11850_v8 = vmax.f32 %v11814_v6, 0.0  ;;  %v11815_v61 = vadd.f32 %v11779_v7, %v11743_v28 }
 0x689   : > { %11888 = vst [vmem:[%s16340_s24 + $0x10] sm:$0xff] %v11852_v18  ;;  %v11853_v11 = vmax.f32 %v11817_v1, 0.0 }
 0x68a   : > { %11886 = vst [vmem:[%s16340_s24] sm:$0xff] %v11850_v8  ;;  %v11851_v38 = vmax.f32 %v11815_v61, 0.0  ;;  %v13990_v50 = vpop.f32.mrb[4].mxu1 }
 0x68b   : > { %11889 = vst [vmem:[%s16340_s24 + $0x18] sm:$0xff] %v11853_v11  ;;  %v11748_v9 = vadd.f32 %v13990_v50, %v16326_v58  ;;  %v11464_v17 = vpop.f32.mrb[5].mxu1  ;;  %v11796_v11 = vld [vmem:[%s15158_s6 + $0x90] sm:$0xff] }
 0x68c   : > { %11887 = vst [vmem:[%s16340_s24 + $0x8] sm:$0xff] %v11851_v38  ;;  %v11746_v41 = vadd.f32 %v16326_v58, %v11464_v17  ;;  %v13991_v19 = vpop.f32.mrb[6].mxu1 }
 0x68d   : > { %v11820_v57 = vadd.f32 %v11784_v14, %v11748_v9  ;;  %v11749_v62 = vadd.f32 %v13991_v19, %v16326_v58  ;;  %v11467_v2 = vpop.f32.mrb[7].mxu1  ;;  %v11794_v14 = vld [vmem:[%s15158_s6 + $0x80] sm:$0xff] }
 0x68e   : > { %v11818_v56 = vadd.f32 %v11782_v60, %v11746_v41  ;;  %v11747_v15 = vadd.f32 %v16326_v58, %v11467_v2  ;;  %v11797_v60 = vld [vmem:[%s15158_s6 + $0x98] sm:$0xff] }
 0x68f   : > { %v11856_v24 = vmax.f32 %v11820_v57, 0.0  ;;  %v11821_v25 = vadd.f32 %v11785_v5, %v11749_v62  ;;  %v11795_v57 = vld [vmem:[%s15158_s6 + $0x88] sm:$0xff] }
 0x690   : > { %v11854_v0 = vmax.f32 %v11818_v56, 0.0  ;;  %v11819_v3 = vadd.f32 %v11783_v48, %v11747_v15 }
 0x691   : > { %11892 = vst [vmem:[%s16340_s24 + $0x30] sm:$0xff] %v11856_v24  ;;  %v11857_v49 = vmax.f32 %v11821_v25, 0.0 }
 0x692   : > { %11890 = vst [vmem:[%s16340_s24 + $0x20] sm:$0xff] %v11854_v0  ;;  %v11855_v30 = vmax.f32 %v11819_v3, 0.0  ;;  %v13994_v29 = vpop.f32.mrb[8].mxu1 }
 0x693   : > { %11893 = vst [vmem:[%s16340_s24 + $0x38] sm:$0xff] %v11857_v49  ;;  %v11752_v31 = vadd.f32 %v13994_v29, %v16326_v58  ;;  %v11480_v32 = vpop.f32.mrb[9].mxu1  ;;  %v11800_v49 = vld [vmem:[%s15158_s6 + $0xb0] sm:$0xff] }
 0x694   : > { %11891 = vst [vmem:[%s16340_s24 + $0x28] sm:$0xff] %v11855_v30  ;;  %v11750_v23 = vadd.f32 %v16326_v58, %v11480_v32  ;;  %v13995_v34 = vpop.f32.mrb[10].mxu1 }
 0x695   : > { %v11824_v27 = vadd.f32 %v11788_v53, %v11752_v31  ;;  %v11753_v42 = vadd.f32 %v13995_v34, %v16326_v58  ;;  %v11483_v47 = vpop.f32.mrb[11].mxu1  ;;  %v11798_v53 = vld [vmem:[%s15158_s6 + $0xa0] sm:$0xff] }
 0x696   : > { %v11822_v20 = vadd.f32 %v11786_v16, %v11750_v23  ;;  %v11751_v4 = vadd.f32 %v16326_v58, %v11483_v47  ;;  %v11801_v16 = vld [vmem:[%s15158_s6 + $0xb8] sm:$0xff] }
 0x697   : > { %v11860_v45 = vmax.f32 %v11824_v27, 0.0  ;;  %v11825_v21 = vadd.f32 %v11789_v12, %v11753_v42  ;;  %v11799_v27 = vld [vmem:[%s15158_s6 + $0xa8] sm:$0xff] }
 0x698   : > { %v11858_v35 = vmax.f32 %v11822_v20, 0.0  ;;  %v11823_v43 = vadd.f32 %v11787_v37, %v11751_v4 }
 0x699   : > { %11896 = vst [vmem:[%s16340_s24 + $0x50] sm:$0xff] %v11860_v45  ;;  %v11861_v46 = vmax.f32 %v11825_v21, 0.0 }
 0x69a   : > { %11894 = vst [vmem:[%s16340_s24 + $0x40] sm:$0xff] %v11858_v35  ;;  %v11859_v39 = vmax.f32 %v11823_v43, 0.0  ;;  %v13998_v51 = vpop.f32.mrb[12].mxu1 }
 0x69b   : > { %11897 = vst [vmem:[%s16340_s24 + $0x58] sm:$0xff] %v11861_v46  ;;  %v11756_v10 = vadd.f32 %v13998_v51, %v16326_v58  ;;  %v11496_v55 = vpop.f32.mrb[13].mxu1  ;;  %v11804_v46 = vld [vmem:[%s15158_s6 + $0xd0] sm:$0xff] }
 0x69c   : > { %11895 = vst [vmem:[%s16340_s24 + $0x48] sm:$0xff] %v11859_v39  ;;  %v11754_v59 = vadd.f32 %v16326_v58, %v11496_v55  ;;  %v13999_v63 = vpop.f32.mrb[14].mxu1 }
 0x69d   : > { %v11828_v36 = vadd.f32 %v11792_v54, %v11756_v10  ;;  %v11757_v26 = vadd.f32 %v13999_v63, %v16326_v58  ;;  %v11499_v40 = vpop.f32.mrb[15].mxu1  ;;  %v11802_v54 = vld [vmem:[%s15158_s6 + $0xc0] sm:$0xff] }
 0x69e   : > { %v11826_v44 = vadd.f32 %v11790_v52, %v11754_v59  ;;  %v11755_v22 = vadd.f32 %v16326_v58, %v11499_v40  ;;  %v11805_v52 = vld [vmem:[%s15158_s6 + $0xd8] sm:$0xff] }
 0x69f   : > { %v11864_v7 = vmax.f32 %v11828_v36, 0.0  ;;  %v11829_v6 = vadd.f32 %v11793_v13, %v11757_v26  ;;  %v11803_v36 = vld [vmem:[%s15158_s6 + $0xc8] sm:$0xff] }
 0x6a0   : > { %v11862_v28 = vmax.f32 %v11826_v44, 0.0  ;;  %v11827_v18 = vadd.f32 %v11791_v33, %v11755_v22 }
 0x6a1   : > { %11900 = vst [vmem:[%s16340_s24 + $0x70] sm:$0xff] %v11864_v7  ;;  %v11865_v1 = vmax.f32 %v11829_v6, 0.0 }
 0x6a2   : > { %11898 = vst [vmem:[%s16340_s24 + $0x60] sm:$0xff] %v11862_v28  ;;  %v11863_v8 = vmax.f32 %v11827_v18, 0.0  ;;  %v14002_v61 = vpop.f32.mrb[16].mxu1 }
 0x6a3   : > { %11901 = vst [vmem:[%s16340_s24 + $0x78] sm:$0xff] %v11865_v1  ;;  %v11760_v38 = vadd.f32 %v14002_v61, %v16326_v58  ;;  %v11512_v50 = vpop.f32.mrb[17].mxu1  ;;  %v11808_v1 = vld [vmem:[%s15158_s6 + $0xf0] sm:$0xff] }
 0x6a4   : > { %11899 = vst [vmem:[%s16340_s24 + $0x68] sm:$0xff] %v11863_v8  ;;  %v11758_v9 = vadd.f32 %v16326_v58, %v11512_v50  ;;  %v14003_v17 = vpop.f32.mrb[18].mxu1 }
 0x6a5   : > { %v11832_v41 = vadd.f32 %v11796_v11, %v11760_v38  ;;  %v11761_v19 = vadd.f32 %v14003_v17, %v16326_v58  ;;  %v11515_v5 = vpop.f32.mrb[19].mxu1  ;;  %v11806_v11 = vld [vmem:[%s15158_s6 + $0xe0] sm:$0xff] }
 0x6a6   : > { %v11830_v62 = vadd.f32 %v11794_v14, %v11758_v9  ;;  %v11759_v2 = vadd.f32 %v16326_v58, %v11515_v5  ;;  %v11809_v14 = vld [vmem:[%s15158_s6 + $0xf8] sm:$0xff] }
 0x6a7   : > { %v11868_v48 = vmax.f32 %v11832_v41, 0.0  ;;  %v11833_v56 = vadd.f32 %v11797_v60, %v11761_v19  ;;  %v11807_v41 = vld [vmem:[%s15158_s6 + $0xe8] sm:$0xff] }
 0x6a8   : > { %v11866_v15 = vmax.f32 %v11830_v62, 0.0  ;;  %v11831_v24 = vadd.f32 %v11795_v57, %v11759_v2 }
 0x6a9   : > { %11904 = vst [vmem:[%s16340_s24 + $0x90] sm:$0xff] %v11868_v48  ;;  %v11869_v25 = vmax.f32 %v11833_v56, 0.0 }
 0x6aa   : > { %11902 = vst [vmem:[%s16340_s24 + $0x80] sm:$0xff] %v11866_v15  ;;  %v11867_v0 = vmax.f32 %v11831_v24, 0.0  ;;  %v14006_v3 = vpop.f32.mrb[20].mxu1 }
 0x6ab   : > { %11905 = vst [vmem:[%s16340_s24 + $0x98] sm:$0xff] %v11869_v25  ;;  %v11764_v30 = vadd.f32 %v14006_v3, %v16326_v58  ;;  %v11528_v29 = vpop.f32.mrb[21].mxu1  ;;  %v11812_v25 = vld [vmem:[%s15158_s6 + $0x110] sm:$0xff] }
 0x6ac   : > { %11903 = vst [vmem:[%s16340_s24 + $0x88] sm:$0xff] %v11867_v0  ;;  %v11762_v31 = vadd.f32 %v16326_v58, %v11528_v29  ;;  %v14007_v32 = vpop.f32.mrb[22].mxu1 }
 0x6ad   : > { %v11836_v23 = vadd.f32 %v11800_v49, %v11764_v30  ;;  %v11765_v34 = vadd.f32 %v14007_v32, %v16326_v58  ;;  %v11531_v12 = vpop.f32.mrb[23].mxu1  ;;  %v11810_v49 = vld [vmem:[%s15158_s6 + $0x100] sm:$0xff] }
 0x6ae   : > { %v11834_v42 = vadd.f32 %v11798_v53, %v11762_v31  ;;  %v11763_v47 = vadd.f32 %v16326_v58, %v11531_v12  ;;  %v11813_v53 = vld [vmem:[%s15158_s6 + $0x118] sm:$0xff] }
 0x6af   : > { %v11872_v37 = vmax.f32 %v11836_v23, 0.0  ;;  %v11837_v20 = vadd.f32 %v11801_v16, %v11765_v34  ;;  %v11811_v23 = vld [vmem:[%s15158_s6 + $0x108] sm:$0xff] }
 0x6b0   : > { %v11870_v4 = vmax.f32 %v11834_v42, 0.0  ;;  %v11835_v45 = vadd.f32 %v11799_v27, %v11763_v47 }
 0x6b1   : > { %11908 = vst [vmem:[%s16340_s24 + $0xb0] sm:$0xff] %v11872_v37  ;;  %v11873_v21 = vmax.f32 %v11837_v20, 0.0 }
 0x6b2   : > { %11906 = vst [vmem:[%s16340_s24 + $0xa0] sm:$0xff] %v11870_v4  ;;  %v11871_v35 = vmax.f32 %v11835_v45, 0.0  ;;  %v14010_v43 = vpop.f32.mrb[24].mxu1 }
 0x6b3   : > { %11909 = vst [vmem:[%s16340_s24 + $0xb8] sm:$0xff] %v11873_v21  ;;  %v11768_v39 = vadd.f32 %v14010_v43, %v16326_v58  ;;  %v11544_v51 = vpop.f32.mrb[25].mxu1 }
 0x6b4   : > { %11907 = vst [vmem:[%s16340_s24 + $0xa8] sm:$0xff] %v11871_v35  ;;  %v11766_v10 = vadd.f32 %v16326_v58, %v11544_v51  ;;  %v14011_v55 = vpop.f32.mrb[26].mxu1 }
 0x6b5   : > { %v11840_v59 = vadd.f32 %v11804_v46, %v11768_v39  ;;  %v11769_v63 = vadd.f32 %v14011_v55, %v16326_v58  ;;  %v11547_v13 = vpop.f32.mrb[27].mxu1 }
 0x6b6   : > { %v11838_v26 = vadd.f32 %v11802_v54, %v11766_v10  ;;  %v11767_v40 = vadd.f32 %v16326_v58, %v11547_v13 }
 0x6b7   : > { %v11876_v33 = vmax.f32 %v11840_v59, 0.0  ;;  %v11841_v44 = vadd.f32 %v11805_v52, %v11769_v63 }
 0x6b8   : > { %v11874_v22 = vmax.f32 %v11838_v26, 0.0  ;;  %v11839_v7 = vadd.f32 %v11803_v36, %v11767_v40 }
 0x6b9   : > { %11912 = vst [vmem:[%s16340_s24 + $0xd0] sm:$0xff] %v11876_v33  ;;  %v11877_v6 = vmax.f32 %v11841_v44, 0.0 }
 0x6ba   : > { %11910 = vst [vmem:[%s16340_s24 + $0xc0] sm:$0xff] %v11874_v22  ;;  %v11875_v28 = vmax.f32 %v11839_v7, 0.0  ;;  %v14014_v18 = vpop.f32.mrb[28].mxu1 }
 0x6bb   : > { %11913 = vst [vmem:[%s16340_s24 + $0xd8] sm:$0xff] %v11877_v6  ;;  %v11772_v8 = vadd.f32 %v14014_v18, %v16326_v58  ;;  %v11560_v61 = vpop.f32.mrb[29].mxu1 }
 0x6bc   : > { %11911 = vst [vmem:[%s16340_s24 + $0xc8] sm:$0xff] %v11875_v28  ;;  %v11770_v38 = vadd.f32 %v16326_v58, %v11560_v61  ;;  %v14015_v50 = vpop.f32.mrb[30].mxu1 }
 0x6bd   : > { %v11844_v9 = vadd.f32 %v11808_v1, %v11772_v8  ;;  %v11773_v17 = vadd.f32 %v14015_v50, %v16326_v58  ;;  %v11563_v60 = vpop.f32.mrb[31].mxu1 }
 0x6be   : > { %v11842_v19 = vadd.f32 %v11806_v11, %v11770_v38  ;;  %v11771_v5 = vadd.f32 %v16326_v58, %v11563_v60 }
 0x6bf   : > { %v11880_v57 = vmax.f32 %v11844_v9, 0.0  ;;  %v11845_v62 = vadd.f32 %v11809_v14, %v11773_v17 }
 0x6c0   : > { %v11878_v2 = vmax.f32 %v11842_v19, 0.0  ;;  %v11843_v48 = vadd.f32 %v11807_v41, %v11771_v5 }
 0x6c1   : > { %11916 = vst [vmem:[%s16340_s24 + $0xf0] sm:$0xff] %v11880_v57  ;;  %v11881_v56 = vmax.f32 %v11845_v62, 0.0 }
 0x6c2   : > { %11914 = vst [vmem:[%s16340_s24 + $0xe0] sm:$0xff] %v11878_v2  ;;  %v11879_v15 = vmax.f32 %v11843_v48, 0.0  ;;  %v14018_v24 = vpop.f32.mrb[32].mxu1 }
 0x6c3   : > { %11917 = vst [vmem:[%s16340_s24 + $0xf8] sm:$0xff] %v11881_v56  ;;  %v11776_v0 = vadd.f32 %v14018_v24, %v16326_v58  ;;  %v11576_v3 = vpop.f32.mrb[33].mxu1 }
 0x6c4   : > { %11915 = vst [vmem:[%s16340_s24 + $0xe8] sm:$0xff] %v11879_v15  ;;  %v11774_v30 = vadd.f32 %v16326_v58, %v11576_v3  ;;  %v14019_v29 = vpop.f32.mrb[34].mxu1 }
 0x6c5   : > { %v11848_v31 = vadd.f32 %v11812_v25, %v11776_v0  ;;  %v11777_v32 = vadd.f32 %v14019_v29, %v16326_v58  ;;  %v11579_v16 = vpop.f32.mrb[35].mxu1 }
 0x6c6   : > { %v11846_v34 = vadd.f32 %v11810_v49, %v11774_v30  ;;  %v11775_v12 = vadd.f32 %v16326_v58, %v11579_v16 }
 0x6c7   : > { %v11884_v27 = vmax.f32 %v11848_v31, 0.0  ;;  %v11849_v42 = vadd.f32 %v11813_v53, %v11777_v32 }
 0x6c8   : > { %v11882_v47 = vmax.f32 %v11846_v34, 0.0  ;;  %v11847_v37 = vadd.f32 %v11811_v23, %v11775_v12 }
 0x6c9   : > { %11920 = vst [vmem:[%s16340_s24 + $0x110] sm:$0xff] %v11884_v27  ;;  %v11885_v20 = vmax.f32 %v11849_v42, 0.0 }
 0x6ca   : > { %11918 = vst [vmem:[%s16340_s24 + $0x100] sm:$0xff] %v11882_v47  ;;  %v11883_v4 = vmax.f32 %v11847_v37, 0.0 }
 0x6cb   : > { %11921 = vst [vmem:[%s16340_s24 + $0x118] sm:$0xff] %v11885_v20 }
 0x6cc   : > { %11919 = vst [vmem:[%s16340_s24 + $0x108] sm:$0xff] %v11883_v4 }
 0x6cd PF: > { %s15_s18 = sadd.s32 1, %s15097_s18  }
 0x6ce   : > { %p12_p4 = scmp.ge.s32.totalorder %s15_s18, 4  }
 0x6d0   :  { %14 = sbr.rel (!%p12_p4) target bundleno = 1 (0x1), region = 70 }

</bundles_post_ra>
